<compile_context>
chip_gen: v7x
topology: tpu7x:2x2x1
jax: 0.10.0
libtpu: 0.0.40
codegen_flags: <defaults>
</compile_context>

<pallas_src>
import math
import itertools

import jax
import jax.numpy as jnp
from jax.experimental import pallas as pl
from jax.experimental.pallas import tpu as pltpu

LOG_2PI = math.log(2.0 * math.pi)
NC_PAD = 128                        # 125 centers padded to a full lane width

# Shared projection MLP layer dims, torch nn.Linear layout: (out_features, in_features)
_LAYER_DIMS = ((8, 3), (16, 8), (8, 16), (3, 8))
_ROW_OFF = (0, 8, 24, 32)           # row offset of each packed [W | b] block
_PACK_ROWS = 35                     # 8 + 16 + 8 + 3
_PACK_COLS = 17                     # max(in_dim) + 1 bias column

HIGHEST = jax.lax.Precision.HIGHEST


def _mish(v):
    # Mish(x) = x * tanh(softplus(x))
    return v * jnp.tanh(jax.nn.softplus(v))


def _mlp_rows(v, params):
    """Shared projection MLP on row-major (..., 3) data (plain JAX, wrapper/ref)."""
    for w, b in zip(params[0::2], params[1::2]):
        v = _mish(jnp.dot(v, w.T, precision=HIGHEST,
                          preferred_element_type=jnp.float32) + b)
    return v


# ----------------------------------------------------------------------------- kernel
def color_regressor_kernel(x_ref, cent_ref, wpack_ref, out_ref):
    x = x_ref[...]                      # (3, TM)   pixels on the lane axis
    wp = wpack_ref[...]                 # (35, 17)  packed [W | b] per layer

    # transposed 4-layer Mish MLP: activations stay lane-dense (out_d, TM)
    h = x
    for (out_d, in_d), r0 in zip(_LAYER_DIMS, _ROW_OFF):
        w = wp[r0:r0 + out_d, 0:in_d]            # (out_d, in_d)
        b = wp[r0:r0 + out_d, in_d:in_d + 1]     # (out_d, 1)
        h = _mish(jnp.dot(w, h, precision=HIGHEST,
                          preferred_element_type=jnp.float32) + b)
    xp = h                              # (3, TM)   projected pixels

    cent = cent_ref[...]                # (128, 4): cols 0:3 = projected centers, col 3 = ||ep||^2
    ep = cent[:, 0:3]                   # (128, 3)
    c2 = cent[:, 3:4]                   # (128, 1)

    x2 = jnp.sum(xp * xp, axis=0, keepdims=True)                 # (1, TM)
    cross = jnp.dot(ep, xp, precision=HIGHEST,
                    preferred_element_type=jnp.float32)          # (128, TM) on the MXU
    sq = jnp.maximum(c2 + x2 - 2.0 * cross, 0.0)                 # ||xp - ep||^2, clamped

    # Normal(0,1).log_prob(sqrt(sq)) = -0.5*sq - 0.5*log(2*pi)   (sqrt dropped, exact)
    out_ref[...] = jnp.exp(-0.5 * sq - 0.5 * LOG_2PI)            # (128, TM) full-lane store


# ----------------------------------------------------------------------------- packing
def pack_params(params):
    """Pack the 8 weight/bias arrays into one (35, 17) block: per layer [W | b]."""
    blocks = []
    for (w, b), (out_d, in_d) in zip(zip(params[0::2], params[1::2]), _LAYER_DIMS):
        blk = jnp.concatenate([w, b.reshape(out_d, 1)], axis=1)          # (out_d, in_d+1)
        blk = jnp.pad(blk, ((0, 0), (0, _PACK_COLS - (in_d + 1))))
        blocks.append(blk)
    return jnp.concatenate(blocks, axis=0).astype(jnp.float32)           # (35, 17)


def pack_centers(centers, params):
    """Project the centers once (hoisted out of the kernel), append squared norms,
    and pad the row count to 128 so the kernel output stays lane-dense."""
    ep = _mlp_rows(centers, params)                                      # (125, 3)
    c2 = jnp.sum(ep * ep, axis=-1, keepdims=True)                        # (125, 1)
    cp = jnp.concatenate([ep, c2], axis=1)                               # (125, 4)
    return jnp.pad(cp, ((0, NC_PAD - cp.shape[0]), (0, 0)))              # (128, 4)


# ----------------------------------------------------------------------------- wrapper
def _round_up(n, m):
    return (n + m - 1) // m * m


def color_regressor(x_nchw, centers, params, *, tm=1024):
    """x_nchw: (B, 3, H, W) float32 -> (B, 125, H, W) float32."""
    B, C, H, W = x_nchw.shape
    assert C == 3
    n_centers = centers.shape[0]
    N = B * H * W

    cpack = pack_centers(centers, params)       # (128, 4)  centers projected once
    wpack = pack_params(params)                 # (35, 17)

    # NCHW -> (3, N): channel-major flatten (coarse plane transpose only).
    x_flat = jnp.transpose(x_nchw, (1, 0, 2, 3)).reshape(3, N)

    # Large pixel tiles amortize per-grid-step overhead; clamp so tiny inputs
    # are not over-padded.  Pad pixel columns to a multiple of the tile.
    tm = max(128, min(tm, _round_up(N, 128)))
    Np = _round_up(N, tm)
    if Np != N:
        x_flat = jnp.pad(x_flat, ((0, 0), (0, Np - N)))

    full = lambda i: (0, 0)
    out = pl.pallas_call(
        color_regressor_kernel,
        out_shape=jax.ShapeDtypeStruct((NC_PAD, Np), jnp.float32),
        grid_spec=pltpu.PrefetchScalarGridSpec(
            num_scalar_prefetch=0,
            grid=(Np // tm,),
            in_specs=[pl.BlockSpec((3, tm), lambda i: (0, i)),
                      pl.BlockSpec((NC_PAD, 4), full),
                      pl.BlockSpec((_PACK_ROWS, _PACK_COLS), full)],
            out_specs=pl.BlockSpec((NC_PAD, tm), lambda i: (0, i)),
        ),
        compiler_params=pltpu.CompilerParams(
            dimension_semantics=("parallel",)),
    )(x_flat, cpack, wpack)

    out = out[:n_centers, :N]                        # drop lane / pixel padding
    out = out.reshape(n_centers, B, H, W)
    return jnp.transpose(out, (1, 0, 2, 3))          # (B, 125, H, W)


# ----------------------------------------------------------------------------- setup + reference
def make_params(key):
    """Deterministic params mimicking torch.nn.Linear default init (torch layout)."""
    params = []
    for i, (fout, fin) in enumerate(_LAYER_DIMS):
        kw, kb = jax.random.split(jax.random.fold_in(key, i))
        bound = 1.0 / math.sqrt(fin)
        w = jax.random.uniform(kw, (fout, fin), jnp.float32, -bound, bound)
        b = jax.random.uniform(kb, (fout,), jnp.float32, -bound, bound)
        params += [w, b]
    return tuple(params)


def make_centers():
    vals = [0.0, 0.25, 0.5, 0.75, 1.0]
    return jnp.asarray(list(itertools.product(vals, repeat=3)), dtype=jnp.float32)  # (125, 3)


def color_regressor_ref(x_nchw, centers, params):
    """Pure-JAX reference mirroring the PyTorch forward."""
    x = jnp.transpose(x_nchw, (0, 2, 3, 1))            # (B, H, W, 3)
    xp = _mlp_rows(x, params)[..., None, :]            # (B, H, W, 1, 3)
    ep = _mlp_rows(centers, params)                    # (125, 3)
    dist = jnp.sqrt(jnp.sum((xp - ep) ** 2, axis=-1))  # (B, H, W, 125)
    out = jnp.exp(-0.5 * dist * dist - 0.5 * LOG_2PI)
    return jnp.transpose(out, (0, 3, 1, 2))            # (B, 125, H, W)


if __name__ == "__main__":
    key = jax.random.PRNGKey(0)
    k_x, k_p = jax.random.split(key)

    B, H, W = 2, 16, 16
    x = jax.random.uniform(k_x, (B, 3, H, W), jnp.float32)   # colors in [0, 1]

    params = make_params(k_p)
    centers = make_centers()

    out = jax.block_until_ready(color_regressor(x, centers, params))
    ref = jax.block_until_ready(color_regressor_ref(x, centers, params))

    assert out.shape == (B, 125, H, W), out.shape
    assert jnp.allclose(out, ref, rtol=1e-4, atol=1e-4), "mismatch vs reference"
    print("KERNEL_OK")
</pallas_src>

<mosaic_0001>
module attributes {stable_mosaic.version = 11 : i64} {
  func.func @color_regressor_kernel(%arg0: i32, %arg1: memref<3x512xf32, #tpu.memory_space<vmem>>, %arg2: memref<128x4xf32, #tpu.memory_space<vmem>>, %arg3: memref<35x17xf32, #tpu.memory_space<vmem>>, %arg4: memref<128x512xf32, #tpu.memory_space<vmem>>) attributes {dimension_semantics = [#tpu.dimension_semantics<parallel>], iteration_bounds = array<i64: 1>, scalar_prefetch = 0 : i64, scratch_operands = 0 : i64, tpu.core_type = #tpu.core_type<tc>, window_params = [{transform_indices = @transform_0, window_bounds = array<i64: 3, 512>}, {pipeline_mode = #tpu.pipeline_mode<synchronous>, transform_indices = @transform_1, window_bounds = array<i64: 128, 4>}, {pipeline_mode = #tpu.pipeline_mode<synchronous>, transform_indices = @transform_2, window_bounds = array<i64: 35, 17>}, {transform_indices = @transform_3, window_bounds = array<i64: 128, 512>}]} {
    %c0 = arith.constant 0 : index
    %c0_0 = arith.constant 0 : index
    %0 = vector.load %arg1[%c0, %c0_0] : memref<3x512xf32, #tpu.memory_space<vmem>>, vector<3x512xf32>
    %c0_1 = arith.constant 0 : index
    %c0_2 = arith.constant 0 : index
    %1 = vector.load %arg3[%c0_1, %c0_2] : memref<35x17xf32, #tpu.memory_space<vmem>>, vector<35x17xf32>
    %2 = vector.extract_strided_slice %1 {offsets = [0, 0], sizes = [8, 3], strides = [1, 1]} : vector<35x17xf32> to vector<8x3xf32>
    %3 = vector.extract_strided_slice %1 {offsets = [0, 3], sizes = [8, 1], strides = [1, 1]} : vector<35x17xf32> to vector<8x1xf32>
    %cst = arith.constant dense<0.000000e+00> : vector<8x512xf32>
    %4 = tpu.matmul %2, %0, %cst {dimension_numbers = #tpu.dot_dimension_numbers<[1], [0], [0], [1], [0, 0, 1, 1], [], []>, precision = #tpu.contract_precision<fp32>} : vector<8x3xf32>, vector<3x512xf32>, vector<8x512xf32> -> vector<8x512xf32>
    %5 = vector.broadcast %3 : vector<8x1xf32> to vector<8x512xf32>
    %6 = arith.addf %4, %5 : vector<8x512xf32>
    %cst_3 = arith.constant 0.000000e+00 : f32
    %7 = vector.broadcast %cst_3 : f32 to vector<8x512xf32>
    %8 = arith.maximumf %6, %7 : vector<8x512xf32>
    %9 = vector.broadcast %cst_3 : f32 to vector<8x512xf32>
    %10 = arith.subf %6, %9 : vector<8x512xf32>
    %11 = arith.cmpf one, %10, %10 : vector<8x512xf32>
    %12 = vector.broadcast %cst_3 : f32 to vector<8x512xf32>
    %13 = arith.addf %6, %12 : vector<8x512xf32>
    %14 = math.absf %10 : vector<8x512xf32>
    %cst_4 = arith.constant 0.000000e+00 : f32
    %15 = vector.broadcast %cst_4 : f32 to vector<8x512xf32>
    %16 = arith.subf %15, %14 : vector<8x512xf32>
    %17 = math.exp %16 : vector<8x512xf32>
    %18 = math.log1p %17 : vector<8x512xf32>
    %19 = arith.addf %8, %18 : vector<8x512xf32>
    %20 = arith.select %11, %13, %19 : vector<8x512xi1>, vector<8x512xf32>
    %21 = math.tanh %20 : vector<8x512xf32>
    %22 = arith.mulf %6, %21 : vector<8x512xf32>
    %23 = vector.extract_strided_slice %1 {offsets = [8, 0], sizes = [16, 8], strides = [1, 1]} : vector<35x17xf32> to vector<16x8xf32>
    %24 = vector.extract_strided_slice %1 {offsets = [8, 8], sizes = [16, 1], strides = [1, 1]} : vector<35x17xf32> to vector<16x1xf32>
    %cst_5 = arith.constant dense<0.000000e+00> : vector<16x512xf32>
    %25 = tpu.matmul %23, %22, %cst_5 {dimension_numbers = #tpu.dot_dimension_numbers<[1], [0], [0], [1], [0, 0, 1, 1], [], []>, precision = #tpu.contract_precision<fp32>} : vector<16x8xf32>, vector<8x512xf32>, vector<16x512xf32> -> vector<16x512xf32>
    %26 = vector.broadcast %24 : vector<16x1xf32> to vector<16x512xf32>
    %27 = arith.addf %25, %26 : vector<16x512xf32>
    %cst_6 = arith.constant 0.000000e+00 : f32
    %28 = vector.broadcast %cst_6 : f32 to vector<16x512xf32>
    %29 = arith.maximumf %27, %28 : vector<16x512xf32>
    %30 = vector.broadcast %cst_6 : f32 to vector<16x512xf32>
    %31 = arith.subf %27, %30 : vector<16x512xf32>
    %32 = arith.cmpf one, %31, %31 : vector<16x512xf32>
    %33 = vector.broadcast %cst_6 : f32 to vector<16x512xf32>
    %34 = arith.addf %27, %33 : vector<16x512xf32>
    %35 = math.absf %31 : vector<16x512xf32>
    %cst_7 = arith.constant 0.000000e+00 : f32
    %36 = vector.broadcast %cst_7 : f32 to vector<16x512xf32>
    %37 = arith.subf %36, %35 : vector<16x512xf32>
    %38 = math.exp %37 : vector<16x512xf32>
    %39 = math.log1p %38 : vector<16x512xf32>
    %40 = arith.addf %29, %39 : vector<16x512xf32>
    %41 = arith.select %32, %34, %40 : vector<16x512xi1>, vector<16x512xf32>
    %42 = math.tanh %41 : vector<16x512xf32>
    %43 = arith.mulf %27, %42 : vector<16x512xf32>
    %44 = vector.extract_strided_slice %1 {offsets = [24, 0], sizes = [8, 16], strides = [1, 1]} : vector<35x17xf32> to vector<8x16xf32>
    %45 = vector.extract_strided_slice %1 {offsets = [24, 16], sizes = [8, 1], strides = [1, 1]} : vector<35x17xf32> to vector<8x1xf32>
    %cst_8 = arith.constant dense<0.000000e+00> : vector<8x512xf32>
    %46 = tpu.matmul %44, %43, %cst_8 {dimension_numbers = #tpu.dot_dimension_numbers<[1], [0], [0], [1], [0, 0, 1, 1], [], []>, precision = #tpu.contract_precision<fp32>} : vector<8x16xf32>, vector<16x512xf32>, vector<8x512xf32> -> vector<8x512xf32>
    %47 = vector.broadcast %45 : vector<8x1xf32> to vector<8x512xf32>
    %48 = arith.addf %46, %47 : vector<8x512xf32>
    %cst_9 = arith.constant 0.000000e+00 : f32
    %49 = vector.broadcast %cst_9 : f32 to vector<8x512xf32>
    %50 = arith.maximumf %48, %49 : vector<8x512xf32>
    %51 = vector.broadcast %cst_9 : f32 to vector<8x512xf32>
    %52 = arith.subf %48, %51 : vector<8x512xf32>
    %53 = arith.cmpf one, %52, %52 : vector<8x512xf32>
    %54 = vector.broadcast %cst_9 : f32 to vector<8x512xf32>
    %55 = arith.addf %48, %54 : vector<8x512xf32>
    %56 = math.absf %52 : vector<8x512xf32>
    %cst_10 = arith.constant 0.000000e+00 : f32
    %57 = vector.broadcast %cst_10 : f32 to vector<8x512xf32>
    %58 = arith.subf %57, %56 : vector<8x512xf32>
    %59 = math.exp %58 : vector<8x512xf32>
    %60 = math.log1p %59 : vector<8x512xf32>
    %61 = arith.addf %50, %60 : vector<8x512xf32>
    %62 = arith.select %53, %55, %61 : vector<8x512xi1>, vector<8x512xf32>
    %63 = math.tanh %62 : vector<8x512xf32>
    %64 = arith.mulf %48, %63 : vector<8x512xf32>
    %65 = vector.extract_strided_slice %1 {offsets = [32, 0], sizes = [3, 8], strides = [1, 1]} : vector<35x17xf32> to vector<3x8xf32>
    %66 = vector.extract_strided_slice %1 {offsets = [32, 8], sizes = [3, 1], strides = [1, 1]} : vector<35x17xf32> to vector<3x1xf32>
    %cst_11 = arith.constant dense<0.000000e+00> : vector<3x512xf32>
    %67 = tpu.matmul %65, %64, %cst_11 {dimension_numbers = #tpu.dot_dimension_numbers<[1], [0], [0], [1], [0, 0, 1, 1], [], []>, precision = #tpu.contract_precision<fp32>} : vector<3x8xf32>, vector<8x512xf32>, vector<3x512xf32> -> vector<3x512xf32>
    %68 = vector.broadcast %66 : vector<3x1xf32> to vector<3x512xf32>
    %69 = arith.addf %67, %68 : vector<3x512xf32>
    %cst_12 = arith.constant 0.000000e+00 : f32
    %70 = vector.broadcast %cst_12 : f32 to vector<3x512xf32>
    %71 = arith.maximumf %69, %70 : vector<3x512xf32>
    %72 = vector.broadcast %cst_12 : f32 to vector<3x512xf32>
    %73 = arith.subf %69, %72 : vector<3x512xf32>
    %74 = arith.cmpf one, %73, %73 : vector<3x512xf32>
    %75 = vector.broadcast %cst_12 : f32 to vector<3x512xf32>
    %76 = arith.addf %69, %75 : vector<3x512xf32>
    %77 = math.absf %73 : vector<3x512xf32>
    %cst_13 = arith.constant 0.000000e+00 : f32
    %78 = vector.broadcast %cst_13 : f32 to vector<3x512xf32>
    %79 = arith.subf %78, %77 : vector<3x512xf32>
    %80 = math.exp %79 : vector<3x512xf32>
    %81 = math.log1p %80 : vector<3x512xf32>
    %82 = arith.addf %71, %81 : vector<3x512xf32>
    %83 = arith.select %74, %76, %82 : vector<3x512xi1>, vector<3x512xf32>
    %84 = math.tanh %83 : vector<3x512xf32>
    %85 = arith.mulf %69, %84 : vector<3x512xf32>
    %c0_14 = arith.constant 0 : index
    %c0_15 = arith.constant 0 : index
    %86 = vector.load %arg2[%c0_14, %c0_15] : memref<128x4xf32, #tpu.memory_space<vmem>>, vector<128x4xf32>
    %87 = vector.extract_strided_slice %86 {offsets = [0, 0], sizes = [128, 3], strides = [1, 1]} : vector<128x4xf32> to vector<128x3xf32>
    %88 = vector.extract_strided_slice %86 {offsets = [0, 3], sizes = [128, 1], strides = [1, 1]} : vector<128x4xf32> to vector<128x1xf32>
    %89 = arith.mulf %85, %85 : vector<3x512xf32>
    %cst_16 = arith.constant dense<0.000000e+00> : vector<512xf32>
    %90 = vector.multi_reduction <add>, %89, %cst_16 [0] : vector<3x512xf32> to vector<512xf32>
    %91 = vector.shape_cast %90 : vector<512xf32> to vector<1x512xf32>
    %cst_17 = arith.constant dense<0.000000e+00> : vector<128x512xf32>
    %92 = tpu.matmul %87, %85, %cst_17 {dimension_numbers = #tpu.dot_dimension_numbers<[1], [0], [0], [1], [0, 0, 1, 1], [], []>, precision = #tpu.contract_precision<fp32>} : vector<128x3xf32>, vector<3x512xf32>, vector<128x512xf32> -> vector<128x512xf32>
    %93 = vector.broadcast %88 : vector<128x1xf32> to vector<128x512xf32>
    %94 = vector.broadcast %91 : vector<1x512xf32> to vector<128x512xf32>
    %95 = arith.addf %93, %94 : vector<128x512xf32>
    %cst_18 = arith.constant 2.000000e+00 : f32
    %96 = vector.broadcast %cst_18 : f32 to vector<128x512xf32>
    %97 = arith.mulf %96, %92 : vector<128x512xf32>
    %98 = arith.subf %95, %97 : vector<128x512xf32>
    %cst_19 = arith.constant 0.000000e+00 : f32
    %99 = vector.broadcast %cst_19 : f32 to vector<128x512xf32>
    %100 = arith.maximumf %98, %99 : vector<128x512xf32>
    %cst_20 = arith.constant -5.000000e-01 : f32
    %101 = vector.broadcast %cst_20 : f32 to vector<128x512xf32>
    %102 = arith.mulf %101, %100 : vector<128x512xf32>
    %cst_21 = arith.constant 0.918938517 : f32
    %103 = vector.broadcast %cst_21 : f32 to vector<128x512xf32>
    %104 = arith.subf %102, %103 : vector<128x512xf32>
    %105 = math.exp %104 : vector<128x512xf32>
    %c0_22 = arith.constant 0 : index
    %c0_23 = arith.constant 0 : index
    %106 = vector.load %arg4[%c0_22, %c0_23] : memref<128x512xf32, #tpu.memory_space<vmem>>, vector<128x512xf32>
    tpu.vector_store %arg4[%c0_22, %c0_23], %105 {strides = array<i32>} : memref<128x512xf32, #tpu.memory_space<vmem>>, vector<128x512xf32>,
    return
  }
  func.func @transform_0(%arg0: i32) -> (i32, i32) {
    %c0_i32 = arith.constant 0 : i32
    %c0_i32_0 = arith.constant 0 : i32
    return %c0_i32, %arg0 : i32, i32
  }
  func.func @transform_1(%arg0: i32) -> (i32, i32) {
    %c0_i32 = arith.constant 0 : i32
    %c0_i32_0 = arith.constant 0 : i32
    %c0_i32_1 = arith.constant 0 : i32
    return %c0_i32, %c0_i32_0 : i32, i32
  }
  func.func @transform_2(%arg0: i32) -> (i32, i32) {
    %c0_i32 = arith.constant 0 : i32
    %c0_i32_0 = arith.constant 0 : i32
    %c0_i32_1 = arith.constant 0 : i32
    return %c0_i32, %c0_i32_0 : i32, i32
  }
  func.func @transform_3(%arg0: i32) -> (i32, i32) {
    %c0_i32 = arith.constant 0 : i32
    %c0_i32_0 = arith.constant 0 : i32
    return %c0_i32, %arg0 : i32, i32
  }
}

</mosaic_0001>

<bundles_post_ra>
// kernel: tpu_custom_call.1
= control target key start
LH: loop header
LB: loop body
LE: loop exit
PB: predicated region body
PF: predicated region fallthrough
CT: control target
= control target key end

     0   :  { %vm34_vm0 = vcmask 1042432   ;;  %v8347_v5 = vmov 0.0   ;;  %s10120_s0 = inlined_call_operand.vmem [shape: f32[3,512], index: 0, kind: input, shape index: {}]   ;;  %s10121_s1 = inlined_call_operand.vmem [shape: f32[128,4], index: 1, kind: input, shape index: {}]   ;;  %s10122_s2 = inlined_call_operand.vmem [shape: f32[35,17], index: 2, kind: input, shape index: {}]   ;;  %s10123_s3 = inlined_call_operand.hbm [shape: f32[128,512], index: 3, kind: output, shape index: {}]  }
   0x1   :  { %v15_v0 = vld [vmem:[%s10120_s0] sm:$0x77]  ;;  %v16_v1 = vld [vmem:[%s10120_s0 + $0x8] sm:$0x77]  ;;  %109 = vmatprep.mubr.f32.mxu0 %v8347_v5  ;;  %574 = vmatprep.mubr.f32.mxu1 %v8347_v5 }
   0x2   :  { %v29_v2 = vcombine.high %v15_v0, %v15_v0  ;;  %v30_v3 = vcombine.high %v16_v1, %v16_v1  ;;  %v35_v4 = vsel %vm34_vm0, %v15_v0, 0  ;;  %v39_v6 = vsel %vm34_vm0, %v16_v1, 0  ;;  %v17_v7 = vld [vmem:[%s10122_s2] sm:$0xff] }
   0x3   :  { %8 = vsyncpa [#allocation3], 0  ;;  %v8387_v8 = vand.u32 4294901760, %v35_v4  ;;  %v8389_v9 = vand.u32 4294901760, %v39_v6  ;;  %vm31_vm1 = vcmask 23552   ;;  %v8348_v13 = vmov 3  }
   0x4   :  { %v37_v10 = vsel %vm34_vm0, %v29_v2, 0  ;;  %v41_v11 = vsel %vm34_vm0, %v30_v3, 0  ;;  %v32_v12 = vsel %vm31_vm1, %v17_v7, 0  ;;  %8066 = vset.pattern.permute.xlu0 %v8348_v13  ;;  %v18_v37 = vld [vmem:[%s10122_s2 + $0x8] sm:$0xff]  ;;  %v19_v38 = vld [vmem:[%s10122_s2 + $0x10] sm:$0xff]  ;;  %v8349_v39 = vmov 8  }
   0x5   :  { %v43_v14 = vand.u32 4294901760, %v37_v10  ;;  %v508_v15 = vand.u32 4294901760, %v41_v11  ;;  %v128_v16 = vsub.f32 %v35_v4, %v8387_v8  ;;  %v593_v17 = vsub.f32 %v39_v6, %v8389_v9  ;;  %24 = vperm.xlu0 %8066, %v17_v7   ;;  %8068 = vset.pattern.permute.xlu1 %v8349_v39 }
   0x6   :  { %v8397_v18 = vand.u32 4294901760, %v32_v12  ;;  %1060 = vperm.xlu1 %8068, %v19_v38   ;;  %vm1063_vm2 = vcmask 64512   ;;  %vm2261_vm11 = vcmask 130048  }
   0x7   :  { %44 = vmatprep.subr.mxu0 %v43_v14  ;;  %509 = vmatprep.subr.mxu1 %v508_v15  ;;  %v122_v19 = vsub.f32 %v37_v10, %v43_v14  ;;  %v587_v20 = vsub.f32 %v41_v11, %v508_v15  ;;  %v129_v21 = vand.u32 4294901760, %v128_v16  ;;  %v594_v22 = vand.u32 4294901760, %v593_v17 }
   0x8   :  { %46 = vmatpush1.msra.mxu0 %v8387_v8  ;;  %511 = vmatpush1.msra.mxu1 %v8389_v9  ;;  %v111_v23 = vsub.f32 %v32_v12, %v8397_v18 }
   0x9   :  { %v123_v24 = vand.u32 4294901760, %v122_v19  ;;  %v588_v25 = vand.u32 4294901760, %v587_v20  ;;  %v130_v26 = vsub.f32 %v128_v16, %v129_v21  ;;  %v595_v28 = vsub.f32 %v593_v17, %v594_v22  ;;  %8067 = vset.pattern.permute.xlu0 %v8349_v39 }
   0xa   :  { %v112_v27 = vand.u32 4294901760, %v111_v23  ;;  %1055 = vperm.xlu0 %8067, %v18_v37  }
   0xb   :  { %v124_v29 = vsub.f32 %v122_v19, %v123_v24  ;;  %v589_v30 = vsub.f32 %v587_v20, %v588_v25  ;;  %v131_v34 = vand.u32 4294901760, %v130_v26  ;;  %v596_v36 = vand.u32 4294901760, %v595_v28 }
   0xc   :  { %v113_v31 = vsub.f32 %v111_v23, %v112_v27 }
   0xd   :  { %v125_v32 = vand.u32 4294901760, %v124_v29  ;;  %v590_v33 = vand.u32 4294901760, %v589_v30 }
   0xe   :  { %v114_v35 = vand.u32 4294901760, %v113_v31  ;;  %8071 = vset.pattern.permute.xlu0 %v8348_v13 }
   0xf   :  { %126 = vmatprep.subr.mxu0 %v125_v32  ;;  %591 = vmatprep.subr.mxu1 %v590_v33 }
  0x10   :  { %115 = vmatmul.mubr.f32.vlgmr.msra.gmra.mrb[0].mxu0 %v114_v35  ;;  %580 = vmatmul.mubr.f32.vlgmr.msra.gmra.mrb[0].mxu1 %v114_v35 }
  0x11   :  { %132 = vmatpush1.msra.mxu0 %v131_v34  ;;  %195 = vmatprep.mubr.f32.mxu0 %v8347_v5 }
  0x12   :  { %597 = vmatpush1.msra.mxu1 %v596_v36  ;;  %660 = vmatprep.mubr.f32.mxu1 %v8347_v5 }
  0x13   :  { %205 = vmatprep.subr.mxu0 %v122_v19  ;;  %670 = vmatprep.subr.mxu1 %v587_v20 }
  0x18   :  { %197 = vmatmul.mubr.f32.vlgmr.msra.gmra.mrb[0].mxu0 %v8397_v18  ;;  %662 = vmatmul.mubr.f32.vlgmr.msra.gmra.mrb[0].mxu1 %v8397_v18 }
  0x19   :  { %208 = vmatpush1.msra.mxu0 %v128_v16  ;;  %271 = vmatprep.mubr.f32.mxu0 %v8347_v5 }
  0x1a   :  { %673 = vmatpush1.msra.mxu1 %v593_v17  ;;  %736 = vmatprep.mubr.f32.mxu1 %v8347_v5 }
  0x1b   :  { %281 = vmatprep.subr.mxu0 %v43_v14  ;;  %746 = vmatprep.subr.mxu1 %v508_v15 }
  0x20   :  { %274 = vmatmul.mubr.f32.vlgmr.msra.gmra.mrb[0].mxu0 %v111_v23  ;;  %739 = vmatmul.mubr.f32.vlgmr.msra.gmra.mrb[0].mxu1 %v111_v23 }
  0x21   :  { %283 = vmatpush1.msra.mxu0 %v8387_v8  ;;  %346 = vmatprep.mubr.f32.mxu0 %v8347_v5 }
  0x22   :  { %748 = vmatpush1.msra.mxu1 %v8389_v9  ;;  %811 = vmatprep.mubr.f32.mxu1 %v8347_v5 }
  0x23   :  { %359 = vmatprep.subr.mxu0 %v123_v24  ;;  %824 = vmatprep.subr.mxu1 %v588_v25 }
  0x28   :  { %350 = vmatmul.mubr.f32.vlgmr.msra.gmra.mrb[0].mxu0 %v112_v27  ;;  %815 = vmatmul.mubr.f32.vlgmr.msra.gmra.mrb[0].mxu1 %v112_v27 }
  0x29   :  { %363 = vmatpush1.msra.mxu0 %v129_v21  ;;  %426 = vmatprep.mubr.f32.mxu0 %v8347_v5 }
  0x2a   :  { %828 = vmatpush1.msra.mxu1 %v594_v22  ;;  %891 = vmatprep.mubr.f32.mxu1 %v8347_v5 }
  0x2b   :  { %435 = vmatprep.subr.mxu0 %v43_v14  ;;  %900 = vmatprep.subr.mxu1 %v508_v15 }
  0x30   :  { %428 = vmatmul.mubr.f32.vlgmr.msra.gmra.mrb[0].mxu0 %v8397_v18  ;;  %893 = vmatmul.mubr.f32.vlgmr.msra.gmra.mrb[0].mxu1 %v8397_v18 }
  0x31   :  { %437 = vmatpush1.msra.mxu0 %v8387_v8  ;;  %500 = vmatprep.mubr.f32.mxu0 %v8347_v5 }
  0x32   :  { %902 = vmatpush1.msra.mxu1 %v8389_v9  ;;  %965 = vmatprep.mubr.f32.mxu1 %v8347_v5  ;;  %v1064_v9 = vsel %vm1063_vm2, %v18_v37, 0 }
  0x33   :  { %v8446_v17 = vand.u32 4294901760, %v1064_v9 }
  0x38   :  { %502 = vmatmul.mubr.f32.vlgmr.msra.gmra.mrb[0].mxu0 %v8397_v18  ;;  %967 = vmatmul.mubr.f32.vlgmr.msra.gmra.mrb[0].mxu1 %v8397_v18  ;;  %v1066_v18 = vsel %vm1063_vm2, %v19_v38, 0 }
  0x39   :  { %1134 = vmatprep.mubr.f32.mxu0 %v8347_v5  ;;  %1648 = vmatprep.mubr.f32.mxu1 %v8347_v5 }
  0x84   :  { %v25_v40 = vpop.permute.xlu0 %24 }
 0x10b   :  { %v503_v41 = vpop.f32.mrb[0].mxu0  ;;  %v968_v42 = vpop.f32.mrb[0].mxu1 }
 0x10c   :  { %v8433_v43 = vadd.f32 %v503_v41, %v25_v40  ;;  %v8435_v44 = vadd.f32 %v968_v42, %v25_v40  ;;  %v505_v45 = vpop.f32.mrb[1].mxu0  ;;  %v970_v46 = vpop.f32.mrb[1].mxu1 }
 0x10d   :  { %v8437_v47 = vadd.f32 %v505_v45, %v25_v40  ;;  %v8439_v48 = vadd.f32 %v970_v46, %v25_v40 }
 0x10e   :  { %v985_v49 = vand.u32 2147483647, %v8433_v43  ;;  %v987_v50 = vand.u32 2147483647, %v8435_v44  ;;  %v973_v20 = vmax.f32 %v8433_v43, 0.0  ;;  %vm977_vm3 = vcmp.ne.f32.partialorder %v8433_v43, %v8433_v43 }
 0x10f   :  { %v986_v52 = vand.u32 2147483647, %v8437_v47  ;;  %v988_v54 = vand.u32 2147483647, %v8439_v48  ;;  %v975_v21 = vmax.f32 %v8435_v44, 0.0  ;;  %vm979_vm4 = vcmp.ne.f32.partialorder %v8435_v44, %v8435_v44 }
 0x110   :  { %v989_v51 = vsub.f32 0.0, %v985_v49  ;;  %v991_v53 = vsub.f32 0.0, %v987_v50  ;;  %v974_v37 = vmax.f32 %v8437_v47, 0.0  ;;  %v976_v49 = vmax.f32 %v8439_v48, 0.0 }
 0x111   :  { %v990_v56 = vsub.f32 0.0, %v986_v52  ;;  %v992_v58 = vsub.f32 0.0, %v988_v54  ;;  %vm978_vm9 = vcmp.ne.f32.partialorder %v8437_v47, %v8437_v47  ;;  %vm980_vm10 = vcmp.ne.f32.partialorder %v8439_v48, %v8439_v48 }
 0x112   :  { %v993_v55 = vmul.f32 1.442695, %v989_v51  ;;  %v997_v57 = vmul.f32 1.442695, %v991_v53  ;;  %v8471_v54 = vsub.f32 %v1064_v9, %v8446_v17 }
 0x113   :  { %v995_v59 = vmul.f32 1.442695, %v990_v56  ;;  %v999_v60 = vmul.f32 1.442695, %v992_v58  ;;  %v8474_v56 = vand.u32 4294901760, %v1066_v18 }
 0x114   :  { %8075 = vpow2.f32 %v993_v55 }
 0x115   :  { %8077 = vpow2.f32 %v997_v57  ;;  %v8477_v57 = vand.u32 4294901760, %v8471_v54  ;;  %v8480_v58 = vsub.f32 %v1066_v18, %v8474_v56 }
 0x116   :  { %8079 = vpow2.f32 %v995_v59 }
 0x117   :  { %8081 = vpow2.f32 %v999_v60  ;;  %v1138_v60 = vsub.f32 %v8471_v54, %v8477_v57 }
 0x11e   :  { %v8076_v61 = vpop.eup %8075 }
 0x11f   :  { %v8078_v62 = vpop.eup %8077  ;;  %v1001_v63 = vadd.f32 1.0, %v8076_v61  ;;  %v1004_v6 = vmul.f32 -0.5, %v8076_v61  ;;  %v1007_v12 = vand.u32 2147483647, %v8076_v61 }
 0x120   :  { %v8080_v0 = vpop.eup %8079  ;;  %v1019_v1 = vadd.f32 1.0, %v8078_v62  ;;  %v1022_v7 = vmul.f32 -0.5, %v8078_v62  ;;  %v1025_v15 = vand.u32 2147483647, %v8078_v62 }
 0x121   :  { %v8082_v2 = vpop.eup %8081  ;;  %8083 = vlog2.f32 %v1001_v63  ;;  %v1010_v3 = vadd.f32 1.0, %v8080_v0  ;;  %v1013_v8 = vmul.f32 -0.5, %v8080_v0  ;;  %v1005_v10 = vadd.f32 1.0, %v1004_v6 }
 0x122   :  { %8085 = vlog2.f32 %v1019_v1  ;;  %v1028_v4 = vadd.f32 1.0, %v8082_v2  ;;  %v1031_v11 = vmul.f32 -0.5, %v8082_v2  ;;  %v1023_v14 = vadd.f32 1.0, %v1022_v7 }
 0x123   :  { %8087 = vlog2.f32 %v1010_v3  ;;  %v1014_v16 = vadd.f32 1.0, %v1013_v8  ;;  %v1016_v22 = vand.u32 2147483647, %v8080_v0  ;;  %v1006_v25 = vmul.f32 %v8076_v61, %v1005_v10 }
 0x124   :  { %8089 = vlog2.f32 %v1028_v4  ;;  %v1032_v26 = vadd.f32 1.0, %v1031_v11  ;;  %vm1008_vm5 = vcmp.lt.f32.partialorder %v1007_v12, 0.0004427343  ;;  %v1024_v29 = vmul.f32 %v8078_v62, %v1023_v14 }
 0x125   :  { %v1034_v30 = vand.u32 2147483647, %v8082_v2  ;;  %vm1026_vm6 = vcmp.lt.f32.partialorder %v1025_v15, 0.0004427343  ;;  %v1015_v33 = vmul.f32 %v8080_v0, %v1014_v16  ;;  %vm1017_vm7 = vcmp.lt.f32.partialorder %v1016_v22, 0.0004427343 }
 0x126   :  { %v1033_v42 = vmul.f32 %v8082_v2, %v1032_v26  ;;  %v8486_v63 = vand.u32 4294901760, %v8480_v58  ;;  %v1139_v7 = vand.u32 4294901760, %v1138_v60 }
 0x127   :  { %vm1035_vm8 = vcmp.lt.f32.partialorder %v1034_v30, 0.0004427343 }
 0x128   :  { %v1149_v10 = vsub.f32 %v8480_v58, %v8486_v63 }
 0x12b   :  { %v8084_v19 = vpop.eup %8083 }
 0x12c   :  { %v8086_v23 = vpop.eup %8085  ;;  %v1003_v24 = vmul.f32 0.6931472, %v8084_v19 }
 0x12d   :  { %v8088_v27 = vpop.eup %8087  ;;  %v1021_v28 = vmul.f32 0.6931472, %v8086_v23 }
 0x12e   :  { %v1009_v31 = vsel %vm1008_vm5, %v1006_v25, %v1003_v24  ;;  %v1012_v32 = vmul.f32 0.6931472, %v8088_v27  ;;  %v8090_v34 = vpop.eup %8089  ;;  %v20_v27 = vld [vmem:[%s10122_s2 + $0x18] sm:$0xff] }
 0x12f   :  { %v1037_v35 = vadd.f32 %v1009_v31, %v973_v20  ;;  %v1027_v36 = vsel %vm1026_vm6, %v1024_v29, %v1021_v28  ;;  %v1030_v41 = vmul.f32 0.6931472, %v8090_v34  ;;  %v8350_v28 = vmov 16  }
 0x130   :  { %v1039_v38 = vadd.f32 %v1027_v36, %v975_v21  ;;  %v1018_v40 = vsel %vm1017_vm7, %v1015_v33, %v1012_v32  ;;  %8069 = vset.pattern.permute.xlu1 %v8350_v28 }
 0x131   :  { %v1041_v45 = vsel %vm977_vm3, %v8433_v43, %v1037_v35  ;;  %v1038_v46 = vadd.f32 %v1018_v40, %v974_v37  ;;  %v1036_v51 = vsel %vm1035_vm8, %v1033_v42, %v1030_v41  ;;  %2258 = vperm.xlu1 %8069, %v20_v27  }
 0x132   :  { %8091 = vtanh.f32 %v1041_v45  ;;  %v1043_v50 = vsel %vm979_vm4, %v8435_v44, %v1039_v38  ;;  %v1040_v53 = vadd.f32 %v1036_v51, %v976_v49  ;;  %v1061_v38 = vpop.permute.xlu1 %1060 }
 0x133   :  { %8093 = vtanh.f32 %v1043_v50  ;;  %v1042_v52 = vsel %vm978_vm9, %v8437_v47, %v1038_v46 }
 0x134   :  { %8095 = vtanh.f32 %v1042_v52  ;;  %v1044_v55 = vsel %vm980_vm10, %v8439_v48, %v1040_v53 }
 0x135   :  { %8097 = vtanh.f32 %v1044_v55  ;;  %8070 = vset.pattern.permute.xlu1 %v8349_v39 }
 0x13c   :  { %v8092_v59 = vpop.eup %8091 }
 0x13d   :  { %v8094_v61 = vpop.eup %8093  ;;  %v1049_v62 = vmul.f32 %v8092_v59, %v8433_v43 }
 0x13e   :  { %v8096_v0 = vpop.eup %8095  ;;  %v1051_v1 = vmul.f32 %v8094_v61, %v8435_v44 }
 0x13f   :  { %v1050_v2 = vmul.f32 %v8096_v0, %v8437_v47  ;;  %v8490_v3 = vand.u32 4294901760, %v1049_v62  ;;  %v8098_v4 = vpop.eup %8097 }
 0x140   :  { %v8492_v6 = vand.u32 4294901760, %v1051_v1  ;;  %v1052_v9 = vmul.f32 %v8098_v4, %v8439_v48  ;;  %v1150_v48 = vand.u32 4294901760, %v1149_v10 }
 0x141   :  { %v8494_v8 = vand.u32 4294901760, %v1050_v2  ;;  %v8498_v43 = vsub.f32 %v1049_v62, %v8490_v3 }
 0x142   :  { %v1678_v44 = vsub.f32 %v1051_v1, %v8492_v6  ;;  %v1582_v47 = vand.u32 4294901760, %v1052_v9 }
 0x143   :  { %1069 = vmatprep.subr.mxu0 %v8494_v8  ;;  %v1158_v11 = vsub.f32 %v1050_v2, %v8494_v8  ;;  %v1165_v12 = vand.u32 4294901760, %v8498_v43 }
 0x144   :  { %1071 = vmatpush1.msra.mxu0 %v8490_v3  ;;  %v1679_v14 = vand.u32 4294901760, %v1678_v44  ;;  %1583 = vmatprep.subr.mxu1 %v1582_v47  ;;  %v1672_v16 = vsub.f32 %v1052_v9, %v1582_v47 }
 0x145   :  { %1140 = vmatmul.mubr.f32.vlgmr.msra.gmra.mrb[2].mxu0 %v1139_v7  ;;  %v1159_v15 = vand.u32 4294901760, %v1158_v11  ;;  %1585 = vmatpush1.msra.mxu1 %v8492_v6  ;;  %v1166_v18 = vsub.f32 %v8498_v43, %v1165_v12 }
 0x146   :  { %1145 = vmatprep.mubr.f32.mxu0 %v8347_v5  ;;  %1654 = vmatmul.mubr.f32.vlgmr.msra.gmra.mrb[2].mxu1 %v1139_v7  ;;  %v1673_v20 = vand.u32 4294901760, %v1672_v16  ;;  %v1680_v21 = vsub.f32 %v1678_v44, %v1679_v14 }
 0x147   :  { %v1160_v19 = vsub.f32 %v1158_v11, %v1159_v15  ;;  %1659 = vmatprep.mubr.f32.mxu1 %v8347_v5  ;;  %v1167_v24 = vand.u32 4294901760, %v1166_v18 }
 0x148   :  { %v1674_v23 = vsub.f32 %v1672_v16, %v1673_v20  ;;  %v1681_v26 = vand.u32 4294901760, %v1680_v21 }
 0x149   :  { %1151 = vmatmul.mubr.f32.gmra.mrb[4].mxu0 %v1150_v48  ;;  %v1161_v22 = vand.u32 4294901760, %v1160_v19 }
 0x14a   :  { %1231 = vmatprep.mubr.f32.mxu0 %v8347_v5  ;;  %1665 = vmatmul.mubr.f32.gmra.mrb[4].mxu1 %v1150_v48  ;;  %v1675_v25 = vand.u32 4294901760, %v1674_v23 }
 0x14b   :  { %1162 = vmatprep.subr.mxu0 %v1161_v22  ;;  %1745 = vmatprep.mubr.f32.mxu1 %v8347_v5 }
 0x14c   :  { %1168 = vmatpush1.msra.mxu0 %v1167_v24  ;;  %1676 = vmatprep.subr.mxu1 %v1675_v25 }
 0x14d   :  { %1233 = vmatmul.mubr.f32.vlgmr.msra.gmra.mrb[2].mxu0 %v8446_v17  ;;  %1682 = vmatpush1.msra.mxu1 %v1681_v26 }
 0x14e   :  { %1248 = vmatprep.subr.mxu0 %v1158_v11  ;;  %1747 = vmatmul.mubr.f32.vlgmr.msra.gmra.mrb[2].mxu1 %v8446_v17  ;;  %v8588_v11 = vsel %vm2261_vm11, %v20_v27, 0 }
 0x14f   :  { %1762 = vmatprep.subr.mxu1 %v1672_v16  ;;  %1251 = vmatpush1.msra.mxu0 %v8498_v43 }
 0x150   :  { %1765 = vmatpush1.msra.mxu1 %v1678_v44  ;;  %1332 = vmatprep.subr.mxu0 %v8494_v8 }
 0x151   :  { %1846 = vmatprep.subr.mxu1 %v1582_v47  ;;  %1238 = vmatprep.mubr.f32.mxu0 %v8347_v5 }
 0x152   :  { %1752 = vmatprep.mubr.f32.mxu1 %v8347_v5  ;;  %1240 = vmatmul.mubr.f32.gmra.mrb[4].mxu0 %v8474_v56 }
 0x153   :  { %1754 = vmatmul.mubr.f32.gmra.mrb[4].mxu1 %v8474_v56  ;;  %1314 = vmatprep.mubr.f32.mxu0 %v8347_v5 }
 0x154   :  { %1828 = vmatprep.mubr.f32.mxu1 %v8347_v5 }
 0x156   :  { %1317 = vmatmul.mubr.f32.vlgmr.msra.gmra.mrb[2].mxu0 %v8471_v54 }
 0x157   :  { %1831 = vmatmul.mubr.f32.vlgmr.msra.gmra.mrb[2].mxu1 %v8471_v54  ;;  %1334 = vmatpush1.msra.mxu0 %v8490_v3 }
 0x158   :  { %1848 = vmatpush1.msra.mxu1 %v8492_v6  ;;  %1419 = vmatprep.subr.mxu0 %v1159_v15 }
 0x159   :  { %1933 = vmatprep.subr.mxu1 %v1673_v20  ;;  %1322 = vmatprep.mubr.f32.mxu0 %v8347_v5  ;;  %v8593_v20 = vand.u32 4294901760, %v8588_v11 }
 0x15a   :  { %1836 = vmatprep.mubr.f32.mxu1 %v8347_v5  ;;  %1325 = vmatmul.mubr.f32.gmra.mrb[4].mxu0 %v8480_v58 }
 0x15b   :  { %1839 = vmatmul.mubr.f32.gmra.mrb[4].mxu1 %v8480_v58  ;;  %1397 = vmatprep.mubr.f32.mxu0 %v8347_v5 }
 0x15c   :  { %1911 = vmatprep.mubr.f32.mxu1 %v8347_v5 }
 0x15e   :  { %1401 = vmatmul.mubr.f32.vlgmr.msra.gmra.mrb[2].mxu0 %v8477_v57 }
 0x15f   :  { %1915 = vmatmul.mubr.f32.vlgmr.msra.gmra.mrb[2].mxu1 %v8477_v57  ;;  %1423 = vmatpush1.msra.mxu0 %v1165_v12 }
 0x160   :  { %1937 = vmatpush1.msra.mxu1 %v1679_v14  ;;  %1502 = vmatprep.subr.mxu0 %v8494_v8 }
 0x161   :  { %2016 = vmatprep.subr.mxu1 %v1582_v47  ;;  %1406 = vmatprep.mubr.f32.mxu0 %v8347_v5 }
 0x162   :  { %1920 = vmatprep.mubr.f32.mxu1 %v8347_v5  ;;  %1410 = vmatmul.mubr.f32.gmra.mrb[4].mxu0 %v8486_v63 }
 0x163   :  { %1924 = vmatmul.mubr.f32.gmra.mrb[4].mxu1 %v8486_v63  ;;  %1486 = vmatprep.mubr.f32.mxu0 %v8347_v5 }
 0x164   :  { %2000 = vmatprep.mubr.f32.mxu1 %v8347_v5 }
 0x166   :  { %1488 = vmatmul.mubr.f32.vlgmr.msra.gmra.mrb[2].mxu0 %v8446_v17 }
 0x167   :  { %2002 = vmatmul.mubr.f32.vlgmr.msra.gmra.mrb[2].mxu1 %v8446_v17  ;;  %1504 = vmatpush1.msra.mxu0 %v8490_v3 }
 0x168   :  { %2018 = vmatpush1.msra.mxu1 %v8492_v6  ;;  %1493 = vmatprep.mubr.f32.mxu0 %v8347_v5 }
 0x169   :  { %2007 = vmatprep.mubr.f32.mxu1 %v8347_v5 }
 0x16a   :  { %1495 = vmatmul.mubr.f32.gmra.mrb[4].mxu0 %v8474_v56 }
 0x16b   :  { %2009 = vmatmul.mubr.f32.gmra.mrb[4].mxu1 %v8474_v56  ;;  %1567 = vmatprep.mubr.f32.mxu0 %v8347_v5 }
 0x16c   :  { %2081 = vmatprep.mubr.f32.mxu1 %v8347_v5 }
 0x16e   :  { %1569 = vmatmul.mubr.f32.vlgmr.msra.gmra.mrb[2].mxu0 %v8446_v17 }
 0x16f   :  { %2083 = vmatmul.mubr.f32.vlgmr.msra.gmra.mrb[2].mxu1 %v8446_v17  ;;  %1574 = vmatprep.mubr.f32.mxu0 %v8347_v5  ;;  %v1056_v17 = vpop.permute.xlu0 %1055 }
 0x170   :  { %2088 = vmatprep.mubr.f32.mxu1 %v8347_v5 }
 0x172   :  { %1576 = vmatmul.mubr.f32.gmra.mrb[4].mxu0 %v8474_v56 }
 0x173   :  { %2090 = vmatmul.mubr.f32.gmra.mrb[4].mxu1 %v8474_v56  ;;  %2332 = vmatprep.mubr.f32.mxu0 %v8347_v5 }
 0x174   :  { %2823 = vmatprep.mubr.f32.mxu1 %v8347_v5 }
 0x241   :  { %v1570_v29 = vpop.f32.mrb[2].mxu0 }
 0x242   :  { %v2084_v30 = vpop.f32.mrb[2].mxu1  ;;  %v8564_v31 = vadd.f32 %v1570_v29, %v1056_v17  ;;  %v1572_v33 = vpop.f32.mrb[3].mxu0 }
 0x243   :  { %v8566_v32 = vadd.f32 %v2084_v30, %v1056_v17  ;;  %v2086_v34 = vpop.f32.mrb[3].mxu1  ;;  %v8568_v35 = vadd.f32 %v1572_v33, %v1056_v17 }
 0x244   :  { %v8570_v36 = vadd.f32 %v2086_v34, %v1056_v17  ;;  %v2120_v37 = vand.u32 2147483647, %v8564_v31  ;;  %v2096_v18 = vmax.f32 %v8564_v31, 0.0  ;;  %vm2104_vm12 = vcmp.ne.f32.partialorder %v8564_v31, %v8564_v31 }
 0x245   :  { %v2122_v40 = vand.u32 2147483647, %v8566_v32  ;;  %v1577_v41 = vpop.f32.mrb[4].mxu0  ;;  %v2121_v45 = vand.u32 2147483647, %v8568_v35  ;;  %v2098_v19 = vmax.f32 %v8566_v32, 0.0  ;;  %vm2106_vm14 = vcmp.ne.f32.partialorder %v8566_v32, %v8566_v32 }
 0x246   :  { %v2091_v39 = vpop.f32.mrb[4].mxu1  ;;  %v2128_v42 = vsub.f32 0.0, %v2120_v37  ;;  %v1579_v46 = vpop.f32.mrb[5].mxu0  ;;  %v2123_v51 = vand.u32 2147483647, %v8570_v36  ;;  %v8576_v52 = vadd.f32 %v1577_v41, %v1061_v38  ;;  %v2097_v22 = vmax.f32 %v8568_v35, 0.0 }
 0x247   :  { %v2093_v49 = vpop.f32.mrb[5].mxu1  ;;  %v2130_v50 = vsub.f32 0.0, %v2122_v40  ;;  %v8578_v53 = vadd.f32 %v2091_v39, %v1061_v38  ;;  %v2129_v55 = vsub.f32 0.0, %v2121_v45  ;;  %v8580_v58 = vadd.f32 %v1579_v46, %v1061_v38 }
 0x248   :  { %v2136_v54 = vmul.f32 1.442695, %v2128_v42  ;;  %v2131_v57 = vsub.f32 0.0, %v2123_v51  ;;  %v2124_v60 = vand.u32 2147483647, %v8576_v52  ;;  %v8583_v61 = vadd.f32 %v2093_v49, %v1061_v38 }
 0x249   :  { %v2140_v56 = vmul.f32 1.442695, %v2130_v50  ;;  %v2138_v59 = vmul.f32 1.442695, %v2129_v55  ;;  %v2126_v63 = vand.u32 2147483647, %v8578_v53  ;;  %vm2105_vm3 = vcmp.ne.f32.partialorder %v8568_v35, %v8568_v35 }
 0x24a   :  { %8099 = vpow2.f32 %v2136_v54  ;;  %v2142_v62 = vmul.f32 1.442695, %v2131_v57  ;;  %v2132_v0 = vsub.f32 0.0, %v2124_v60  ;;  %v2125_v2 = vand.u32 2147483647, %v8580_v58 }
 0x24b   :  { %8101 = vpow2.f32 %v2140_v56  ;;  %v2134_v1 = vsub.f32 0.0, %v2126_v63  ;;  %v2127_v4 = vand.u32 2147483647, %v8583_v61  ;;  %v2099_v28 = vmax.f32 %v8570_v36, 0.0 }
 0x24c   :  { %8103 = vpow2.f32 %v2138_v59  ;;  %v2144_v3 = vmul.f32 1.442695, %v2132_v0  ;;  %v2133_v7 = vsub.f32 0.0, %v2125_v2  ;;  %v2100_v34 = vmax.f32 %v8576_v52, 0.0 }
 0x24d   :  { %8105 = vpow2.f32 %v2142_v62  ;;  %v2148_v6 = vmul.f32 1.442695, %v2134_v1  ;;  %v2135_v8 = vsub.f32 0.0, %v2127_v4  ;;  %v2102_v38 = vmax.f32 %v8578_v53, 0.0 }
 0x24e   :  { %8107 = vpow2.f32 %v2144_v3  ;;  %v2146_v9 = vmul.f32 1.442695, %v2133_v7  ;;  %v2101_v40 = vmax.f32 %v8580_v58, 0.0  ;;  %vm2107_vm5 = vcmp.ne.f32.partialorder %v8570_v36, %v8570_v36 }
 0x24f   :  { %8109 = vpow2.f32 %v2148_v6  ;;  %v2150_v43 = vmul.f32 1.442695, %v2135_v8  ;;  %vm2108_vm7 = vcmp.ne.f32.partialorder %v8576_v52, %v8576_v52  ;;  %vm2110_vm10 = vcmp.ne.f32.partialorder %v8578_v53, %v8578_v53 }
 0x250   :  { %8111 = vpow2.f32 %v2146_v9 }
 0x251   :  { %8113 = vpow2.f32 %v2150_v43 }
 0x254   :  { %v8100_v10 = vpop.eup %8099 }
 0x255   :  { %v8102_v44 = vpop.eup %8101  ;;  %v2152_v47 = vadd.f32 1.0, %v8100_v10  ;;  %v2155_v15 = vmul.f32 -0.5, %v8100_v10  ;;  %v2158_v25 = vand.u32 2147483647, %v8100_v10 }
 0x256   :  { %v8104_v12 = vpop.eup %8103  ;;  %v2170_v14 = vadd.f32 1.0, %v8102_v44  ;;  %v2173_v21 = vmul.f32 -0.5, %v8102_v44  ;;  %v2176_v26 = vand.u32 2147483647, %v8102_v44 }
 0x257   :  { %v8106_v48 = vpop.eup %8105  ;;  %8115 = vlog2.f32 %v2152_v47  ;;  %v2161_v16 = vadd.f32 1.0, %v8104_v12  ;;  %v2164_v27 = vmul.f32 -0.5, %v8104_v12  ;;  %v2156_v29 = vadd.f32 1.0, %v2155_v15 }
 0x258   :  { %8117 = vlog2.f32 %v2170_v14  ;;  %v2179_v23 = vadd.f32 1.0, %v8106_v48  ;;  %v8108_v24 = vpop.eup %8107  ;;  %v2182_v30 = vmul.f32 -0.5, %v8106_v48  ;;  %v2174_v39 = vadd.f32 1.0, %v2173_v21 }
 0x259   :  { %8119 = vlog2.f32 %v2161_v16  ;;  %v8597_v17 = vpop.eup %8109  ;;  %v2188_v33 = vadd.f32 1.0, %v8108_v24  ;;  %v2191_v37 = vmul.f32 -0.5, %v8108_v24  ;;  %v2167_v42 = vand.u32 2147483647, %v8104_v12 }
 0x25a   :  { %8121 = vlog2.f32 %v2179_v23  ;;  %v8602_v41 = vpop.eup %8111  ;;  %v2206_v45 = vadd.f32 1.0, %v8597_v17  ;;  %vm8609_vm13 = vcmp.lt.f32.partialorder %v2158_v25, 0.0004427343  ;;  %v2165_v50 = vadd.f32 1.0, %v2164_v27 }
 0x25b   :  { %8123 = vlog2.f32 %v2188_v33  ;;  %v8605_v46 = vpop.eup %8113  ;;  %v2185_v51 = vand.u32 2147483647, %v8106_v48  ;;  %v2197_v54 = vadd.f32 1.0, %v8602_v41  ;;  %v2157_v55 = vmul.f32 %v8100_v10, %v2156_v29 }
 0x25c   :  { %vm8616_vm15 = vcmp.lt.f32.partialorder %v2176_v26, 0.0004427343  ;;  %v2183_v57 = vadd.f32 1.0, %v2182_v30  ;;  %8125 = vlog2.f32 %v2206_v45  ;;  %v2192_v59 = vadd.f32 1.0, %v2191_v37 }
 0x25d   :  { %v2194_v60 = vand.u32 2147483647, %v8108_v24  ;;  %8127 = vlog2.f32 %v2197_v54  ;;  %v2215_v62 = vadd.f32 1.0, %v8605_v46  ;;  %v2175_v0 = vmul.f32 %v8102_v44, %v2174_v39 }
 0x25e   :  { %vm8623_vm4 = vcmp.lt.f32.partialorder %v2167_v42, 0.0004427343  ;;  %v2209_v2 = vmul.f32 -0.5, %v8597_v17  ;;  %v2212_v3 = vand.u32 2147483647, %v8597_v17  ;;  %v2166_v7 = vmul.f32 %v8104_v12, %v2165_v50 }
 0x25f   :  { %vm8631_vm6 = vcmp.lt.f32.partialorder %v2185_v51, 0.0004427343  ;;  %8129 = vlog2.f32 %v2215_v62  ;;  %v2184_v10 = vmul.f32 %v8106_v48, %v2183_v57  ;;  %v2200_v44 = vmul.f32 -0.5, %v8602_v41 }
 0x260   :  { %v2218_v47 = vmul.f32 -0.5, %v8605_v46  ;;  %v2193_v12 = vmul.f32 %v8108_v24, %v2192_v59  ;;  %vm8641_vm8 = vcmp.lt.f32.partialorder %v2194_v60, 0.0004427343  ;;  %v2210_v25 = vadd.f32 1.0, %v2209_v2 }
 0x261   :  { %v8116_v63 = vpop.eup %8115  ;;  %vm8649_vm9 = vcmp.lt.f32.partialorder %v2212_v3, 0.0004427343  ;;  %v2201_v39 = vadd.f32 1.0, %v2200_v44  ;;  %v2221_v59 = vand.u32 2147483647, %v8605_v46 }
 0x262   :  { %v8118_v4 = vpop.eup %8117  ;;  %v2154_v6 = vmul.f32 0.6931472, %v8116_v63  ;;  %v2211_v54 = vmul.f32 %v8597_v17, %v2210_v25 }
 0x263   :  { %v8120_v9 = vpop.eup %8119  ;;  %v2172_v43 = vmul.f32 0.6931472, %v8118_v4 }
 0x264   :  { %v2160_v14 = vsel %vm8609_vm13, %v2157_v55, %v2154_v6  ;;  %v2163_v15 = vmul.f32 0.6931472, %v8120_v9  ;;  %v8122_v21 = vpop.eup %8121  ;;  %v2103_v6 = vmax.f32 %v8583_v61, 0.0  ;;  %vm2109_vm13 = vcmp.ne.f32.partialorder %v8580_v58, %v8580_v58 }
 0x265   :  { %v2224_v48 = vadd.f32 %v2160_v14, %v2096_v18  ;;  %v2178_v23 = vsel %vm8616_vm15, %v2175_v0, %v2172_v43  ;;  %v2181_v29 = vmul.f32 0.6931472, %v8122_v21  ;;  %v2203_v18 = vand.u32 2147483647, %v8602_v41  ;;  %v8124_v30 = vpop.eup %8123 }
 0x266   :  { %v2226_v27 = vadd.f32 %v2178_v23, %v2098_v19  ;;  %v2169_v24 = vsel %vm8623_vm4, %v2166_v7, %v2163_v15  ;;  %v2219_v19 = vadd.f32 1.0, %v2218_v47  ;;  %v2190_v49 = vmul.f32 0.6931472, %v8124_v30  ;;  %v8126_v50 = vpop.eup %8125 }
 0x267   :  { %v2232_v33 = vsel %vm2104_vm12, %v8564_v31, %v2224_v48  ;;  %v2225_v37 = vadd.f32 %v2169_v24, %v2097_v22  ;;  %v2187_v45 = vsel %vm8631_vm6, %v2184_v10, %v2181_v29  ;;  %v8128_v55 = vpop.eup %8127  ;;  %v2208_v57 = vmul.f32 0.6931472, %v8126_v50 }
 0x268   :  { %8131 = vtanh.f32 %v2232_v33  ;;  %v2234_v42 = vsel %vm2106_vm14, %v8566_v32, %v2226_v27  ;;  %v2227_v22 = vadd.f32 %v2187_v45, %v2099_v28  ;;  %v2196_v56 = vsel %vm8641_vm8, %v2193_v12, %v2190_v49 }
 0x269   :  { %8133 = vtanh.f32 %v2234_v42  ;;  %v2233_v51 = vsel %vm2105_vm3, %v8568_v35, %v2225_v37  ;;  %v2228_v62 = vadd.f32 %v2196_v56, %v2100_v34  ;;  %v2199_v63 = vmul.f32 0.6931472, %v8128_v55  ;;  %v8130_v17 = vpop.eup %8129 }
 0x26a   :  { %8135 = vtanh.f32 %v2233_v51  ;;  %v2235_v60 = vsel %vm2107_vm5, %v8570_v36, %v2227_v22  ;;  %v2202_v28 = vmul.f32 %v8602_v41, %v2201_v39  ;;  %v2214_v0 = vsel %vm8649_vm9, %v2211_v54, %v2208_v57 }
 0x26b   :  { %8137 = vtanh.f32 %v2235_v60  ;;  %vm2204_vm11 = vcmp.lt.f32.partialorder %v2203_v18, 0.0004427343  ;;  %v2220_v1 = vmul.f32 %v8605_v46, %v2219_v19  ;;  %v2236_v2 = vsel %vm2108_vm7, %v8576_v52, %v2228_v62 }
 0x26c   :  { %v2230_v3 = vadd.f32 %v2214_v0, %v2102_v38  ;;  %v2205_v34 = vsel %vm2204_vm11, %v2202_v28, %v2199_v63  ;;  %v2217_v4 = vmul.f32 0.6931472, %v8130_v17  ;;  %8139 = vtanh.f32 %v2236_v2 }
 0x26d   :  { %v2229_v41 = vadd.f32 %v2205_v34, %v2101_v40  ;;  %vm2222_vm12 = vcmp.lt.f32.partialorder %v2221_v59, 0.0004427343  ;;  %v8710_v9 = vsub.f32 %v8588_v11, %v8593_v20  ;;  %vm2111_vm14 = vcmp.ne.f32.partialorder %v8583_v61, %v8583_v61 }
 0x26e   :  { %v2238_v46 = vsel %vm2110_vm10, %v8578_v53, %v2230_v3  ;;  %v2223_v7 = vsel %vm2222_vm12, %v2220_v1, %v2217_v4 }
 0x26f   :  { %8141 = vtanh.f32 %v2238_v46  ;;  %v2237_v38 = vsel %vm2109_vm13, %v8580_v58, %v2229_v41  ;;  %v2231_v8 = vadd.f32 %v2223_v7, %v2103_v6  ;;  %v8718_v15 = vand.u32 4294901760, %v8710_v9 }
 0x270   :  { %8143 = vtanh.f32 %v2237_v38 }
 0x271   :  { %v2239_v43 = vsel %vm2111_vm14, %v8583_v61, %v2231_v8 }
 0x272   :  { %v8132_v40 = vpop.eup %8131  ;;  %8145 = vtanh.f32 %v2239_v43 }
 0x273   :  { %v8134_v10 = vpop.eup %8133  ;;  %v2248_v44 = vmul.f32 %v8132_v40, %v8564_v31  ;;  %v2336_v31 = vsub.f32 %v8710_v9, %v8718_v15 }
 0x274   :  { %v8136_v47 = vpop.eup %8135  ;;  %v2250_v14 = vmul.f32 %v8134_v10, %v8566_v32 }
 0x275   :  { %v2249_v11 = vmul.f32 %v8136_v47, %v8568_v35  ;;  %v2266_v12 = vand.u32 4294901760, %v2248_v44  ;;  %v8138_v16 = vpop.eup %8137  ;;  %v2337_v22 = vand.u32 4294901760, %v2336_v31 }
 0x276   :  { %v2757_v21 = vand.u32 4294901760, %v2250_v14  ;;  %v2251_v23 = vmul.f32 %v8138_v16, %v8570_v36  ;;  %v8140_v26 = vpop.eup %8139 }
 0x277   :  { %v2264_v48 = vand.u32 4294901760, %v2249_v11  ;;  %v8722_v25 = vsub.f32 %v2248_v44, %v2266_v12  ;;  %v2252_v29 = vmul.f32 %v8140_v26, %v8576_v52 }
 0x278   :  { %v8724_v27 = vsub.f32 %v2250_v14, %v2757_v21  ;;  %v2755_v24 = vand.u32 4294901760, %v2251_v23 }
 0x279   :  { %v8728_v32 = vsub.f32 %v2249_v11, %v2264_v48  ;;  %v2352_v35 = vand.u32 4294901760, %v8722_v25  ;;  %v8142_v18 = vpop.eup %8141  ;;  %v2270_v37 = vand.u32 4294901760, %v2252_v29 }
 0x27a   :  { %v2843_v30 = vand.u32 4294901760, %v8724_v27  ;;  %v8144_v33 = vpop.eup %8143  ;;  %v8733_v36 = vsub.f32 %v2251_v23, %v2755_v24  ;;  %v2254_v39 = vmul.f32 %v8142_v18, %v8578_v53  ;;  %v8836_v18 = vld [vmem:[%s10121_s1 + $0x38] sm:$0xff] }
 0x27b   :  { %v2346_v19 = vand.u32 4294901760, %v8728_v32  ;;  %v2253_v42 = vmul.f32 %v8144_v33, %v8580_v58  ;;  %v2353_v45 = vsub.f32 %v8722_v25, %v2352_v35  ;;  %v8739_v50 = vpack.c.bf16 %v2270_v37, %v2266_v12  ;;  %v8848_v33 = vld [vmem:[%s10121_s1 + $0x48] sm:$0xff] }
 0x27c   :  { %v8146_v49 = vpop.eup %8145  ;;  %v2363_v52 = vsub.f32 %v2252_v29, %v2270_v37  ;;  %v2761_v51 = vand.u32 4294901760, %v2254_v39  ;;  %v2837_v56 = vand.u32 4294901760, %v8733_v36  ;;  %v2844_v57 = vsub.f32 %v8724_v27, %v2843_v30  ;;  %v8824_v29 = vld [vmem:[%s10121_s1 + $0x28] sm:$0xff]  ;;  %v8860_v37 = vld [vmem:[%s10121_s1 + $0x58] sm:$0xff] }
 0x27d   :  { %v2268_v54 = vand.u32 4294901760, %v2253_v42  ;;  %v2255_v55 = vmul.f32 %v8146_v49, %v8583_v61  ;;  %v2347_v58 = vsub.f32 %v8728_v32, %v2346_v19  ;;  %v2354_v17 = vand.u32 4294901760, %v2353_v45  ;;  %v8879_v45 = vld [vmem:[%s10121_s1 + $0x70] sm:$0xff]  ;;  %v8884_v49 = vld [vmem:[%s10121_s1 + $0x78] sm:$0xff] }
 0x27e   :  { %v8744_v53 = vpack.c.bf16 %v2761_v51, %v2757_v21  ;;  %v2854_v59 = vsub.f32 %v2254_v39, %v2761_v51  ;;  %v2364_v60 = vand.u32 4294901760, %v2363_v52  ;;  %v2838_v0 = vsub.f32 %v8733_v36, %v2837_v56  ;;  %v8867_v39 = vld [vmem:[%s10121_s1 + $0x60] sm:$0xff] }
 0x27f   :  { %v8747_v62 = vpack.c.bf16 %v2268_v54, %v2264_v48  ;;  %v2357_v63 = vsub.f32 %v2253_v42, %v2268_v54  ;;  %v2759_v28 = vand.u32 4294901760, %v2255_v55  ;;  %v7581_v61 = vpack.c.bf16 %v2363_v52, %v8722_v25  ;;  %v2259_v42 = vpop.permute.xlu1 %2258 }
 0x280   :  { %v2365_v1 = vsub.f32 %v2363_v52, %v2364_v60  ;;  %v2855_v2 = vand.u32 4294901760, %v2854_v59  ;;  %v2845_v41 = vand.u32 4294901760, %v2844_v57  ;;  %v7605_v38 = vpack.c.bf16 %v2854_v59, %v8724_v27 }
 0x281   :  { %7572 = vmatprep.subr.bf16.mxu0 %v8747_v62  ;;  %v7595_v3 = vpack.c.bf16 %v2759_v28, %v2755_v24  ;;  %v2848_v34 = vsub.f32 %v2255_v55, %v2759_v28  ;;  %v2358_v4 = vand.u32 4294901760, %v2357_v63  ;;  %v7579_v7 = vpack.c.bf16 %v2357_v63, %v8728_v32  ;;  %v8807_v32 = vld [vmem:[%s10121_s1 + $0x10] sm:$0xff]  ;;  %v8819_v24 = vld [vmem:[%s10121_s1 + $0x20] sm:$0xff] }
 0x282   :  { %7574 = vmatpush1.bf16.msra.mxu0 %v8739_v50  ;;  %v2366_v6 = vand.u32 4294901760, %v2365_v1  ;;  %v2856_v46 = vsub.f32 %v2854_v59, %v2855_v2  ;;  %v7589_v14 = vpack.c.bf16 %v2364_v60, %v2352_v35  ;;  %v7613_v11 = vpack.c.bf16 %v2855_v2, %v2843_v30  ;;  %v8831_v35 = vld [vmem:[%s10121_s1 + $0x30] sm:$0xff]  ;;  %v8843_v30 = vld [vmem:[%s10121_s1 + $0x40] sm:$0xff] }
 0x283   :  { %7596 = vmatprep.subr.bf16.mxu1 %v7595_v3  ;;  %v2359_v8 = vsub.f32 %v2357_v63, %v2358_v4  ;;  %v2849_v40 = vand.u32 4294901760, %v2848_v34  ;;  %v7603_v43 = vpack.c.bf16 %v2848_v34, %v8733_v36  ;;  %v7587_v10 = vpack.c.bf16 %v2358_v4, %v2346_v19  ;;  %v8855_v36 = vld [vmem:[%s10121_s1 + $0x50] sm:$0xff]  ;;  %v8872_v19 = vld [vmem:[%s10121_s1 + $0x68] sm:$0xff] }
 0x284   :  { %7598 = vmatpush1.bf16.msra.mxu1 %v8744_v53  ;;  %v7577_v44 = vpack.c.bf16 %v2366_v6, %v2354_v17  ;;  %v2857_v47 = vand.u32 4294901760, %v2856_v46  ;;  %v2348_v12 = vand.u32 4294901760, %v2347_v58  ;;  %v2839_v26 = vand.u32 4294901760, %v2838_v0 }
 0x285   :  { %2338 = vmatmul.mubr.f32.vlgmr.msra.gmra.mrb[6].mxu0 %v2337_v22  ;;  %v2360_v16 = vand.u32 4294901760, %v2359_v8  ;;  %v2850_v21 = vsub.f32 %v2848_v34, %v2849_v40  ;;  %v7611_v48 = vpack.c.bf16 %v2849_v40, %v2837_v56 }
 0x286   :  { %v7601_v23 = vpack.c.bf16 %v2857_v47, %v2845_v41  ;;  %2428 = vmatprep.mubr.f32.mxu0 %v8347_v5 }
 0x287   :  { %2829 = vmatmul.mubr.f32.vlgmr.msra.gmra.mrb[6].mxu1 %v2337_v22  ;;  %v7575_v25 = vpack.c.bf16 %v2360_v16, %v2348_v12  ;;  %v2851_v27 = vand.u32 4294901760, %v2850_v21 }
 0x288   :  { %2919 = vmatprep.mubr.f32.mxu1 %v8347_v5 }
 0x289   :  { %7576 = vmatprep.subr.bf16.mxu0 %v7575_v25  ;;  %v7599_v31 = vpack.c.bf16 %v2851_v27, %v2839_v26 }
 0x28a   :  { %7578 = vmatpush1.bf16.msra.mxu0 %v7577_v44 }
 0x28b   :  { %7600 = vmatprep.subr.bf16.mxu1 %v7599_v31  ;;  %7580 = vmatprep.subr.bf16.mxu0 %v7579_v7 }
 0x28c   :  { %7602 = vmatpush1.bf16.msra.mxu1 %v7601_v23 }
 0x28d   :  { %7604 = vmatprep.subr.bf16.mxu1 %v7603_v43  ;;  %2430 = vmatmul.mubr.f32.vlgmr.msra.gmra.mrb[6].mxu0 %v8593_v20 }
 0x28e   :  { %7582 = vmatpush1.bf16.msra.mxu0 %v7581_v61  ;;  %2508 = vmatprep.mubr.f32.mxu0 %v8347_v5 }
 0x28f   :  { %2921 = vmatmul.mubr.f32.vlgmr.msra.gmra.mrb[6].mxu1 %v8593_v20  ;;  %7584 = vmatprep.subr.bf16.mxu0 %v8747_v62 }
 0x290   :  { %7606 = vmatpush1.bf16.msra.mxu1 %v7605_v38  ;;  %2999 = vmatprep.mubr.f32.mxu1 %v8347_v5 }
 0x291   :  { %7608 = vmatprep.subr.bf16.mxu1 %v7595_v3 }
 0x295   :  { %2511 = vmatmul.mubr.f32.vlgmr.msra.gmra.mrb[6].mxu0 %v8710_v9 }
 0x296   :  { %7586 = vmatpush1.bf16.msra.mxu0 %v8739_v50  ;;  %2585 = vmatprep.mubr.f32.mxu0 %v8347_v5 }
 0x297   :  { %3002 = vmatmul.mubr.f32.vlgmr.msra.gmra.mrb[6].mxu1 %v8710_v9  ;;  %7588 = vmatprep.subr.bf16.mxu0 %v7587_v10  ;;  %v8788_v9 = vld [vmem:[%s10122_s2 + $0x20] sm:$0x7] }
 0x298   :  { %7610 = vmatpush1.bf16.msra.mxu1 %v8744_v53  ;;  %3076 = vmatprep.mubr.f32.mxu1 %v8347_v5  ;;  %v3331_v10 = vsel %vm1063_vm2, %v8788_v9, 0 }
 0x299   :  { %7612 = vmatprep.subr.bf16.mxu1 %v7611_v48  ;;  %3328 = vperm.xlu1 %8070, %v8788_v9   ;;  %v8902_v21 = vand.u32 4294901760, %v3331_v10 }
 0x29d   :  { %2589 = vmatmul.mubr.f32.vlgmr.msra.gmra.mrb[6].mxu0 %v8718_v15  ;;  %8072 = vset.pattern.permute.xlu1 %v8348_v13  ;;  %v8812_v13 = vld [vmem:[%s10121_s1 + $0x18] sm:$0xff] }
 0x29e   :  { %7590 = vmatpush1.bf16.msra.mxu0 %v7589_v14  ;;  %2671 = vmatprep.mubr.f32.mxu0 %v8347_v5 }
 0x29f   :  { %3080 = vmatmul.mubr.f32.vlgmr.msra.gmra.mrb[6].mxu1 %v8718_v15  ;;  %7592 = vmatprep.subr.bf16.mxu0 %v8747_v62  ;;  %v8795_v15 = vld [vmem:[%s10121_s1 + $0x8] sm:$0xff] }
 0x2a0   :  { %7614 = vmatpush1.bf16.msra.mxu1 %v7613_v11  ;;  %3162 = vmatprep.mubr.f32.mxu1 %v8347_v5 }
 0x2a1   :  { %7616 = vmatprep.subr.bf16.mxu1 %v7595_v3  ;;  %6856 = vperm.xlu1 %8072, %v8795_v15  }
 0x2a5   :  { %2673 = vmatmul.mubr.f32.vlgmr.msra.gmra.mrb[6].mxu0 %v8593_v20  ;;  %6860 = vperm.xlu1 %8072, %v8807_v32  }
 0x2a6   :  { %7594 = vmatpush1.bf16.msra.mxu0 %v8739_v50  ;;  %2747 = vmatprep.mubr.f32.mxu0 %v8347_v5 }
 0x2a7   :  { %3164 = vmatmul.mubr.f32.vlgmr.msra.gmra.mrb[6].mxu1 %v8593_v20 }
 0x2a8   :  { %7618 = vmatpush1.bf16.msra.mxu1 %v8744_v53  ;;  %3238 = vmatprep.mubr.f32.mxu1 %v8347_v5 }
 0x2a9   :  { %6868 = vperm.xlu1 %8072, %v8819_v24  }
 0x2ad   :  { %2749 = vmatmul.mubr.f32.vlgmr.msra.gmra.mrb[6].mxu0 %v8593_v20  ;;  %6876 = vperm.xlu1 %8072, %v8831_v35  }
 0x2ae   :  { %3399 = vmatprep.mubr.f32.mxu0 %v8347_v5 }
 0x2af   :  { %3240 = vmatmul.mubr.f32.vlgmr.msra.gmra.mrb[6].mxu1 %v8593_v20  ;;  %v8800_v20 = vld [vmem:[%s10121_s1] sm:$0xff]  ;;  %s8351_s1 = smov [#allocation2]  }
 0x2b0   :  { %3864 = vmatprep.mubr.f32.mxu1 %v8347_v5  ;;  %6852 = vperm.xlu0 %8071, %v8800_v20   ;;  %s7496_s28 = sshll.u32 %s8351_s1, 4  ;;  %s7497_s28 = int_to_ptr.vmem [resolvable:$true] %s7496_s28 }
 0x2b1   :  { %6884 = vperm.xlu1 %8072, %v8843_v30   ;;  %s8323_s2 = scalar_lea.vmem %s7497_s28, 8192  ;;  %p8328_p1 = scmp.lt.s32.totalorder %s7497_s28, %s7497_s28 }
 0x2b2   :  { %p8324_p0 = scmp.ne.s32.totalorder %s7497_s28, %s8323_s2  ;;  %p8329_p2 = scmp.lt.s32.totalorder %s8323_s2, %s8323_s2 }
 0x2b4   :  { %6864 = vperm.xlu0 %8071, %v8812_v13   ;;  %p8330_p3 = por %p8329_p2, %p8328_p1 }
 0x2b5   :  { %6892 = vperm.xlu1 %8072, %v8855_v36  }
 0x2b6   :  { %p8331_p4 = pnand %p8330_p3, %p8324_p0 }
 0x2b8   :  { %6872 = vperm.xlu0 %8071, %v8824_v29  }
 0x2b9   :  { %6900 = vperm.xlu1 %8072, %v8867_v39  }
 0x2bc   :  { %6880 = vperm.xlu0 %8071, %v8836_v18  }
 0x2bd   :  { %6908 = vperm.xlu1 %8072, %v8879_v45  }
 0x2c0   :  { %6888 = vperm.xlu0 %8071, %v8848_v33  }
 0x2c4   :  { %6896 = vperm.xlu0 %8071, %v8860_v37  }
 0x2c8   :  { %6904 = vperm.xlu0 %8071, %v8872_v19  }
 0x2cc   :  { %6912 = vperm.xlu0 %8071, %v8884_v49  }
 0x380   :  { %v2750_v50 = vpop.f32.mrb[6].mxu0 }
 0x381   :  { %v8886_v52 = vadd.f32 %v2750_v50, %v2259_v42  ;;  %v2752_v51 = vpop.f32.mrb[7].mxu0 }
 0x382   :  { %v3241_v22 = vpop.f32.mrb[6].mxu1  ;;  %v8890_v54 = vadd.f32 %v2752_v51, %v2259_v42 }
 0x383   :  { %v3258_v55 = vand.u32 2147483647, %v8886_v52  ;;  %v8893_v56 = vadd.f32 %v3241_v22, %v2259_v42  ;;  %v3243_v57 = vpop.f32.mrb[7].mxu1  ;;  %v3246_v23 = vmax.f32 %v8886_v52, 0.0  ;;  %vm3250_vm15 = vcmp.ne.f32.partialorder %v8886_v52, %v8886_v52 }
 0x384   :  { %v3259_v53 = vand.u32 2147483647, %v8890_v54  ;;  %v8896_v59 = vadd.f32 %v3243_v57, %v2259_v42  ;;  %v3247_v26 = vmax.f32 %v8890_v54, 0.0  ;;  %vm3251_vm2 = vcmp.ne.f32.partialorder %v8890_v54, %v8890_v54 }
 0x385   :  { %v3262_v58 = vsub.f32 0.0, %v3258_v55  ;;  %v3260_v60 = vand.u32 2147483647, %v8893_v56  ;;  %vm3252_vm7 = vcmp.ne.f32.partialorder %v8893_v56, %v8893_v56 }
 0x386   :  { %v3263_v62 = vsub.f32 0.0, %v3259_v53  ;;  %v3261_v63 = vand.u32 2147483647, %v8896_v59  ;;  %vm3253_vm8 = vcmp.ne.f32.partialorder %v8896_v59, %v8896_v59 }
 0x387   :  { %v3266_v28 = vmul.f32 1.442695, %v3262_v58  ;;  %v3264_v17 = vsub.f32 0.0, %v3260_v60 }
 0x388   :  { %v3268_v0 = vmul.f32 1.442695, %v3263_v62  ;;  %v3265_v1 = vsub.f32 0.0, %v3261_v63  ;;  %v3248_v63 = vmax.f32 %v8893_v56, 0.0 }
 0x389   :  { %8147 = vpow2.f32 %v3266_v28  ;;  %v3270_v2 = vmul.f32 1.442695, %v3264_v17 }
 0x38a   :  { %8149 = vpow2.f32 %v3268_v0  ;;  %v3272_v61 = vmul.f32 1.442695, %v3265_v1 }
 0x38b   :  { %8151 = vpow2.f32 %v3270_v2 }
 0x38c   :  { %8153 = vpow2.f32 %v3272_v61 }
 0x393   :  { %v8148_v3 = vpop.eup %8147 }
 0x394   :  { %v8150_v34 = vpop.eup %8149  ;;  %v3274_v4 = vadd.f32 1.0, %v8148_v3  ;;  %v3277_v8 = vmul.f32 -0.5, %v8148_v3  ;;  %v3280_v14 = vand.u32 2147483647, %v8148_v3 }
 0x395   :  { %v8152_v41 = vpop.eup %8151  ;;  %v3283_v6 = vadd.f32 1.0, %v8150_v34  ;;  %v3286_v40 = vmul.f32 -0.5, %v8150_v34  ;;  %v3289_v16 = vand.u32 2147483647, %v8150_v34 }
 0x396   :  { %v8154_v46 = vpop.eup %8153  ;;  %8155 = vlog2.f32 %v3274_v4  ;;  %v3292_v7 = vadd.f32 1.0, %v8152_v41  ;;  %v3295_v43 = vmul.f32 -0.5, %v8152_v41  ;;  %v3278_v44 = vadd.f32 1.0, %v3277_v8 }
 0x397   :  { %8157 = vlog2.f32 %v3283_v6  ;;  %v3301_v38 = vadd.f32 1.0, %v8154_v46  ;;  %v3304_v47 = vmul.f32 -0.5, %v8154_v46  ;;  %v3287_v11 = vadd.f32 1.0, %v3286_v40 }
 0x398   :  { %8159 = vlog2.f32 %v3292_v7  ;;  %v3296_v12 = vadd.f32 1.0, %v3295_v43  ;;  %v3298_v25 = vand.u32 2147483647, %v8152_v41  ;;  %v3279_v9 = vmul.f32 %v8148_v3, %v3278_v44 }
 0x399   :  { %8161 = vlog2.f32 %v3301_v38  ;;  %v3305_v42 = vadd.f32 1.0, %v3304_v47  ;;  %vm3281_vm3 = vcmp.lt.f32.partialorder %v3280_v14, 0.0004427343  ;;  %v3288_v22 = vmul.f32 %v8150_v34, %v3287_v11 }
 0x39a   :  { %v3307_v55 = vand.u32 2147483647, %v8154_v46  ;;  %v3297_v58 = vmul.f32 %v8152_v41, %v3296_v12  ;;  %vm3290_vm4 = vcmp.lt.f32.partialorder %v3289_v16, 0.0004427343  ;;  %vm3299_vm5 = vcmp.lt.f32.partialorder %v3298_v25, 0.0004427343 }
 0x39b   :  { %v3306_v2 = vmul.f32 %v8154_v46, %v3305_v42  ;;  %v3249_v34 = vmax.f32 %v8896_v59, 0.0  ;;  %v3401_v7 = vsub.f32 %v3331_v10, %v8902_v21 }
 0x39c   :  { %vm3308_vm6 = vcmp.lt.f32.partialorder %v3307_v55, 0.0004427343 }
 0x39d   :  { %v8927_v8 = vand.u32 4294901760, %v3401_v7 }
 0x39f   :  { %v3403_v43 = vsub.f32 %v3401_v7, %v8927_v8 }
 0x3a0   :  { %v8156_v48 = vpop.eup %8155 }
 0x3a1   :  { %v8158_v27 = vpop.eup %8157  ;;  %v3276_v31 = vmul.f32 0.6931472, %v8156_v48  ;;  %v3404_v10 = vand.u32 4294901760, %v3403_v43 }
 0x3a2   :  { %v8160_v50 = vpop.eup %8159  ;;  %v3285_v51 = vmul.f32 0.6931472, %v8158_v27 }
 0x3a3   :  { %v3282_v57 = vsel %vm3281_vm3, %v3279_v9, %v3276_v31  ;;  %v3294_v53 = vmul.f32 0.6931472, %v8160_v50  ;;  %v8162_v60 = vpop.eup %8161 }
 0x3a4   :  { %v3310_v62 = vadd.f32 %v3282_v57, %v3246_v23  ;;  %v3291_v28 = vsel %vm3290_vm4, %v3288_v22, %v3285_v51  ;;  %v3303_v1 = vmul.f32 0.6931472, %v8162_v60 }
 0x3a5   :  { %v3300_v17 = vsel %vm3299_vm5, %v3297_v58, %v3294_v53  ;;  %v3311_v0 = vadd.f32 %v3291_v28, %v3247_v26 }
 0x3a6   :  { %v3314_v61 = vsel %vm3250_vm15, %v8886_v52, %v3310_v62  ;;  %v3312_v3 = vadd.f32 %v3300_v17, %v3248_v63  ;;  %v3309_v41 = vsel %vm3308_vm6, %v3306_v2, %v3303_v1  ;;  %v3329_v63 = vpop.permute.xlu1 %3328 }
 0x3a7   :  { %8163 = vtanh.f32 %v3314_v61  ;;  %v3315_v4 = vsel %vm3251_vm2, %v8890_v54, %v3311_v0  ;;  %v3313_v46 = vadd.f32 %v3309_v41, %v3249_v34 }
 0x3a8   :  { %v3316_v6 = vsel %vm3252_vm7, %v8893_v56, %v3312_v3  ;;  %8165 = vtanh.f32 %v3315_v4 }
 0x3a9   :  { %8167 = vtanh.f32 %v3316_v6  ;;  %v3317_v38 = vsel %vm3253_vm8, %v8896_v59, %v3313_v46 }
 0x3aa   :  { %8169 = vtanh.f32 %v3317_v38 }
 0x3b1   :  { %v8164_v40 = vpop.eup %8163 }
 0x3b2   :  { %v8166_v44 = vpop.eup %8165  ;;  %v3322_v47 = vmul.f32 %v8164_v40, %v8886_v52 }
 0x3b3   :  { %v8168_v14 = vpop.eup %8167  ;;  %v3323_v11 = vmul.f32 %v8166_v44, %v8890_v54 }
 0x3b4   :  { %v3335_v12 = vand.u32 4294901760, %v3322_v47  ;;  %v3324_v16 = vmul.f32 %v8168_v14, %v8893_v56  ;;  %v8170_v48 = vpop.eup %8169 }
 0x3b5   :  { %v3333_v23 = vand.u32 4294901760, %v3323_v11  ;;  %v3325_v25 = vmul.f32 %v8170_v48, %v8896_v59 }
 0x3b6   :  { %v3418_v26 = vsub.f32 %v3322_v47, %v3335_v12  ;;  %v3800_v27 = vand.u32 4294901760, %v3324_v16 }
 0x3b7   :  { %3334 = vmatprep.subr.mxu0 %v3333_v23  ;;  %v3412_v31 = vsub.f32 %v3323_v11, %v3333_v23  ;;  %v3798_v9 = vand.u32 4294901760, %v3325_v25 }
 0x3b8   :  { %3336 = vmatpush1.msra.mxu0 %v3335_v12  ;;  %v3883_v42 = vsub.f32 %v3324_v16, %v3800_v27  ;;  %v3419_v50 = vand.u32 4294901760, %v3418_v26 }
 0x3b9   :  { %3405 = vmatmul.mubr.f32.vlgmr.msra.gmra.mrb[8].mxu0 %v3404_v10  ;;  %v3413_v52 = vand.u32 4294901760, %v3412_v31  ;;  %3799 = vmatprep.subr.mxu1 %v3798_v9  ;;  %v3877_v54 = vsub.f32 %v3325_v25, %v3798_v9 }
 0x3ba   :  { %v3420_v51 = vsub.f32 %v3418_v26, %v3419_v50  ;;  %3485 = vmatprep.mubr.f32.mxu0 %v8347_v5  ;;  %v3884_v56 = vand.u32 4294901760, %v3883_v42  ;;  %3801 = vmatpush1.msra.mxu1 %v3800_v27 }
 0x3bb   :  { %v3414_v22 = vsub.f32 %v3412_v31, %v3413_v52  ;;  %3870 = vmatmul.mubr.f32.vlgmr.msra.gmra.mrb[8].mxu1 %v3404_v10  ;;  %v3878_v59 = vand.u32 4294901760, %v3877_v54 }
 0x3bc   :  { %v3885_v57 = vsub.f32 %v3883_v42, %v3884_v56  ;;  %3950 = vmatprep.mubr.f32.mxu1 %v8347_v5  ;;  %v3421_v58 = vand.u32 4294901760, %v3420_v51  ;;  %v4395_v51 = vsel %vm31_vm1, %v8795_v15, 0 }
 0x3bd   :  { %v3415_v55 = vand.u32 4294901760, %v3414_v22  ;;  %v3879_v53 = vsub.f32 %v3877_v54, %v3878_v59 }
 0x3be   :  { %v3886_v62 = vand.u32 4294901760, %v3885_v57 }
 0x3bf   :  { %3416 = vmatprep.subr.mxu0 %v3415_v55  ;;  %v3880_v60 = vand.u32 4294901760, %v3879_v53 }
 0x3c0   :  { %3422 = vmatpush1.msra.mxu0 %v3421_v58 }
 0x3c1   :  { %3487 = vmatmul.mubr.f32.vlgmr.msra.gmra.mrb[8].mxu0 %v8902_v21  ;;  %3495 = vmatprep.subr.mxu0 %v3412_v31  ;;  %v4392_v31 = vsel %vm31_vm1, %v8800_v20, 0 }
 0x3c2   :  { %3881 = vmatprep.subr.mxu1 %v3880_v60  ;;  %3498 = vmatpush1.msra.mxu0 %v3418_v26 }
 0x3c3   :  { %3887 = vmatpush1.msra.mxu1 %v3886_v62  ;;  %3571 = vmatprep.subr.mxu0 %v3333_v23 }
 0x3c4   :  { %3952 = vmatmul.mubr.f32.vlgmr.msra.gmra.mrb[8].mxu1 %v8902_v21  ;;  %3960 = vmatprep.subr.mxu1 %v3877_v54 }
 0x3c5   :  { %3963 = vmatpush1.msra.mxu1 %v3883_v42  ;;  %3561 = vmatprep.mubr.f32.mxu0 %v8347_v5 }
 0x3c6   :  { %4036 = vmatprep.subr.mxu1 %v3798_v9  ;;  %4026 = vmatprep.mubr.f32.mxu1 %v8347_v5 }
 0x3c9   :  { %3564 = vmatmul.mubr.f32.vlgmr.msra.gmra.mrb[8].mxu0 %v3401_v7 }
 0x3ca   :  { %3573 = vmatpush1.msra.mxu0 %v3335_v12  ;;  %3636 = vmatprep.mubr.f32.mxu0 %v8347_v5 }
 0x3cb   :  { %3649 = vmatprep.subr.mxu0 %v3413_v52 }
 0x3cc   :  { %4029 = vmatmul.mubr.f32.vlgmr.msra.gmra.mrb[8].mxu1 %v3401_v7 }
 0x3cd   :  { %4038 = vmatpush1.msra.mxu1 %v3800_v27  ;;  %4101 = vmatprep.mubr.f32.mxu1 %v8347_v5 }
 0x3ce   :  { %4114 = vmatprep.subr.mxu1 %v3878_v59 }
 0x3d1   :  { %3640 = vmatmul.mubr.f32.vlgmr.msra.gmra.mrb[8].mxu0 %v8927_v8 }
 0x3d2   :  { %3653 = vmatpush1.msra.mxu0 %v3419_v50  ;;  %3716 = vmatprep.mubr.f32.mxu0 %v8347_v5 }
 0x3d3   :  { %3725 = vmatprep.subr.mxu0 %v3333_v23 }
 0x3d4   :  { %4105 = vmatmul.mubr.f32.vlgmr.msra.gmra.mrb[8].mxu1 %v8927_v8 }
 0x3d5   :  { %4118 = vmatpush1.msra.mxu1 %v3884_v56  ;;  %4181 = vmatprep.mubr.f32.mxu1 %v8347_v5  ;;  %v8970_v56 = vand.u32 4294901760, %v4392_v31 }
 0x3d6   :  { %4190 = vmatprep.subr.mxu1 %v3798_v9 }
 0x3d9   :  { %3718 = vmatmul.mubr.f32.vlgmr.msra.gmra.mrb[8].mxu0 %v8902_v21 }
 0x3da   :  { %3727 = vmatpush1.msra.mxu0 %v3335_v12  ;;  %3790 = vmatprep.mubr.f32.mxu0 %v8347_v5 }
 0x3dc   :  { %4183 = vmatmul.mubr.f32.vlgmr.msra.gmra.mrb[8].mxu1 %v8902_v21 }
 0x3dd   :  { %4192 = vmatpush1.msra.mxu1 %v3800_v27  ;;  %4255 = vmatprep.mubr.f32.mxu1 %v8347_v5 }
 0x3e1   :  { %3792 = vmatmul.mubr.f32.vlgmr.msra.gmra.mrb[8].mxu0 %v8902_v21 }
 0x3e2   :  { %4517 = vmatprep.mubr.f32.mxu0 %v8347_v5 }
 0x3e4   :  { %4257 = vmatmul.mubr.f32.vlgmr.msra.gmra.mrb[8].mxu1 %v8902_v21 }
 0x3e5   :  { %5717 = vmatprep.mubr.f32.mxu1 %v8347_v5 }
 0x4b4   :  { %v3793_v28 = vpop.f32.mrb[8].mxu0 }
 0x4b5   :  { %v8954_v17 = vadd.f32 %v3793_v28, %v3329_v63  ;;  %v3795_v0 = vpop.f32.mrb[9].mxu0 }
 0x4b6   :  { %v8956_v1 = vadd.f32 %v3795_v0, %v3329_v63 }
 0x4b7   :  { %v4275_v2 = vand.u32 2147483647, %v8954_v17  ;;  %v4258_v61 = vpop.f32.mrb[8].mxu1  ;;  %v4263_v55 = vmax.f32 %v8954_v17, 0.0  ;;  %vm4267_vm9 = vcmp.ne.f32.partialorder %v8954_v17, %v8954_v17 }
 0x4b8   :  { %v8959_v3 = vadd.f32 %v4258_v61, %v3329_v63  ;;  %v4276_v34 = vand.u32 2147483647, %v8956_v1  ;;  %v4260_v4 = vpop.f32.mrb[9].mxu1  ;;  %v4264_v20 = vmax.f32 %v8956_v1, 0.0  ;;  %vm4268_vm11 = vcmp.ne.f32.partialorder %v8956_v1, %v8956_v1 }
 0x4b9   :  { %v4279_v41 = vsub.f32 0.0, %v4275_v2  ;;  %v8962_v6 = vadd.f32 %v4260_v4, %v3329_v63 }
 0x4ba   :  { %v4277_v21 = vand.u32 2147483647, %v8959_v3  ;;  %v4280_v46 = vsub.f32 0.0, %v4276_v34  ;;  %v4265_v34 = vmax.f32 %v8959_v3, 0.0  ;;  %vm4269_vm15 = vcmp.ne.f32.partialorder %v8959_v3, %v8959_v3 }
 0x4bb   :  { %v4283_v7 = vmul.f32 1.442695, %v4279_v41  ;;  %v4278_v38 = vand.u32 2147483647, %v8962_v6  ;;  %vm4270_vm2 = vcmp.ne.f32.partialorder %v8962_v6, %v8962_v6 }
 0x4bc   :  { %v4281_v8 = vsub.f32 0.0, %v4277_v21  ;;  %v4285_v40 = vmul.f32 1.442695, %v4280_v46 }
 0x4bd   :  { %8171 = vpow2.f32 %v4283_v7  ;;  %v4282_v43 = vsub.f32 0.0, %v4278_v38 }
 0x4be   :  { %v4287_v44 = vmul.f32 1.442695, %v4281_v8  ;;  %8173 = vpow2.f32 %v4285_v40 }
 0x4bf   :  { %v4289_v47 = vmul.f32 1.442695, %v4282_v43 }
 0x4c0   :  { %8175 = vpow2.f32 %v4287_v44 }
 0x4c1   :  { %8177 = vpow2.f32 %v4289_v47  ;;  %v4266_v47 = vmax.f32 %v8962_v6, 0.0 }
 0x4c7   :  { %v8172_v14 = vpop.eup %8171 }
 0x4c8   :  { %v8174_v11 = vpop.eup %8173  ;;  %v4291_v12 = vadd.f32 1.0, %v8172_v14  ;;  %v4294_v26 = vmul.f32 -0.5, %v8172_v14  ;;  %v4297_v52 = vand.u32 2147483647, %v8172_v14 }
 0x4c9   :  { %v4300_v16 = vadd.f32 1.0, %v8174_v11  ;;  %v4303_v27 = vmul.f32 -0.5, %v8174_v11  ;;  %v4306_v22 = vand.u32 2147483647, %v8174_v11 }
 0x4ca   :  { %v8176_v48 = vpop.eup %8175  ;;  %8179 = vlog2.f32 %v4291_v12  ;;  %v4295_v42 = vadd.f32 1.0, %v4294_v26  ;;  %vm4298_vm10 = vcmp.lt.f32.partialorder %v4297_v52, 0.0004427343  ;;  %v4398_v26 = vsel %vm31_vm1, %v8807_v32, 0 }
 0x4cb   :  { %v8178_v23 = vpop.eup %8177  ;;  %v4309_v10 = vadd.f32 1.0, %v8176_v48  ;;  %8181 = vlog2.f32 %v4300_v16  ;;  %v4312_v9 = vmul.f32 -0.5, %v8176_v48  ;;  %v4304_v54 = vadd.f32 1.0, %v4303_v27 }
 0x4cc   :  { %v4318_v25 = vadd.f32 1.0, %v8178_v23  ;;  %v4321_v50 = vmul.f32 -0.5, %v8178_v23  ;;  %v4296_v60 = vmul.f32 %v8172_v14, %v4295_v42  ;;  %v4315_v62 = vand.u32 2147483647, %v8176_v48 }
 0x4cd   :  { %8183 = vlog2.f32 %v4309_v10  ;;  %v4313_v57 = vadd.f32 1.0, %v4312_v9  ;;  %v4305_v15 = vmul.f32 %v8174_v11, %v4304_v54  ;;  %v4324_v0 = vand.u32 2147483647, %v8178_v23 }
 0x4ce   :  { %8185 = vlog2.f32 %v4318_v25  ;;  %v4322_v63 = vadd.f32 1.0, %v4321_v50  ;;  %vm4307_vm12 = vcmp.lt.f32.partialorder %v4306_v22, 0.0004427343  ;;  %vm4316_vm13 = vcmp.lt.f32.partialorder %v4315_v62, 0.0004427343 }
 0x4cf   :  { %v4314_v46 = vmul.f32 %v8176_v48, %v4313_v57  ;;  %vm4325_vm14 = vcmp.lt.f32.partialorder %v4324_v0, 0.0004427343  ;;  %v8996_v10 = vsub.f32 %v4392_v31, %v8970_v56  ;;  %v9007_v42 = vand.u32 4294901760, %v4398_v26 }
 0x4d0   :  { %v4323_v40 = vmul.f32 %v8178_v23, %v4322_v63  ;;  %v8993_v23 = vand.u32 4294901760, %v4395_v51  ;;  %v4401_v50 = vsel %vm31_vm1, %v8812_v13, 0  ;;  %v4404_v13 = vsel %vm31_vm1, %v8819_v24, 0 }
 0x4d1   :  { %v9005_v9 = vand.u32 4294901760, %v8996_v10  ;;  %v9025_v57 = vsub.f32 %v4398_v26, %v9007_v42 }
 0x4d2   :  { %v9002_v27 = vsub.f32 %v4395_v51, %v8993_v23  ;;  %v9019_v51 = vand.u32 4294901760, %v4401_v50 }
 0x4d3   :  { %v4521_v22 = vsub.f32 %v8996_v10, %v9005_v9 }
 0x4d4   :  { %v8180_v59 = vpop.eup %8179  ;;  %v9017_v32 = vand.u32 4294901760, %v9002_v27 }
 0x4d5   :  { %v8182_v53 = vpop.eup %8181  ;;  %v4293_v58 = vmul.f32 0.6931472, %v8180_v59  ;;  %v4522_v63 = vand.u32 4294901760, %v4521_v22 }
 0x4d6   :  { %v4302_v28 = vmul.f32 0.6931472, %v8182_v53  ;;  %v4532_v24 = vsub.f32 %v9002_v27, %v9017_v32 }
 0x4d7   :  { %v8184_v2 = vpop.eup %8183  ;;  %v4299_v61 = vsel %vm4298_vm10, %v4296_v60, %v4293_v58 }
 0x4d8   :  { %v8186_v4 = vpop.eup %8185  ;;  %v4327_v41 = vadd.f32 %v4299_v61, %v4263_v55  ;;  %v4311_v21 = vmul.f32 0.6931472, %v8184_v2  ;;  %v4308_v7 = vsel %vm4307_vm12, %v4305_v15, %v4302_v28  ;;  %v9046_v28 = vsub.f32 %v4401_v50, %v9019_v51 }
 0x4d9   :  { %v4328_v38 = vadd.f32 %v4308_v7, %v4264_v20  ;;  %v4320_v8 = vmul.f32 0.6931472, %v8186_v4  ;;  %v9048_v15 = vand.u32 4294901760, %v4404_v13  ;;  %v9061_v61 = vand.u32 4294901760, %v9025_v57 }
 0x4da   :  { %v4331_v43 = vsel %vm4267_vm9, %v8954_v17, %v4327_v41  ;;  %v4317_v44 = vsel %vm4316_vm13, %v4314_v46, %v4311_v21  ;;  %v4533_v41 = vand.u32 4294901760, %v4532_v24 }
 0x4db   :  { %8187 = vtanh.f32 %v4331_v43  ;;  %v4329_v14 = vadd.f32 %v4317_v44, %v4265_v34  ;;  %v4332_v11 = vsel %vm4268_vm11, %v8956_v1, %v4328_v38  ;;  %v4326_v12 = vsel %vm4325_vm14, %v4323_v40, %v4320_v8 }
 0x4dc   :  { %8189 = vtanh.f32 %v4332_v11  ;;  %v4330_v16 = vadd.f32 %v4326_v12, %v4266_v47  ;;  %v9074_v46 = vsub.f32 %v4404_v13, %v9048_v15  ;;  %v4543_v43 = vsub.f32 %v9025_v57, %v9061_v61 }
 0x4dd   :  { %v4333_v48 = vsel %vm4269_vm15, %v8959_v3, %v4329_v14  ;;  %v9092_v44 = vand.u32 4294901760, %v9046_v28 }
 0x4de   :  { %8191 = vtanh.f32 %v4333_v48  ;;  %v4334_v25 = vsel %vm4270_vm2, %v8962_v6, %v4330_v16 }
 0x4df   :  { %8193 = vtanh.f32 %v4334_v25  ;;  %v4413_v25 = vsel %vm31_vm1, %v8836_v18, 0  ;;  %v4554_v22 = vsub.f32 %v9046_v28, %v9092_v44 }
 0x4e1   :  { %v4555_v24 = vand.u32 4294901760, %v4554_v22 }
 0x4e5   :  { %v8188_v31 = vpop.eup %8187 }
 0x4e6   :  { %v8190_v52 = vpop.eup %8189  ;;  %v9012_v54 = vmul.f32 %v8188_v31, %v8954_v17 }
 0x4e7   :  { %v9022_v59 = vmul.f32 %v8190_v52, %v8956_v1  ;;  %v4544_v52 = vand.u32 4294901760, %v4543_v43 }
 0x4e8   :  { %v8192_v55 = vpop.eup %8191  ;;  %v4440_v17 = vsel %vm34_vm0, %v9012_v54, 0 }
 0x4e9   :  { %10143 = vst [vmem:[#allocation5_spill] sm:$0xff] %v9022_v59  ;;  %v8194_v20 = vpop.eup %8193  ;;  %v9032_v53 = vmul.f32 %v8192_v55, %v8959_v3  ;;  %v4443_v58 = vsel %vm34_vm0, %v9022_v59, 0  ;;  %v9036_v60 = vand.u32 4294901760, %v4440_v17  ;;  %v4407_v3 = vsel %vm31_vm1, %v8824_v29, 0 }
 0x4ea   :  { %v9039_v1 = vmul.f32 %v8194_v20, %v8962_v6  ;;  %v9041_v62 = vand.u32 4294901760, %v4443_v58  ;;  %v4410_v29 = vsel %vm31_vm1, %v8831_v35, 0  ;;  %v9076_v7 = vand.u32 4294901760, %v4407_v3 }
 0x4eb   :  { %10144 = vst [vmem:[#allocation6_spill] sm:$0xff] %v9032_v53  ;;  %v9056_v0 = vsub.f32 %v4440_v17, %v9036_v60  ;;  %v4446_v2 = vsel %vm34_vm0, %v9032_v53, 0  ;;  %v9096_v11 = vand.u32 4294901760, %v4410_v29  ;;  %v9120_v55 = vand.u32 4294901760, %v9074_v46 }
 0x4ec   :  { %10145 = vst [vmem:[#allocation7_spill] sm:$0xff] %v9039_v1  ;;  %4452 = vmatprep.subr.mxu0 %v9041_v62  ;;  %v4449_v6 = vsel %vm34_vm0, %v9039_v1, 0  ;;  %v9066_v4 = vand.u32 4294901760, %v4446_v2  ;;  %v9071_v21 = vsub.f32 %v4443_v58, %v9041_v62  ;;  %v9106_v48 = vsub.f32 %v4407_v3, %v9076_v7 }
 0x4ed   :  { %v9063_v34 = vand.u32 4294901760, %v4449_v6  ;;  %4454 = vmatpush1.msra.mxu0 %v9036_v60  ;;  %v10125_v40 = vand.u32 4294901760, %v9056_v0  ;;  %v9123_v20 = vand.u32 4294901760, %v4413_v25  ;;  %v4416_v58 = vsel %vm31_vm1, %v8843_v30, 0 }
 0x4ee   :  { %4523 = vmatmul.mubr.f32.vlgmr.msra.gmra.mrb[10].mxu0 %v4522_v63  ;;  %v9080_v38 = vsub.f32 %v4446_v2, %v9066_v4  ;;  %v10127_v35 = vand.u32 4294901760, %v9071_v21  ;;  %v4565_v3 = vsub.f32 %v9074_v46, %v9120_v55  ;;  %v9138_v30 = vand.u32 4294901760, %v4416_v58 }
 0x4ef   :  { %5652 = vmatprep.subr.mxu1 %v9063_v34  ;;  %4528 = vmatprep.mubr.f32.mxu0 %v8347_v5  ;;  %v9084_v8 = vsub.f32 %v4449_v6, %v9063_v34  ;;  %v4703_v16 = vsub.f32 %v9056_v0, %v10125_v40  ;;  %v9133_v6 = vand.u32 4294901760, %v9106_v48  ;;  %v4419_v2 = vsel %vm31_vm1, %v8848_v33, 0 }
 0x4f0   :  { %5654 = vmatpush1.msra.mxu1 %v9066_v4  ;;  %v10124_v14 = vand.u32 4294901760, %v9080_v38  ;;  %v4697_v12 = vsub.f32 %v9071_v21, %v10127_v35  ;;  %v4422_v33 = vsel %vm31_vm1, %v8855_v36, 0  ;;  %v4425_v36 = vsel %vm31_vm1, %v8860_v37, 0 }
 0x4f1   :  { %5723 = vmatmul.mubr.f32.vlgmr.msra.gmra.mrb[10].mxu1 %v4522_v63  ;;  %v10126_v47 = vand.u32 4294901760, %v9084_v8  ;;  %v4704_v13 = vand.u32 4294901760, %v4703_v16  ;;  %v9128_v63 = vsub.f32 %v4410_v29, %v9096_v11  ;;  %v9144_v29 = vsub.f32 %v4413_v25, %v9123_v20 }
 0x4f2   :  { %5728 = vmatprep.mubr.f32.mxu1 %v8347_v5  ;;  %4534 = vmatmul.mubr.f32.gmra.mrb[12].mxu0 %v4533_v41  ;;  %v5903_v50 = vsub.f32 %v9080_v38, %v10124_v14  ;;  %v4698_v31 = vand.u32 4294901760, %v4697_v12  ;;  %v4576_v43 = vsub.f32 %v9106_v48, %v9133_v6  ;;  %v9153_v16 = vand.u32 4294901760, %v4419_v2 }
 0x4f3   :  { %v5897_v26 = vsub.f32 %v9084_v8, %v10126_v47  ;;  %4539 = vmatprep.mubr.f32.mxu0 %v8347_v5  ;;  %v9149_v12 = vand.u32 4294901760, %v9128_v63  ;;  %v9158_v25 = vsub.f32 %v4416_v58, %v9138_v30  ;;  %v9181_v58 = vand.u32 4294901760, %v4425_v36 }
 0x4f4   :  { %4699 = vmatprep.subr.mxu0 %v4698_v31  ;;  %v5904_v17 = vand.u32 4294901760, %v5903_v50  ;;  %v9163_v31 = vand.u32 4294901760, %v9144_v29  ;;  %v9172_v22 = vsub.f32 %v4419_v2, %v9153_v16  ;;  %v4428_v37 = vsel %vm31_vm1, %v8867_v39, 0 }
 0x4f5   :  { %5734 = vmatmul.mubr.f32.gmra.mrb[12].mxu1 %v4533_v41  ;;  %v5898_v18 = vand.u32 4294901760, %v5897_v26  ;;  %4705 = vmatpush1.msra.mxu0 %v4704_v13  ;;  %v4566_v41 = vand.u32 4294901760, %v4565_v3  ;;  %v4577_v26 = vand.u32 4294901760, %v4576_v43  ;;  %v4587_v50 = vsub.f32 %v9128_v63, %v9149_v12 }
 0x4f6   :  { %5739 = vmatprep.mubr.f32.mxu1 %v8347_v5  ;;  %4545 = vmatmul.mubr.f32.gmra.mrb[14].mxu0 %v4544_v52  ;;  %v4598_v13 = vsub.f32 %v9144_v29, %v9163_v31  ;;  %v9195_v43 = vand.u32 4294901760, %v4428_v37  ;;  %v4431_v39 = vsel %vm31_vm1, %v8872_v19, 0  ;;  %v4434_v19 = vsel %vm31_vm1, %v8879_v45, 0 }
 0x4f7   :  { %5899 = vmatprep.subr.mxu1 %v5898_v18  ;;  %4883 = vmatprep.subr.mxu0 %v9071_v21  ;;  %v4588_v18 = vand.u32 4294901760, %v4587_v50 }
 0x4f8   :  { %5905 = vmatpush1.msra.mxu1 %v5904_v17  ;;  %4550 = vmatprep.mubr.f32.mxu0 %v8347_v5  ;;  %v9177_v17 = vand.u32 4294901760, %v9158_v25  ;;  %v4599_v3 = vand.u32 4294901760, %v4598_v13 }
 0x4f9   :  { %5745 = vmatmul.mubr.f32.gmra.mrb[14].mxu1 %v4544_v52  ;;  %6083 = vmatprep.subr.mxu1 %v9084_v8  ;;  %v9167_v52 = vand.u32 4294901760, %v4422_v33 }
 0x4fa   :  { %5750 = vmatprep.mubr.f32.mxu1 %v8347_v5  ;;  %4556 = vmatmul.mubr.f32.gmra.mrb[16].mxu0 %v4555_v24  ;;  %v4609_v2 = vsub.f32 %v9158_v25, %v9177_v17 }
 0x4fb   :  { %4561 = vmatprep.mubr.f32.mxu0 %v8347_v5 }
 0x4fd   :  { %5756 = vmatmul.mubr.f32.gmra.mrb[16].mxu1 %v4555_v24  ;;  %v9186_v24 = vsub.f32 %v4422_v33, %v9167_v52  ;;  %v9200_v33 = vsub.f32 %v4425_v36, %v9181_v58  ;;  %v9214_v36 = vsub.f32 %v4428_v37, %v9195_v43 }
 0x4fe   :  { %5761 = vmatprep.mubr.f32.mxu1 %v8347_v5  ;;  %4567 = vmatmul.mubr.f32.gmra.mrb[18].mxu0 %v4566_v41 }
 0x4ff   :  { %4572 = vmatprep.mubr.f32.mxu0 %v8347_v5  ;;  %v9205_v13 = vand.u32 4294901760, %v9186_v24  ;;  %v9219_v40 = vand.u32 4294901760, %v9200_v33  ;;  %v9231_v47 = vand.u32 4294901760, %v9214_v36 }
 0x501   :  { %5767 = vmatmul.mubr.f32.gmra.mrb[18].mxu1 %v4566_v41  ;;  %v9191_v41 = vand.u32 4294901760, %v9172_v22  ;;  %v4631_v14 = vsub.f32 %v9186_v24, %v9205_v13  ;;  %v4653_v1 = vsub.f32 %v9214_v36, %v9231_v47 }
 0x502   :  { %5772 = vmatprep.mubr.f32.mxu1 %v8347_v5  ;;  %4578 = vmatmul.mubr.f32.gmra.mrb[20].mxu0 %v4577_v26 }
 0x503   :  { %4583 = vmatprep.mubr.f32.mxu0 %v8347_v5  ;;  %v4620_v50 = vsub.f32 %v9172_v22, %v9191_v41  ;;  %v4632_v37 = vand.u32 4294901760, %v4631_v14 }
 0x505   :  { %5778 = vmatmul.mubr.f32.gmra.mrb[20].mxu1 %v4577_v26  ;;  %v4610_v26 = vand.u32 4294901760, %v4609_v2  ;;  %v4621_v2 = vand.u32 4294901760, %v4620_v50  ;;  %v4642_v50 = vsub.f32 %v9200_v33, %v9219_v40 }
 0x506   :  { %5783 = vmatprep.mubr.f32.mxu1 %v8347_v5  ;;  %4589 = vmatmul.mubr.f32.gmra.mrb[22].mxu0 %v4588_v18 }
 0x507   :  { %4594 = vmatprep.mubr.f32.mxu0 %v8347_v5  ;;  %v4643_v14 = vand.u32 4294901760, %v4642_v50 }
 0x509   :  { %5789 = vmatmul.mubr.f32.gmra.mrb[22].mxu1 %v4588_v18  ;;  %v9209_v18 = vand.u32 4294901760, %v4431_v39 }
 0x50a   :  { %5794 = vmatprep.mubr.f32.mxu1 %v8347_v5  ;;  %4600 = vmatmul.mubr.f32.gmra.mrb[24].mxu0 %v4599_v3 }
 0x50b   :  { %4605 = vmatprep.mubr.f32.mxu0 %v8347_v5  ;;  %v9226_v45 = vsub.f32 %v4431_v39, %v9209_v18 }
 0x50d   :  { %5800 = vmatmul.mubr.f32.gmra.mrb[24].mxu1 %v4599_v3  ;;  %v9223_v3 = vand.u32 4294901760, %v4434_v19  ;;  %v9245_v53 = vand.u32 4294901760, %v9226_v45 }
 0x50e   :  { %5805 = vmatprep.mubr.f32.mxu1 %v8347_v5  ;;  %4611 = vmatmul.mubr.f32.gmra.mrb[26].mxu0 %v4610_v26 }
 0x50f   :  { %4616 = vmatprep.mubr.f32.mxu0 %v8347_v5  ;;  %v9238_v35 = vsub.f32 %v4434_v19, %v9223_v3  ;;  %v4654_v19 = vand.u32 4294901760, %v4653_v1 }
 0x511   :  { %5811 = vmatmul.mubr.f32.gmra.mrb[26].mxu1 %v4610_v26  ;;  %v4437_v26 = vsel %vm31_vm1, %v8884_v49, 0  ;;  %v9255_v50 = vand.u32 4294901760, %v9238_v35 }
 0x512   :  { %5816 = vmatprep.mubr.f32.mxu1 %v8347_v5  ;;  %4622 = vmatmul.mubr.f32.gmra.mrb[28].mxu0 %v4621_v2  ;;  %v9240_v39 = vand.u32 4294901760, %v4437_v26 }
 0x513   :  { %4627 = vmatprep.mubr.f32.mxu0 %v8347_v5  ;;  %v4675_v59 = vsub.f32 %v9238_v35, %v9255_v50 }
 0x514   :  { %v9250_v49 = vsub.f32 %v4437_v26, %v9240_v39 }
 0x515   :  { %5822 = vmatmul.mubr.f32.gmra.mrb[28].mxu1 %v4621_v2  ;;  %v4664_v2 = vsub.f32 %v9226_v45, %v9245_v53  ;;  %v4676_v1 = vand.u32 4294901760, %v4675_v59  ;;  %v10146_v59 = vand.u32 4294901760, %v9071_v21 }
 0x516   :  { %5827 = vmatprep.mubr.f32.mxu1 %v8347_v5  ;;  %4633 = vmatmul.mubr.f32.gmra.mrb[30].mxu0 %v4632_v37  ;;  %v9262_v26 = vand.u32 4294901760, %v9250_v49 }
 0x517   :  { %4638 = vmatprep.mubr.f32.mxu0 %v8347_v5 }
 0x519   :  { %5833 = vmatmul.mubr.f32.gmra.mrb[30].mxu1 %v4632_v37  ;;  %v4665_v37 = vand.u32 4294901760, %v4664_v2 }
 0x51a   :  { %5838 = vmatprep.mubr.f32.mxu1 %v8347_v5  ;;  %4644 = vmatmul.mubr.f32.gmra.mrb[32].mxu0 %v4643_v14 }
 0x51b   :  { %4649 = vmatprep.mubr.f32.mxu0 %v8347_v5 }
 0x51d   :  { %5844 = vmatmul.mubr.f32.gmra.mrb[32].mxu1 %v4643_v14  ;;  %v4686_v14 = vsub.f32 %v9250_v49, %v9262_v26 }
 0x51e   :  { %5849 = vmatprep.mubr.f32.mxu1 %v8347_v5  ;;  %4655 = vmatmul.mubr.f32.gmra.mrb[34].mxu0 %v4654_v19 }
 0x51f   :  { %4660 = vmatprep.mubr.f32.mxu0 %v8347_v5  ;;  %v4687_v2 = vand.u32 4294901760, %v4686_v14 }
 0x521   :  { %5855 = vmatmul.mubr.f32.gmra.mrb[34].mxu1 %v4654_v19  ;;  %v10147_v19 = vand.u32 4294901760, %v9084_v8 }
 0x522   :  { %5860 = vmatprep.mubr.f32.mxu1 %v8347_v5  ;;  %4666 = vmatmul.mubr.f32.gmra.mrb[36].mxu0 %v4665_v37 }
 0x523   :  { %4671 = vmatprep.mubr.f32.mxu0 %v8347_v5 }
 0x525   :  { %5866 = vmatmul.mubr.f32.gmra.mrb[36].mxu1 %v4665_v37 }
 0x526   :  { %5871 = vmatprep.mubr.f32.mxu1 %v8347_v5  ;;  %4677 = vmatmul.mubr.f32.gmra.mrb[38].mxu0 %v4676_v1 }
 0x527   :  { %4682 = vmatprep.mubr.f32.mxu0 %v8347_v5 }
 0x529   :  { %5877 = vmatmul.mubr.f32.gmra.mrb[38].mxu1 %v4676_v1 }
 0x52a   :  { %5882 = vmatprep.mubr.f32.mxu1 %v8347_v5  ;;  %4688 = vmatmul.mubr.f32.gmra.mrb[40].mxu0 %v4687_v2 }
 0x52b   :  { %4768 = vmatprep.mubr.f32.mxu0 %v8347_v5 }
 0x52d   :  { %5888 = vmatmul.mubr.f32.gmra.mrb[40].mxu1 %v4687_v2 }
 0x52e   :  { %5968 = vmatprep.mubr.f32.mxu1 %v8347_v5  ;;  %4770 = vmatmul.mubr.f32.vlgmr.msra.gmra.mrb[10].mxu0 %v8970_v56 }
 0x52f   :  { %4886 = vmatpush1.msra.mxu0 %v9056_v0  ;;  %4775 = vmatprep.mubr.f32.mxu0 %v8347_v5 }
 0x530   :  { %5079 = vmatprep.subr.mxu0 %v9041_v62 }
 0x531   :  { %5970 = vmatmul.mubr.f32.vlgmr.msra.gmra.mrb[10].mxu1 %v8970_v56 }
 0x532   :  { %6086 = vmatpush1.msra.mxu1 %v9080_v38  ;;  %5975 = vmatprep.mubr.f32.mxu1 %v8347_v5 }
 0x533   :  { %6279 = vmatprep.subr.mxu1 %v9063_v34  ;;  %4777 = vmatmul.mubr.f32.gmra.mrb[12].mxu0 %v8993_v23 }
 0x534   :  { %4782 = vmatprep.mubr.f32.mxu0 %v8347_v5 }
 0x535   :  { %5977 = vmatmul.mubr.f32.gmra.mrb[12].mxu1 %v8993_v23 }
 0x536   :  { %5982 = vmatprep.mubr.f32.mxu1 %v8347_v5 }
 0x537   :  { %4784 = vmatmul.mubr.f32.gmra.mrb[14].mxu0 %v9007_v42 }
 0x538   :  { %4789 = vmatprep.mubr.f32.mxu0 %v8347_v5 }
 0x539   :  { %5984 = vmatmul.mubr.f32.gmra.mrb[14].mxu1 %v9007_v42 }
 0x53a   :  { %5989 = vmatprep.mubr.f32.mxu1 %v8347_v5 }
 0x53b   :  { %4791 = vmatmul.mubr.f32.gmra.mrb[16].mxu0 %v9019_v51 }
 0x53c   :  { %4796 = vmatprep.mubr.f32.mxu0 %v8347_v5 }
 0x53d   :  { %5991 = vmatmul.mubr.f32.gmra.mrb[16].mxu1 %v9019_v51 }
 0x53e   :  { %5996 = vmatprep.mubr.f32.mxu1 %v8347_v5 }
 0x53f   :  { %4798 = vmatmul.mubr.f32.gmra.mrb[18].mxu0 %v9048_v15 }
 0x540   :  { %4803 = vmatprep.mubr.f32.mxu0 %v8347_v5 }
 0x541   :  { %5998 = vmatmul.mubr.f32.gmra.mrb[18].mxu1 %v9048_v15 }
 0x542   :  { %6003 = vmatprep.mubr.f32.mxu1 %v8347_v5 }
 0x543   :  { %4805 = vmatmul.mubr.f32.gmra.mrb[20].mxu0 %v9076_v7 }
 0x544   :  { %4810 = vmatprep.mubr.f32.mxu0 %v8347_v5 }
 0x545   :  { %6005 = vmatmul.mubr.f32.gmra.mrb[20].mxu1 %v9076_v7 }
 0x546   :  { %6010 = vmatprep.mubr.f32.mxu1 %v8347_v5 }
 0x547   :  { %4812 = vmatmul.mubr.f32.gmra.mrb[22].mxu0 %v9096_v11 }
 0x548   :  { %4817 = vmatprep.mubr.f32.mxu0 %v8347_v5 }
 0x549   :  { %6012 = vmatmul.mubr.f32.gmra.mrb[22].mxu1 %v9096_v11 }
 0x54a   :  { %6017 = vmatprep.mubr.f32.mxu1 %v8347_v5 }
 0x54b   :  { %4819 = vmatmul.mubr.f32.gmra.mrb[24].mxu0 %v9123_v20 }
 0x54c   :  { %4824 = vmatprep.mubr.f32.mxu0 %v8347_v5 }
 0x54d   :  { %6019 = vmatmul.mubr.f32.gmra.mrb[24].mxu1 %v9123_v20 }
 0x54e   :  { %6024 = vmatprep.mubr.f32.mxu1 %v8347_v5 }
 0x54f   :  { %4826 = vmatmul.mubr.f32.gmra.mrb[26].mxu0 %v9138_v30 }
 0x550   :  { %4831 = vmatprep.mubr.f32.mxu0 %v8347_v5 }
 0x551   :  { %6026 = vmatmul.mubr.f32.gmra.mrb[26].mxu1 %v9138_v30 }
 0x552   :  { %6031 = vmatprep.mubr.f32.mxu1 %v8347_v5 }
 0x553   :  { %4833 = vmatmul.mubr.f32.gmra.mrb[28].mxu0 %v9153_v16 }
 0x554   :  { %4838 = vmatprep.mubr.f32.mxu0 %v8347_v5 }
 0x555   :  { %6033 = vmatmul.mubr.f32.gmra.mrb[28].mxu1 %v9153_v16 }
 0x556   :  { %6038 = vmatprep.mubr.f32.mxu1 %v8347_v5 }
 0x557   :  { %4840 = vmatmul.mubr.f32.gmra.mrb[30].mxu0 %v9167_v52 }
 0x558   :  { %4845 = vmatprep.mubr.f32.mxu0 %v8347_v5 }
 0x559   :  { %6040 = vmatmul.mubr.f32.gmra.mrb[30].mxu1 %v9167_v52 }
 0x55a   :  { %6045 = vmatprep.mubr.f32.mxu1 %v8347_v5 }
 0x55b   :  { %4847 = vmatmul.mubr.f32.gmra.mrb[32].mxu0 %v9181_v58 }
 0x55c   :  { %4852 = vmatprep.mubr.f32.mxu0 %v8347_v5 }
 0x55d   :  { %6047 = vmatmul.mubr.f32.gmra.mrb[32].mxu1 %v9181_v58 }
 0x55e   :  { %6052 = vmatprep.mubr.f32.mxu1 %v8347_v5 }
 0x55f   :  { %4854 = vmatmul.mubr.f32.gmra.mrb[34].mxu0 %v9195_v43 }
 0x560   :  { %4859 = vmatprep.mubr.f32.mxu0 %v8347_v5 }
 0x561   :  { %6054 = vmatmul.mubr.f32.gmra.mrb[34].mxu1 %v9195_v43 }
 0x562   :  { %6059 = vmatprep.mubr.f32.mxu1 %v8347_v5 }
 0x563   :  { %4861 = vmatmul.mubr.f32.gmra.mrb[36].mxu0 %v9209_v18 }
 0x564   :  { %4866 = vmatprep.mubr.f32.mxu0 %v8347_v5 }
 0x565   :  { %6061 = vmatmul.mubr.f32.gmra.mrb[36].mxu1 %v9209_v18 }
 0x566   :  { %6066 = vmatprep.mubr.f32.mxu1 %v8347_v5 }
 0x567   :  { %4868 = vmatmul.mubr.f32.gmra.mrb[38].mxu0 %v9223_v3 }
 0x568   :  { %4873 = vmatprep.mubr.f32.mxu0 %v8347_v5 }
 0x569   :  { %6068 = vmatmul.mubr.f32.gmra.mrb[38].mxu1 %v9223_v3 }
 0x56a   :  { %6073 = vmatprep.mubr.f32.mxu1 %v8347_v5 }
 0x56b   :  { %4875 = vmatmul.mubr.f32.gmra.mrb[40].mxu0 %v9240_v39 }
 0x56c   :  { %4949 = vmatprep.mubr.f32.mxu0 %v8347_v5 }
 0x56d   :  { %6075 = vmatmul.mubr.f32.gmra.mrb[40].mxu1 %v9240_v39 }
 0x56e   :  { %6149 = vmatprep.mubr.f32.mxu1 %v8347_v5 }
 0x56f   :  { %4952 = vmatmul.mubr.f32.vlgmr.msra.gmra.mrb[10].mxu0 %v8996_v10 }
 0x570   :  { %5081 = vmatpush1.msra.mxu0 %v9036_v60  ;;  %4957 = vmatprep.mubr.f32.mxu0 %v8347_v5 }
 0x571   :  { %6152 = vmatmul.mubr.f32.vlgmr.msra.gmra.mrb[10].mxu1 %v8996_v10  ;;  %5292 = vmatprep.subr.mxu0 %v10146_v59  ;;  %v10148_v10 = vand.u32 4294901760, %v9056_v0 }
 0x572   :  { %6281 = vmatpush1.msra.mxu1 %v9066_v4  ;;  %6157 = vmatprep.mubr.f32.mxu1 %v8347_v5 }
 0x573   :  { %6492 = vmatprep.subr.mxu1 %v10147_v19  ;;  %4960 = vmatmul.mubr.f32.gmra.mrb[12].mxu0 %v9002_v27 }
 0x574   :  { %4965 = vmatprep.mubr.f32.mxu0 %v8347_v5 }
 0x575   :  { %6160 = vmatmul.mubr.f32.gmra.mrb[12].mxu1 %v9002_v27  ;;  %v10149_v27 = vand.u32 4294901760, %v9080_v38 }
 0x576   :  { %6165 = vmatprep.mubr.f32.mxu1 %v8347_v5 }
 0x577   :  { %4968 = vmatmul.mubr.f32.gmra.mrb[14].mxu0 %v9025_v57 }
 0x578   :  { %4973 = vmatprep.mubr.f32.mxu0 %v8347_v5 }
 0x579   :  { %6168 = vmatmul.mubr.f32.gmra.mrb[14].mxu1 %v9025_v57  ;;  %v4359_v57 = vmul.f32 %v9012_v54, %v9012_v54 }
 0x57a   :  { %6173 = vmatprep.mubr.f32.mxu1 %v8347_v5 }
 0x57b   :  { %4976 = vmatmul.mubr.f32.gmra.mrb[16].mxu0 %v9046_v28  ;;  %v4363_v0 = vsel %vm34_vm0, %v4359_v57, 0.0 }
 0x57c   :  { %4981 = vmatprep.mubr.f32.mxu0 %v8347_v5  ;;  %v4364_v54 = vrot.slane %v4363_v0, 4 }
 0x57d   :  { %6176 = vmatmul.mubr.f32.gmra.mrb[16].mxu1 %v9046_v28  ;;  %v10152_v28 = vld [vmem:[#allocation7_spill] sm:$0xff] }
 0x57e   :  { %6181 = vmatprep.mubr.f32.mxu1 %v8347_v5 }
 0x57f   :  { %4984 = vmatmul.mubr.f32.gmra.mrb[18].mxu0 %v9074_v46 }
 0x580   :  { %4989 = vmatprep.mubr.f32.mxu0 %v8347_v5 }
 0x581   :  { %6184 = vmatmul.mubr.f32.gmra.mrb[18].mxu1 %v9074_v46 }
 0x582   :  { %6189 = vmatprep.mubr.f32.mxu1 %v8347_v5 }
 0x583   :  { %4992 = vmatmul.mubr.f32.gmra.mrb[20].mxu0 %v9106_v48 }
 0x584   :  { %4997 = vmatprep.mubr.f32.mxu0 %v8347_v5 }
 0x585   :  { %6192 = vmatmul.mubr.f32.gmra.mrb[20].mxu1 %v9106_v48 }
 0x586   :  { %6197 = vmatprep.mubr.f32.mxu1 %v8347_v5 }
 0x587   :  { %5000 = vmatmul.mubr.f32.gmra.mrb[22].mxu0 %v9128_v63 }
 0x588   :  { %5005 = vmatprep.mubr.f32.mxu0 %v8347_v5 }
 0x589   :  { %6200 = vmatmul.mubr.f32.gmra.mrb[22].mxu1 %v9128_v63 }
 0x58a   :  { %6205 = vmatprep.mubr.f32.mxu1 %v8347_v5 }
 0x58b   :  { %5008 = vmatmul.mubr.f32.gmra.mrb[24].mxu0 %v9144_v29 }
 0x58c   :  { %5013 = vmatprep.mubr.f32.mxu0 %v8347_v5 }
 0x58d   :  { %6208 = vmatmul.mubr.f32.gmra.mrb[24].mxu1 %v9144_v29 }
 0x58e   :  { %6213 = vmatprep.mubr.f32.mxu1 %v8347_v5 }
 0x58f   :  { %5016 = vmatmul.mubr.f32.gmra.mrb[26].mxu0 %v9158_v25 }
 0x590   :  { %5021 = vmatprep.mubr.f32.mxu0 %v8347_v5 }
 0x591   :  { %6216 = vmatmul.mubr.f32.gmra.mrb[26].mxu1 %v9158_v25 }
 0x592   :  { %6221 = vmatprep.mubr.f32.mxu1 %v8347_v5 }
 0x593   :  { %5024 = vmatmul.mubr.f32.gmra.mrb[28].mxu0 %v9172_v22 }
 0x594   :  { %5029 = vmatprep.mubr.f32.mxu0 %v8347_v5 }
 0x595   :  { %6224 = vmatmul.mubr.f32.gmra.mrb[28].mxu1 %v9172_v22 }
 0x596   :  { %6229 = vmatprep.mubr.f32.mxu1 %v8347_v5 }
 0x597   :  { %5032 = vmatmul.mubr.f32.gmra.mrb[30].mxu0 %v9186_v24 }
 0x598   :  { %5037 = vmatprep.mubr.f32.mxu0 %v8347_v5 }
 0x599   :  { %6232 = vmatmul.mubr.f32.gmra.mrb[30].mxu1 %v9186_v24 }
 0x59a   :  { %6237 = vmatprep.mubr.f32.mxu1 %v8347_v5 }
 0x59b   :  { %5040 = vmatmul.mubr.f32.gmra.mrb[32].mxu0 %v9200_v33 }
 0x59c   :  { %5045 = vmatprep.mubr.f32.mxu0 %v8347_v5 }
 0x59d   :  { %6240 = vmatmul.mubr.f32.gmra.mrb[32].mxu1 %v9200_v33 }
 0x59e   :  { %6245 = vmatprep.mubr.f32.mxu1 %v8347_v5 }
 0x59f   :  { %5048 = vmatmul.mubr.f32.gmra.mrb[34].mxu0 %v9214_v36 }
 0x5a0   :  { %5053 = vmatprep.mubr.f32.mxu0 %v8347_v5 }
 0x5a1   :  { %6248 = vmatmul.mubr.f32.gmra.mrb[34].mxu1 %v9214_v36 }
 0x5a2   :  { %6253 = vmatprep.mubr.f32.mxu1 %v8347_v5 }
 0x5a3   :  { %5056 = vmatmul.mubr.f32.gmra.mrb[36].mxu0 %v9226_v45 }
 0x5a4   :  { %5061 = vmatprep.mubr.f32.mxu0 %v8347_v5 }
 0x5a5   :  { %6256 = vmatmul.mubr.f32.gmra.mrb[36].mxu1 %v9226_v45 }
 0x5a6   :  { %6261 = vmatprep.mubr.f32.mxu1 %v8347_v5 }
 0x5a7   :  { %5064 = vmatmul.mubr.f32.gmra.mrb[38].mxu0 %v9238_v35 }
 0x5a8   :  { %5069 = vmatprep.mubr.f32.mxu0 %v8347_v5 }
 0x5a9   :  { %6264 = vmatmul.mubr.f32.gmra.mrb[38].mxu1 %v9238_v35 }
 0x5aa   :  { %6269 = vmatprep.mubr.f32.mxu1 %v8347_v5 }
 0x5ab   :  { %5072 = vmatmul.mubr.f32.gmra.mrb[40].mxu0 %v9250_v49 }
 0x5ac   :  { %5144 = vmatprep.mubr.f32.mxu0 %v8347_v5 }
 0x5ad   :  { %6272 = vmatmul.mubr.f32.gmra.mrb[40].mxu1 %v9250_v49 }
 0x5ae   :  { %6344 = vmatprep.mubr.f32.mxu1 %v8347_v5 }
 0x5af   :  { %5148 = vmatmul.mubr.f32.vlgmr.msra.gmra.mrb[10].mxu0 %v9005_v9 }
 0x5b0   :  { %5296 = vmatpush1.msra.mxu0 %v10148_v10  ;;  %5153 = vmatprep.mubr.f32.mxu0 %v8347_v5 }
 0x5b1   :  { %6348 = vmatmul.mubr.f32.vlgmr.msra.gmra.mrb[10].mxu1 %v9005_v9  ;;  %5473 = vmatprep.subr.mxu0 %v9041_v62 }
 0x5b2   :  { %6496 = vmatpush1.msra.mxu1 %v10149_v27  ;;  %6353 = vmatprep.mubr.f32.mxu1 %v8347_v5 }
 0x5b3   :  { %6673 = vmatprep.subr.mxu1 %v9063_v34  ;;  %5157 = vmatmul.mubr.f32.gmra.mrb[12].mxu0 %v9017_v32 }
 0x5b4   :  { %5162 = vmatprep.mubr.f32.mxu0 %v8347_v5 }
 0x5b5   :  { %6357 = vmatmul.mubr.f32.gmra.mrb[12].mxu1 %v9017_v32 }
 0x5b6   :  { %6362 = vmatprep.mubr.f32.mxu1 %v8347_v5 }
 0x5b7   :  { %5166 = vmatmul.mubr.f32.gmra.mrb[14].mxu0 %v9061_v61 }
 0x5b8   :  { %5171 = vmatprep.mubr.f32.mxu0 %v8347_v5 }
 0x5b9   :  { %6366 = vmatmul.mubr.f32.gmra.mrb[14].mxu1 %v9061_v61 }
 0x5ba   :  { %6371 = vmatprep.mubr.f32.mxu1 %v8347_v5 }
 0x5bb   :  { %5175 = vmatmul.mubr.f32.gmra.mrb[16].mxu0 %v9092_v44 }
 0x5bc   :  { %5180 = vmatprep.mubr.f32.mxu0 %v8347_v5 }
 0x5bd   :  { %6375 = vmatmul.mubr.f32.gmra.mrb[16].mxu1 %v9092_v44  ;;  %v4365_v44 = vadd.f32 %v4364_v54, %v4363_v0 }
 0x5be   :  { %6380 = vmatprep.mubr.f32.mxu1 %v8347_v5 }
 0x5bf   :  { %5184 = vmatmul.mubr.f32.gmra.mrb[18].mxu0 %v9120_v55 }
 0x5c0   :  { %5189 = vmatprep.mubr.f32.mxu0 %v8347_v5 }
 0x5c1   :  { %6384 = vmatmul.mubr.f32.gmra.mrb[18].mxu1 %v9120_v55  ;;  %v4366_v55 = vrot.slane %v4365_v44, 2 }
 0x5c2   :  { %6389 = vmatprep.mubr.f32.mxu1 %v8347_v5 }
 0x5c3   :  { %5193 = vmatmul.mubr.f32.gmra.mrb[20].mxu0 %v9133_v6 }
 0x5c4   :  { %5198 = vmatprep.mubr.f32.mxu0 %v8347_v5 }
 0x5c5   :  { %6393 = vmatmul.mubr.f32.gmra.mrb[20].mxu1 %v9133_v6 }
 0x5c6   :  { %6398 = vmatprep.mubr.f32.mxu1 %v8347_v5 }
 0x5c7   :  { %5202 = vmatmul.mubr.f32.gmra.mrb[22].mxu0 %v9149_v12 }
 0x5c8   :  { %5207 = vmatprep.mubr.f32.mxu0 %v8347_v5 }
 0x5c9   :  { %6402 = vmatmul.mubr.f32.gmra.mrb[22].mxu1 %v9149_v12  ;;  %v4367_v12 = vadd.f32 %v4366_v55, %v4365_v44 }
 0x5ca   :  { %6407 = vmatprep.mubr.f32.mxu1 %v8347_v5 }
 0x5cb   :  { %5211 = vmatmul.mubr.f32.gmra.mrb[24].mxu0 %v9163_v31 }
 0x5cc   :  { %5216 = vmatprep.mubr.f32.mxu0 %v8347_v5 }
 0x5cd   :  { %6411 = vmatmul.mubr.f32.gmra.mrb[24].mxu1 %v9163_v31 }
 0x5ce   :  { %6416 = vmatprep.mubr.f32.mxu1 %v8347_v5 }
 0x5cf   :  { %5220 = vmatmul.mubr.f32.gmra.mrb[26].mxu0 %v9177_v17 }
 0x5d0   :  { %5225 = vmatprep.mubr.f32.mxu0 %v8347_v5 }
 0x5d1   :  { %6420 = vmatmul.mubr.f32.gmra.mrb[26].mxu1 %v9177_v17  ;;  %v4368_v17 = vrot.slane %v4367_v12, 1 }
 0x5d2   :  { %6425 = vmatprep.mubr.f32.mxu1 %v8347_v5 }
 0x5d3   :  { %5229 = vmatmul.mubr.f32.gmra.mrb[28].mxu0 %v9191_v41 }
 0x5d4   :  { %5234 = vmatprep.mubr.f32.mxu0 %v8347_v5 }
 0x5d5   :  { %6429 = vmatmul.mubr.f32.gmra.mrb[28].mxu1 %v9191_v41 }
 0x5d6   :  { %6434 = vmatprep.mubr.f32.mxu1 %v8347_v5 }
 0x5d7   :  { %5238 = vmatmul.mubr.f32.gmra.mrb[30].mxu0 %v9205_v13 }
 0x5d8   :  { %5243 = vmatprep.mubr.f32.mxu0 %v8347_v5 }
 0x5d9   :  { %6438 = vmatmul.mubr.f32.gmra.mrb[30].mxu1 %v9205_v13 }
 0x5da   :  { %6443 = vmatprep.mubr.f32.mxu1 %v8347_v5 }
 0x5db   :  { %5247 = vmatmul.mubr.f32.gmra.mrb[32].mxu0 %v9219_v40 }
 0x5dc   :  { %5252 = vmatprep.mubr.f32.mxu0 %v8347_v5 }
 0x5dd   :  { %6447 = vmatmul.mubr.f32.gmra.mrb[32].mxu1 %v9219_v40 }
 0x5de   :  { %6452 = vmatprep.mubr.f32.mxu1 %v8347_v5 }
 0x5df   :  { %5256 = vmatmul.mubr.f32.gmra.mrb[34].mxu0 %v9231_v47 }
 0x5e0   :  { %5261 = vmatprep.mubr.f32.mxu0 %v8347_v5 }
 0x5e1   :  { %6456 = vmatmul.mubr.f32.gmra.mrb[34].mxu1 %v9231_v47 }
 0x5e2   :  { %6461 = vmatprep.mubr.f32.mxu1 %v8347_v5 }
 0x5e3   :  { %5265 = vmatmul.mubr.f32.gmra.mrb[36].mxu0 %v9245_v53 }
 0x5e4   :  { %5270 = vmatprep.mubr.f32.mxu0 %v8347_v5 }
 0x5e5   :  { %6465 = vmatmul.mubr.f32.gmra.mrb[36].mxu1 %v9245_v53  ;;  %v10150_v53 = vld [vmem:[#allocation5_spill] sm:$0xff] }
 0x5e6   :  { %6470 = vmatprep.mubr.f32.mxu1 %v8347_v5 }
 0x5e7   :  { %5274 = vmatmul.mubr.f32.gmra.mrb[38].mxu0 %v9255_v50 }
 0x5e8   :  { %5279 = vmatprep.mubr.f32.mxu0 %v8347_v5 }
 0x5e9   :  { %6474 = vmatmul.mubr.f32.gmra.mrb[38].mxu1 %v9255_v50 }
 0x5ea   :  { %6479 = vmatprep.mubr.f32.mxu1 %v8347_v5 }
 0x5eb   :  { %5283 = vmatmul.mubr.f32.gmra.mrb[40].mxu0 %v9262_v26 }
 0x5ec   :  { %5359 = vmatprep.mubr.f32.mxu0 %v8347_v5 }
 0x5ed   :  { %6483 = vmatmul.mubr.f32.gmra.mrb[40].mxu1 %v9262_v26 }
 0x5ee   :  { %6559 = vmatprep.mubr.f32.mxu1 %v8347_v5 }
 0x5ef   :  { %5361 = vmatmul.mubr.f32.vlgmr.msra.gmra.mrb[10].mxu0 %v8970_v56 }
 0x5f0   :  { %5475 = vmatpush1.msra.mxu0 %v9036_v60  ;;  %5366 = vmatprep.mubr.f32.mxu0 %v8347_v5  ;;  %v10151_v60 = vld [vmem:[#allocation6_spill] sm:$0xff] }
 0x5f1   :  { %6561 = vmatmul.mubr.f32.vlgmr.msra.gmra.mrb[10].mxu1 %v8970_v56  ;;  %v4361_v62 = vmul.f32 %v10151_v60, %v10151_v60 }
 0x5f2   :  { %6675 = vmatpush1.msra.mxu1 %v9066_v4  ;;  %6566 = vmatprep.mubr.f32.mxu1 %v8347_v5 }
 0x5f3   :  { %5368 = vmatmul.mubr.f32.gmra.mrb[12].mxu0 %v8993_v23  ;;  %v4377_v21 = vsel %vm34_vm0, %v4361_v62, 0.0 }
 0x5f4   :  { %5373 = vmatprep.mubr.f32.mxu0 %v8347_v5  ;;  %v4378_v38 = vrot.slane %v4377_v21, 4 }
 0x5f5   :  { %6568 = vmatmul.mubr.f32.gmra.mrb[12].mxu1 %v8993_v23 }
 0x5f6   :  { %6573 = vmatprep.mubr.f32.mxu1 %v8347_v5 }
 0x5f7   :  { %5375 = vmatmul.mubr.f32.gmra.mrb[14].mxu0 %v9007_v42 }
 0x5f8   :  { %5380 = vmatprep.mubr.f32.mxu0 %v8347_v5 }
 0x5f9   :  { %6575 = vmatmul.mubr.f32.gmra.mrb[14].mxu1 %v9007_v42 }
 0x5fa   :  { %6580 = vmatprep.mubr.f32.mxu1 %v8347_v5 }
 0x5fb   :  { %5382 = vmatmul.mubr.f32.gmra.mrb[16].mxu0 %v9019_v51 }
 0x5fc   :  { %5387 = vmatprep.mubr.f32.mxu0 %v8347_v5 }
 0x5fd   :  { %6582 = vmatmul.mubr.f32.gmra.mrb[16].mxu1 %v9019_v51 }
 0x5fe   :  { %6587 = vmatprep.mubr.f32.mxu1 %v8347_v5 }
 0x5ff   :  { %5389 = vmatmul.mubr.f32.gmra.mrb[18].mxu0 %v9048_v15 }
 0x600   :  { %5394 = vmatprep.mubr.f32.mxu0 %v8347_v5 }
 0x601   :  { %6589 = vmatmul.mubr.f32.gmra.mrb[18].mxu1 %v9048_v15 }
 0x602   :  { %6594 = vmatprep.mubr.f32.mxu1 %v8347_v5 }
 0x603   :  { %5396 = vmatmul.mubr.f32.gmra.mrb[20].mxu0 %v9076_v7 }
 0x604   :  { %5401 = vmatprep.mubr.f32.mxu0 %v8347_v5 }
 0x605   :  { %6596 = vmatmul.mubr.f32.gmra.mrb[20].mxu1 %v9076_v7 }
 0x606   :  { %6601 = vmatprep.mubr.f32.mxu1 %v8347_v5 }
 0x607   :  { %5403 = vmatmul.mubr.f32.gmra.mrb[22].mxu0 %v9096_v11 }
 0x608   :  { %5408 = vmatprep.mubr.f32.mxu0 %v8347_v5 }
 0x609   :  { %6603 = vmatmul.mubr.f32.gmra.mrb[22].mxu1 %v9096_v11 }
 0x60a   :  { %6608 = vmatprep.mubr.f32.mxu1 %v8347_v5 }
 0x60b   :  { %5410 = vmatmul.mubr.f32.gmra.mrb[24].mxu0 %v9123_v20 }
 0x60c   :  { %5415 = vmatprep.mubr.f32.mxu0 %v8347_v5 }
 0x60d   :  { %6610 = vmatmul.mubr.f32.gmra.mrb[24].mxu1 %v9123_v20 }
 0x60e   :  { %6615 = vmatprep.mubr.f32.mxu1 %v8347_v5 }
 0x60f   :  { %5417 = vmatmul.mubr.f32.gmra.mrb[26].mxu0 %v9138_v30 }
 0x610   :  { %5422 = vmatprep.mubr.f32.mxu0 %v8347_v5 }
 0x611   :  { %6617 = vmatmul.mubr.f32.gmra.mrb[26].mxu1 %v9138_v30 }
 0x612   :  { %6622 = vmatprep.mubr.f32.mxu1 %v8347_v5 }
 0x613   :  { %5424 = vmatmul.mubr.f32.gmra.mrb[28].mxu0 %v9153_v16 }
 0x614   :  { %5429 = vmatprep.mubr.f32.mxu0 %v8347_v5 }
 0x615   :  { %6624 = vmatmul.mubr.f32.gmra.mrb[28].mxu1 %v9153_v16 }
 0x616   :  { %6629 = vmatprep.mubr.f32.mxu1 %v8347_v5 }
 0x617   :  { %5431 = vmatmul.mubr.f32.gmra.mrb[30].mxu0 %v9167_v52 }
 0x618   :  { %5436 = vmatprep.mubr.f32.mxu0 %v8347_v5 }
 0x619   :  { %6631 = vmatmul.mubr.f32.gmra.mrb[30].mxu1 %v9167_v52 }
 0x61a   :  { %6636 = vmatprep.mubr.f32.mxu1 %v8347_v5 }
 0x61b   :  { %5438 = vmatmul.mubr.f32.gmra.mrb[32].mxu0 %v9181_v58 }
 0x61c   :  { %5443 = vmatprep.mubr.f32.mxu0 %v8347_v5 }
 0x61d   :  { %6638 = vmatmul.mubr.f32.gmra.mrb[32].mxu1 %v9181_v58 }
 0x61e   :  { %6643 = vmatprep.mubr.f32.mxu1 %v8347_v5 }
 0x61f   :  { %5445 = vmatmul.mubr.f32.gmra.mrb[34].mxu0 %v9195_v43 }
 0x620   :  { %5450 = vmatprep.mubr.f32.mxu0 %v8347_v5 }
 0x621   :  { %6645 = vmatmul.mubr.f32.gmra.mrb[34].mxu1 %v9195_v43 }
 0x622   :  { %6650 = vmatprep.mubr.f32.mxu1 %v8347_v5 }
 0x623   :  { %5452 = vmatmul.mubr.f32.gmra.mrb[36].mxu0 %v9209_v18 }
 0x624   :  { %5457 = vmatprep.mubr.f32.mxu0 %v8347_v5 }
 0x625   :  { %6652 = vmatmul.mubr.f32.gmra.mrb[36].mxu1 %v9209_v18 }
 0x626   :  { %6657 = vmatprep.mubr.f32.mxu1 %v8347_v5 }
 0x627   :  { %5459 = vmatmul.mubr.f32.gmra.mrb[38].mxu0 %v9223_v3 }
 0x628   :  { %5464 = vmatprep.mubr.f32.mxu0 %v8347_v5 }
 0x629   :  { %6659 = vmatmul.mubr.f32.gmra.mrb[38].mxu1 %v9223_v3 }
 0x62a   :  { %6664 = vmatprep.mubr.f32.mxu1 %v8347_v5 }
 0x62b   :  { %5466 = vmatmul.mubr.f32.gmra.mrb[40].mxu0 %v9240_v39 }
 0x62c   :  { %5538 = vmatprep.mubr.f32.mxu0 %v8347_v5 }
 0x62d   :  { %6666 = vmatmul.mubr.f32.gmra.mrb[40].mxu1 %v9240_v39 }
 0x62e   :  { %6738 = vmatprep.mubr.f32.mxu1 %v8347_v5 }
 0x62f   :  { %5540 = vmatmul.mubr.f32.vlgmr.msra.gmra.mrb[10].mxu0 %v8970_v56 }
 0x630   :  { %5545 = vmatprep.mubr.f32.mxu0 %v8347_v5 }
 0x631   :  { %6740 = vmatmul.mubr.f32.vlgmr.msra.gmra.mrb[10].mxu1 %v8970_v56  ;;  %v9610_v56 = vpop.permute.xlu1 %6856 }
 0x632   :  { %6745 = vmatprep.mubr.f32.mxu1 %v8347_v5 }
 0x633   :  { %5547 = vmatmul.mubr.f32.gmra.mrb[12].mxu0 %v8993_v23 }
 0x634   :  { %5552 = vmatprep.mubr.f32.mxu0 %v8347_v5 }
 0x635   :  { %6747 = vmatmul.mubr.f32.gmra.mrb[12].mxu1 %v8993_v23  ;;  %v6853_v23 = vpop.permute.xlu0 %6852  ;;  %v9612_v9 = vpop.permute.xlu1 %6860 }
 0x636   :  { %6752 = vmatprep.mubr.f32.mxu1 %v8347_v5 }
 0x637   :  { %5554 = vmatmul.mubr.f32.gmra.mrb[14].mxu0 %v9007_v42 }
 0x638   :  { %5559 = vmatprep.mubr.f32.mxu0 %v8347_v5 }
 0x639   :  { %6754 = vmatmul.mubr.f32.gmra.mrb[14].mxu1 %v9007_v42  ;;  %v9614_v42 = vpop.permute.xlu0 %6864  ;;  %v9616_v32 = vpop.permute.xlu1 %6868 }
 0x63a   :  { %6759 = vmatprep.mubr.f32.mxu1 %v8347_v5 }
 0x63b   :  { %5561 = vmatmul.mubr.f32.gmra.mrb[16].mxu0 %v9019_v51 }
 0x63c   :  { %5566 = vmatprep.mubr.f32.mxu0 %v8347_v5 }
 0x63d   :  { %6761 = vmatmul.mubr.f32.gmra.mrb[16].mxu1 %v9019_v51  ;;  %v9618_v51 = vpop.permute.xlu0 %6872  ;;  %v9629_v61 = vpop.permute.xlu1 %6876 }
 0x63e   :  { %6766 = vmatprep.mubr.f32.mxu1 %v8347_v5 }
 0x63f   :  { %5568 = vmatmul.mubr.f32.gmra.mrb[18].mxu0 %v9048_v15 }
 0x640   :  { %5573 = vmatprep.mubr.f32.mxu0 %v8347_v5 }
 0x641   :  { %6768 = vmatmul.mubr.f32.gmra.mrb[18].mxu1 %v9048_v15  ;;  %v4362_v15 = vmul.f32 %v10152_v28, %v10152_v28  ;;  %v9631_v34 = vpop.permute.xlu0 %6880  ;;  %v9636_v35 = vpop.permute.xlu1 %6884 }
 0x642   :  { %6773 = vmatprep.mubr.f32.mxu1 %v8347_v5 }
 0x643   :  { %5575 = vmatmul.mubr.f32.gmra.mrb[20].mxu0 %v9076_v7  ;;  %v4384_v46 = vsel %vm34_vm0, %v4362_v15, 0.0 }
 0x644   :  { %5580 = vmatprep.mubr.f32.mxu0 %v8347_v5  ;;  %v4385_v8 = vrot.slane %v4384_v46, 4 }
 0x645   :  { %6775 = vmatmul.mubr.f32.gmra.mrb[20].mxu1 %v9076_v7  ;;  %v9638_v40 = vpop.permute.xlu0 %6888  ;;  %v9640_v63 = vpop.permute.xlu1 %6892 }
 0x646   :  { %6780 = vmatprep.mubr.f32.mxu1 %v8347_v5  ;;  %v4386_v48 = vadd.f32 %v4385_v8, %v4384_v46 }
 0x647   :  { %5582 = vmatmul.mubr.f32.gmra.mrb[22].mxu0 %v9096_v11 }
 0x648   :  { %5587 = vmatprep.mubr.f32.mxu0 %v8347_v5  ;;  %v4387_v29 = vrot.slane %v4386_v48, 2 }
 0x649   :  { %6782 = vmatmul.mubr.f32.gmra.mrb[22].mxu1 %v9096_v11  ;;  %v4379_v11 = vadd.f32 %v4378_v38, %v4377_v21  ;;  %v9642_v6 = vpop.permute.xlu0 %6896 }
 0x64a   :  { %6787 = vmatprep.mubr.f32.mxu1 %v8347_v5  ;;  %v4388_v31 = vadd.f32 %v4387_v29, %v4386_v48 }
 0x64b   :  { %5589 = vmatmul.mubr.f32.gmra.mrb[24].mxu0 %v9123_v20 }
 0x64c   :  { %5594 = vmatprep.mubr.f32.mxu0 %v8347_v5  ;;  %v4389_v41 = vrot.slane %v4388_v31, 1 }
 0x64d   :  { %6789 = vmatmul.mubr.f32.gmra.mrb[24].mxu1 %v9123_v20  ;;  %v9646_v22 = vpop.permute.xlu0 %6904 }
 0x64e   :  { %6794 = vmatprep.mubr.f32.mxu1 %v8347_v5 }
 0x64f   :  { %5596 = vmatmul.mubr.f32.gmra.mrb[26].mxu0 %v9138_v30 }
 0x650   :  { %5601 = vmatprep.mubr.f32.mxu0 %v8347_v5 }
 0x651   :  { %6796 = vmatmul.mubr.f32.gmra.mrb[26].mxu1 %v9138_v30  ;;  %v4380_v30 = vrot.slane %v4379_v11, 2 }
 0x652   :  { %6801 = vmatprep.mubr.f32.mxu1 %v8347_v5 }
 0x653   :  { %5603 = vmatmul.mubr.f32.gmra.mrb[28].mxu0 %v9153_v16  ;;  %v4381_v25 = vadd.f32 %v4380_v30, %v4379_v11 }
 0x654   :  { %5608 = vmatprep.mubr.f32.mxu0 %v8347_v5 }
 0x655   :  { %6803 = vmatmul.mubr.f32.gmra.mrb[28].mxu1 %v9153_v16  ;;  %v4382_v24 = vrot.slane %v4381_v25, 1 }
 0x656   :  { %6808 = vmatprep.mubr.f32.mxu1 %v8347_v5 }
 0x657   :  { %5610 = vmatmul.mubr.f32.gmra.mrb[30].mxu0 %v9167_v52  ;;  %v9652_v36 = vadd.f32 %v4382_v24, %v4381_v25 }
 0x658   :  { %5615 = vmatprep.mubr.f32.mxu0 %v8347_v5 }
 0x659   :  { %6810 = vmatmul.mubr.f32.gmra.mrb[30].mxu1 %v9167_v52  ;;  %v9644_v52 = vpop.permute.xlu1 %6900  ;;  %v9681_v2 = vadd.f32 %v6853_v23, %v9652_v36  ;;  %v9698_v57 = vadd.f32 %v9610_v56, %v9652_v36  ;;  %v9730_v15 = vadd.f32 %v9614_v42, %v9652_v36  ;;  %v9746_v21 = vadd.f32 %v9616_v32, %v9652_v36 }
 0x65a   :  { %6815 = vmatprep.mubr.f32.mxu1 %v8347_v5  ;;  %v9778_v44 = vadd.f32 %v9629_v61, %v9652_v36  ;;  %v9794_v48 = vadd.f32 %v9631_v34, %v9652_v36  ;;  %v9810_v30 = vadd.f32 %v9636_v35, %v9652_v36 }
 0x65b   :  { %5617 = vmatmul.mubr.f32.gmra.mrb[32].mxu0 %v9181_v58 }
 0x65c   :  { %5622 = vmatprep.mubr.f32.mxu0 %v8347_v5 }
 0x65d   :  { %6817 = vmatmul.mubr.f32.gmra.mrb[32].mxu1 %v9181_v58  ;;  %v6909_v13 = vpop.permute.xlu1 %6908 }
 0x65e   :  { %6822 = vmatprep.mubr.f32.mxu1 %v8347_v5  ;;  %v9675_v1 = vadd.f32 %v6909_v13, %v9652_v36 }
 0x65f   :  { %5624 = vmatmul.mubr.f32.gmra.mrb[34].mxu0 %v9195_v43 }
 0x660   :  { %5629 = vmatprep.mubr.f32.mxu0 %v8347_v5  ;;  %10157 = vst [vmem:[#allocation9_spill] sm:$0xff] %v9675_v1 }
 0x661   :  { %6824 = vmatmul.mubr.f32.gmra.mrb[34].mxu1 %v9195_v43  ;;  %v9648_v43 = vadd.f32 %v4368_v17, %v4367_v12  ;;  %v9842_v17 = vadd.f32 %v9640_v63, %v9652_v36 }
 0x662   :  { %6829 = vmatprep.mubr.f32.mxu1 %v8347_v5 }
 0x663   :  { %5631 = vmatmul.mubr.f32.gmra.mrb[36].mxu0 %v9209_v18  ;;  %v9657_v45 = vadd.f32 %v6909_v13, %v9648_v43  ;;  %v9669_v37 = vadd.f32 %v6853_v23, %v9648_v43  ;;  %v9685_v59 = vadd.f32 %v9610_v56, %v9648_v43  ;;  %v9710_v60 = vadd.f32 %v9612_v9, %v9648_v43 }
 0x664   :  { %5636 = vmatprep.mubr.f32.mxu0 %v8347_v5 }
 0x665   :  { %6831 = vmatmul.mubr.f32.gmra.mrb[36].mxu1 %v9209_v18  ;;  %v6913_v18 = vpop.permute.xlu0 %6912  ;;  %10153 = vst [vmem:[#allocation5_spill] sm:$0xff] %v9657_v45 }
 0x666   :  { %6836 = vmatprep.mubr.f32.mxu1 %v8347_v5  ;;  %v9678_v14 = vadd.f32 %v6913_v18, %v9652_v36 }
 0x667   :  { %5638 = vmatmul.mubr.f32.gmra.mrb[38].mxu0 %v9223_v3 }
 0x668   :  { %5643 = vmatprep.mubr.f32.mxu0 %v8347_v5  ;;  %10158 = vst [vmem:[#allocation10_spill] sm:$0xff] %v9678_v14 }
 0x669   :  { %6838 = vmatmul.mubr.f32.gmra.mrb[38].mxu1 %v9223_v3  ;;  %v9654_v3 = vadd.f32 %v4389_v41, %v4388_v31 }
 0x66a   :  { %6843 = vmatprep.mubr.f32.mxu1 %v8347_v5  ;;  %v4360_v5 = vmul.f32 %v10150_v53, %v10150_v53 }
 0x66b   :  { %5645 = vmatmul.mubr.f32.gmra.mrb[40].mxu0 %v9240_v39  ;;  %v9688_v19 = vadd.f32 %v6909_v13, %v9654_v3  ;;  %v9691_v10 = vadd.f32 %v6913_v18, %v9654_v3  ;;  %v9694_v27 = vadd.f32 %v6853_v23, %v9654_v3  ;;  %v9722_v28 = vadd.f32 %v9612_v9, %v9654_v3 }
 0x66c   :  { %v4370_v4 = vsel %vm34_vm0, %v4360_v5, 0.0  ;;  %v9706_v5 = vadd.f32 %v9610_v56, %v9654_v3  ;;  %v9754_v46 = vadd.f32 %v9616_v32, %v9654_v3  ;;  %v9770_v8 = vadd.f32 %v9618_v51, %v9654_v3 }
 0x66d   :  { %6845 = vmatmul.mubr.f32.gmra.mrb[40].mxu1 %v9240_v39  ;;  %v4371_v7 = vrot.slane %v4370_v4, 4  ;;  %v9660_v39 = vadd.f32 %v6913_v18, %v9648_v43  ;;  %10159 = vst [vmem:[#allocation11_spill] sm:$0xff] %v9688_v19  ;;  %10160 = vst [vmem:[#allocation12_spill] sm:$0xff] %v9691_v10  ;;  %v9786_v11 = vadd.f32 %v9629_v61, %v9654_v3 }
 0x66e   :  { %v9818_v12 = vadd.f32 %v9636_v35, %v9654_v3  ;;  %v9834_v31 = vadd.f32 %v9638_v40, %v9654_v3  ;;  %v9850_v41 = vadd.f32 %v9640_v63, %v9654_v3 }
 0x66f   :  { %v4372_v47 = vadd.f32 %v4371_v7, %v4370_v4  ;;  %10154 = vst [vmem:[#allocation6_spill] sm:$0xff] %v9660_v39  ;;  %v9738_v4 = vadd.f32 %v9614_v42, %v9654_v3  ;;  %v9762_v7 = vadd.f32 %v9618_v51, %v9652_v36  ;;  %v9866_v39 = vadd.f32 %v9642_v6, %v9654_v3 }
 0x670   :  { %10161 = vst [vmem:[#allocation13_spill] sm:$0xff] %v9850_v41 }
 0x671   :  { %v4373_v20 = vrot.slane %v4372_v47, 2  ;;  %10165 = vst [vmem:[#allocation17_spill] sm:$0xff] %v9866_v39  ;;  %v9893_v39 = vadd.f32 %v9646_v22, %v9652_v36 }
 0x673   :  { %v4374_v16 = vadd.f32 %v4373_v20, %v4372_v47  ;;  %v9802_v20 = vadd.f32 %v9631_v34, %v9654_v3  ;;  %10171 = vst [vmem:[#allocation23_spill] sm:$0xff] %v9893_v39 }
 0x675   :  { %v4375_v58 = vrot.slane %v4374_v16, 1 }
 0x677   :  { %v9650_v33 = vadd.f32 %v4375_v58, %v4374_v16  ;;  %v9826_v16 = vadd.f32 %v9638_v40, %v9652_v36 }
 0x679   :  { %v9663_v49 = vadd.f32 %v6909_v13, %v9650_v33  ;;  %v9666_v50 = vadd.f32 %v6913_v18, %v9650_v33  ;;  %v9672_v26 = vadd.f32 %v6853_v23, %v9650_v33  ;;  %v9702_v53 = vadd.f32 %v9610_v56, %v9650_v33 }
 0x67a   :  { %v9714_v23 = vadd.f32 %v9612_v9, %v9652_v36  ;;  %v9718_v62 = vadd.f32 %v9612_v9, %v9650_v33  ;;  %v9726_v56 = vadd.f32 %v9614_v42, %v9648_v43  ;;  %v9734_v0 = vadd.f32 %v9614_v42, %v9650_v33 }
 0x67b   :  { %10155 = vst [vmem:[#allocation7_spill] sm:$0xff] %v9663_v49  ;;  %10156 = vst [vmem:[#allocation8_spill] sm:$0xff] %v9666_v50  ;;  %v9742_v9 = vadd.f32 %v9616_v32, %v9648_v43  ;;  %v9750_v54 = vadd.f32 %v9616_v32, %v9650_v33  ;;  %v9758_v42 = vadd.f32 %v9618_v51, %v9648_v43 }
 0x67c   :  { %v9766_v38 = vadd.f32 %v9618_v51, %v9650_v33  ;;  %v9774_v32 = vadd.f32 %v9629_v61, %v9648_v43  ;;  %v9782_v47 = vadd.f32 %v9629_v61, %v9650_v33  ;;  %v9790_v51 = vadd.f32 %v9631_v34, %v9648_v43 }
 0x67d   :  { %v9798_v55 = vadd.f32 %v9631_v34, %v9650_v33  ;;  %v9806_v61 = vadd.f32 %v9636_v35, %v9648_v43  ;;  %v9814_v29 = vadd.f32 %v9636_v35, %v9650_v33  ;;  %v9822_v34 = vadd.f32 %v9638_v40, %v9648_v43 }
 0x67e   :  { %v9830_v25 = vadd.f32 %v9638_v40, %v9650_v33  ;;  %v9838_v35 = vadd.f32 %v9640_v63, %v9648_v43  ;;  %v9846_v24 = vadd.f32 %v9640_v63, %v9650_v33  ;;  %v9854_v40 = vadd.f32 %v9642_v6, %v9648_v43 }
 0x67f   :  { %v9858_v13 = vadd.f32 %v9642_v6, %v9652_v36  ;;  %v9862_v14 = vadd.f32 %v9642_v6, %v9650_v33  ;;  %v9870_v63 = vadd.f32 %v9644_v52, %v9648_v43  ;;  %v9878_v45 = vadd.f32 %v9644_v52, %v9650_v33 }
 0x680   :  { %10162 = vst [vmem:[#allocation14_spill] sm:$0xff] %v9854_v40  ;;  %v9883_v6 = vadd.f32 %v9644_v52, %v9654_v3 }
 0x681   :  { %10163 = vst [vmem:[#allocation15_spill] sm:$0xff] %v9858_v13  ;;  %10164 = vst [vmem:[#allocation16_spill] sm:$0xff] %v9862_v14 }
 0x682   :  { %10166 = vst [vmem:[#allocation18_spill] sm:$0xff] %v9870_v63  ;;  %10168 = vst [vmem:[#allocation20_spill] sm:$0xff] %v9878_v45 }
 0x683   :  { %10169 = vst [vmem:[#allocation21_spill] sm:$0xff] %v9883_v6 }
 0x702   :  { %v5541_v58 = vpop.f32.mrb[10].mxu0 }
 0x703   :  { %v6979_v18 = vmul.f32 2.0, %v5541_v58  ;;  %v5543_v50 = vpop.f32.mrb[11].mxu0  ;;  %v9874_v58 = vadd.f32 %v9644_v52, %v9652_v36 }
 0x704   :  { %v6741_v10 = vpop.f32.mrb[10].mxu1  ;;  %v6980_v49 = vmul.f32 2.0, %v5543_v50 }
 0x705   :  { %v6981_v19 = vmul.f32 2.0, %v6741_v10  ;;  %v6743_v1 = vpop.f32.mrb[11].mxu1  ;;  %10167 = vst [vmem:[#allocation19_spill] sm:$0xff] %v9874_v58  ;;  %v7043_v14 = vsub.f32 %v9669_v37, %v6979_v18  ;;  %v9887_v10 = vadd.f32 %v9646_v22, %v9648_v43  ;;  %v9897_v37 = vadd.f32 %v9646_v22, %v9650_v33 }
 0x706   :  { %v6982_v13 = vmul.f32 2.0, %v6743_v1  ;;  %v7044_v63 = vsub.f32 %v9672_v26, %v6980_v49  ;;  %v5548_v58 = vpop.f32.mrb[12].mxu0 }
 0x707   :  { %10170 = vst [vmem:[#allocation22_spill] sm:$0xff] %v9887_v10  ;;  %v7045_v50 = vsub.f32 %v9681_v2, %v6981_v19  ;;  %10172 = vst [vmem:[#allocation24_spill] sm:$0xff] %v9897_v37  ;;  %v7107_v1 = vmax.f32 %v7043_v14, 0.0  ;;  %v6983_v18 = vmul.f32 2.0, %v5548_v58  ;;  %v5550_v43 = vpop.f32.mrb[13].mxu0  ;;  %v9902_v2 = vadd.f32 %v9646_v22, %v9654_v3 }
 0x708   :  { %v7046_v52 = vsub.f32 %v9694_v27, %v6982_v13  ;;  %v6748_v6 = vpop.f32.mrb[12].mxu1  ;;  %v7108_v26 = vmax.f32 %v7044_v63, 0.0  ;;  %v6984_v10 = vmul.f32 2.0, %v5550_v43 }
 0x709   :  { %10173 = vst [vmem:[#allocation25_spill] sm:$0xff] %v9902_v2  ;;  %v7109_v49 = vmax.f32 %v7045_v50, 0.0  ;;  %v6985_v19 = vmul.f32 2.0, %v6748_v6  ;;  %v6750_v36 = vpop.f32.mrb[13].mxu1  ;;  %v7171_v39 = vmul.f32 -0.5, %v7107_v1  ;;  %v7047_v33 = vsub.f32 %v9685_v59, %v6983_v18 }
 0x70a   :  { %v7110_v45 = vmax.f32 %v7046_v52, 0.0  ;;  %v6986_v37 = vmul.f32 2.0, %v6750_v36  ;;  %v7172_v40 = vmul.f32 -0.5, %v7108_v26  ;;  %v7048_v13 = vsub.f32 %v9702_v53, %v6984_v10  ;;  %v5555_v58 = vpop.f32.mrb[14].mxu0 }
 0x70b   :  { %v7173_v14 = vmul.f32 -0.5, %v7109_v49  ;;  %v7049_v27 = vsub.f32 %v9698_v57, %v6985_v19  ;;  %v7507_v41 = vadd.f32 -0.9189385, %v7171_v39  ;;  %v7111_v3 = vmax.f32 %v7047_v33, 0.0  ;;  %v5557_v50 = vpop.f32.mrb[15].mxu0 }
 0x70c   :  { %v7174_v22 = vmul.f32 -0.5, %v7110_v45  ;;  %v7050_v63 = vsub.f32 %v9706_v5, %v6986_v37  ;;  %v6755_v6 = vpop.f32.mrb[14].mxu1  ;;  %v7508_v1 = vadd.f32 -0.9189385, %v7172_v40  ;;  %v7112_v2 = vmax.f32 %v7048_v13, 0.0 }
 0x70d   :  { %v7509_v43 = vadd.f32 -0.9189385, %v7173_v14  ;;  %v7113_v52 = vmax.f32 %v7049_v27, 0.0  ;;  %v7299_v59 = vmul.f32 1.442695, %v7507_v41  ;;  %v7175_v49 = vmul.f32 -0.5, %v7111_v3 }
 0x70e   :  { %v7510_v18 = vadd.f32 -0.9189385, %v7174_v22  ;;  %v7114_v26 = vmax.f32 %v7050_v63, 0.0  ;;  %v7301_v57 = vmul.f32 1.442695, %v7508_v1  ;;  %v7176_v53 = vmul.f32 -0.5, %v7112_v2 }
 0x70f   :  { %v7303_v36 = vmul.f32 1.442695, %v7509_v43  ;;  %v7177_v19 = vmul.f32 -0.5, %v7113_v52  ;;  %8195 = vpow2.f32 %v7299_v59  ;;  %v7511_v45 = vadd.f32 -0.9189385, %v7175_v49  ;;  %v6757_v33 = vpop.f32.mrb[15].mxu1 }
 0x710   :  { %v7305_v39 = vmul.f32 1.442695, %v7510_v18  ;;  %v7178_v10 = vmul.f32 -0.5, %v7114_v26  ;;  %v7512_v37 = vadd.f32 -0.9189385, %v7176_v53  ;;  %v6987_v14 = vmul.f32 2.0, %v5555_v58 }
 0x711   :  { %8197 = vpow2.f32 %v7303_v36  ;;  %v7513_v5 = vadd.f32 -0.9189385, %v7177_v19  ;;  %v5562_v40 = vpop.f32.mrb[16].mxu0  ;;  %v7307_v27 = vmul.f32 1.442695, %v7511_v45  ;;  %v6989_v13 = vmul.f32 2.0, %v6755_v6 }
 0x712   :  { %8199 = vpow2.f32 %v7301_v57  ;;  %v7514_v41 = vadd.f32 -0.9189385, %v7178_v10  ;;  %v6762_v22 = vpop.f32.mrb[16].mxu1  ;;  %v7309_v63 = vmul.f32 1.442695, %v7512_v37  ;;  %v7051_v2 = vsub.f32 %v9710_v60, %v6987_v14  ;;  %v5564_v43 = vpop.f32.mrb[17].mxu0 }
 0x713   :  { %8201 = vpow2.f32 %v7305_v39  ;;  %v7311_v3 = vmul.f32 1.442695, %v7513_v5  ;;  %v6764_v1 = vpop.f32.mrb[17].mxu1  ;;  %v7053_v59 = vsub.f32 %v9714_v23, %v6989_v13  ;;  %v6988_v18 = vmul.f32 2.0, %v5557_v50  ;;  %v9910_v49 = vpop.f32.mrb[18].mxu0 }
 0x714   :  { %8203 = vpow2.f32 %v7307_v27  ;;  %v7313_v52 = vmul.f32 1.442695, %v7514_v41  ;;  %v9912_v58 = vpop.f32.mrb[18].mxu1  ;;  %v7115_v26 = vmax.f32 %v7051_v2, 0.0  ;;  %v6990_v6 = vmul.f32 2.0, %v6757_v33  ;;  %v9914_v57 = vpop.f32.mrb[19].mxu0 }
 0x715   :  { %8205 = vpow2.f32 %v7311_v3  ;;  %v6991_v36 = vmul.f32 2.0, %v5562_v40  ;;  %v9916_v19 = vpop.f32.mrb[19].mxu1  ;;  %v7117_v60 = vmax.f32 %v7053_v59, 0.0  ;;  %v7052_v53 = vsub.f32 %v9718_v62, %v6988_v18 }
 0x716   :  { %8207 = vpow2.f32 %v7309_v63  ;;  %v6993_v39 = vmul.f32 2.0, %v6762_v22  ;;  %v7179_v23 = vmul.f32 -0.5, %v7115_v26  ;;  %v7054_v50 = vsub.f32 %v9722_v28, %v6990_v6  ;;  %v9921_v10 = vpop.f32.mrb[20].mxu0 }
 0x717   :  { %8209 = vpow2.f32 %v7313_v52  ;;  %v7055_v45 = vsub.f32 %v9726_v56, %v6991_v36  ;;  %v7181_v5 = vmul.f32 -0.5, %v7117_v60  ;;  %v7116_v33 = vmax.f32 %v7052_v53, 0.0  ;;  %v9926_v27 = vpop.f32.mrb[21].mxu0 }
 0x718   :  { %v7057_v37 = vsub.f32 %v9730_v15, %v6993_v39  ;;  %v6992_v14 = vmul.f32 2.0, %v5564_v43  ;;  %v9924_v40 = vpop.f32.mrb[20].mxu1  ;;  %v7515_v41 = vadd.f32 -0.9189385, %v7179_v23  ;;  %v7118_v62 = vmax.f32 %v7054_v50, 0.0 }
 0x719   :  { %v7119_v13 = vmax.f32 %v7055_v45, 0.0  ;;  %v6994_v22 = vmul.f32 2.0, %v6764_v1  ;;  %v9928_v3 = vpop.f32.mrb[21].mxu1  ;;  %v8196_v28 = vpop.eup %8195  ;;  %v7517_v63 = vadd.f32 -0.9189385, %v7181_v5  ;;  %v7180_v56 = vmul.f32 -0.5, %v7116_v33 }
 0x71a   :  { %v7121_v2 = vmax.f32 %v7057_v37, 0.0  ;;  %v7056_v52 = vsub.f32 %v9734_v0, %v6992_v14  ;;  %7427 = vst [vmem:[#allocation2] sm:$0xff] %v8196_v28  ;;  %v7315_v15 = vmul.f32 1.442695, %v7515_v41  ;;  %v7182_v43 = vmul.f32 -0.5, %v7118_v62  ;;  %v9932_v6 = vpop.f32.mrb[22].mxu0 }
 0x71b   :  { %v8198_v59 = vpop.eup %8197  ;;  %v7183_v18 = vmul.f32 -0.5, %v7119_v13  ;;  %v7058_v26 = vsub.f32 %v9738_v4, %v6994_v22  ;;  %v7319_v1 = vmul.f32 1.442695, %v7517_v63  ;;  %v7516_v60 = vadd.f32 -0.9189385, %v7180_v56  ;;  %v9936_v41 = vpop.f32.mrb[23].mxu0 }
 0x71c   :  { %v8200_v36 = vpop.eup %8199  ;;  %7429 = vst [vmem:[#allocation2 + $0x10] sm:$0xff] %v8198_v59  ;;  %v7185_v53 = vmul.f32 -0.5, %v7121_v2  ;;  %v7120_v39 = vmax.f32 %v7056_v52, 0.0  ;;  %8211 = vpow2.f32 %v7315_v15  ;;  %v7518_v50 = vadd.f32 -0.9189385, %v7182_v43  ;;  %v9934_v5 = vpop.f32.mrb[22].mxu1 }
 0x71d   :  { %v8202_v23 = vpop.eup %8201  ;;  %7428 = vst [vmem:[#allocation2 + $0x8] sm:$0xff] %v8200_v36  ;;  %v7519_v0 = vadd.f32 -0.9189385, %v7183_v18  ;;  %v7122_v45 = vmax.f32 %v7058_v26, 0.0  ;;  %8213 = vpow2.f32 %v7319_v1  ;;  %v7317_v4 = vmul.f32 1.442695, %v7516_v60 }
 0x71e   :  { %v8204_v33 = vpop.eup %8203  ;;  %7430 = vst [vmem:[#allocation2 + $0x18] sm:$0xff] %v8202_v23  ;;  %v7521_v37 = vadd.f32 -0.9189385, %v7185_v53  ;;  %v7184_v14 = vmul.f32 -0.5, %v7120_v39  ;;  %v7321_v13 = vmul.f32 1.442695, %v7518_v50 }
 0x71f   :  { %v8206_v62 = vpop.eup %8205  ;;  %7431 = vst [vmem:[#allocation2 + $0x20] sm:$0xff] %v8204_v33  ;;  %v7323_v22 = vmul.f32 1.442695, %v7519_v0  ;;  %v7186_v28 = vmul.f32 -0.5, %v7122_v45  ;;  %v6995_v63 = vmul.f32 2.0, %v9910_v49  ;;  %8215 = vpow2.f32 %v7317_v4  ;;  %v9940_v15 = vpop.f32.mrb[23].mxu1 }
 0x720   :  { %v8208_v56 = vpop.eup %8207  ;;  %7433 = vst [vmem:[#allocation2 + $0x30] sm:$0xff] %v8206_v62  ;;  %v7327_v2 = vmul.f32 1.442695, %v7521_v37  ;;  %v7520_v52 = vadd.f32 -0.9189385, %v7184_v14  ;;  %v6997_v59 = vmul.f32 2.0, %v9912_v58  ;;  %8217 = vpow2.f32 %v7321_v13 }
 0x721   :  { %v8210_v43 = vpop.eup %8209  ;;  %7432 = vst [vmem:[#allocation2 + $0x28] sm:$0xff] %v8208_v56  ;;  %v7522_v18 = vadd.f32 -0.9189385, %v7186_v28  ;;  %v7059_v26 = vsub.f32 %v9742_v9, %v6995_v63  ;;  %v6996_v36 = vmul.f32 2.0, %v9914_v57  ;;  %v9944_v1 = vpop.f32.mrb[24].mxu0  ;;  %8219 = vpow2.f32 %v7323_v22 }
 0x722   :  { %v9946_v49 = vpop.f32.mrb[24].mxu1  ;;  %7434 = vst [vmem:[#allocation2 + $0x38] sm:$0xff] %v8210_v43  ;;  %v7325_v60 = vmul.f32 1.442695, %v7520_v52  ;;  %v7061_v53 = vsub.f32 %v9746_v21, %v6997_v59  ;;  %v6998_v58 = vmul.f32 2.0, %v9916_v19  ;;  %v9950_v39 = vpop.f32.mrb[25].mxu0  ;;  %8221 = vpow2.f32 %v7327_v2 }
 0x723   :  { %v9952_v23 = vpop.f32.mrb[25].mxu1  ;;  %v7329_v50 = vmul.f32 1.442695, %v7522_v18  ;;  %v7123_v9 = vmax.f32 %v7059_v26, 0.0  ;;  %v7060_v57 = vsub.f32 %v9750_v54, %v6996_v36  ;;  %v9955_v0 = vpop.f32.mrb[26].mxu0  ;;  %v6999_v4 = vmul.f32 2.0, %v9921_v10 }
 0x724   :  { %8223 = vpow2.f32 %v7325_v60  ;;  %v7125_v45 = vmax.f32 %v7061_v53, 0.0  ;;  %v7062_v33 = vsub.f32 %v9754_v46, %v6998_v58  ;;  %v9959_v21 = vpop.f32.mrb[26].mxu1  ;;  %v9961_v19 = vpop.f32.mrb[27].mxu0  ;;  %v7001_v62 = vmul.f32 2.0, %v9924_v40 }
 0x725   :  { %8225 = vpow2.f32 %v7329_v50  ;;  %v7187_v37 = vmul.f32 -0.5, %v7123_v9  ;;  %v7124_v14 = vmax.f32 %v7060_v57, 0.0  ;;  %v9964_v13 = vpop.f32.mrb[27].mxu1  ;;  %v7063_v28 = vsub.f32 %v9758_v42, %v6999_v4 }
 0x726   :  { %v7189_v54 = vmul.f32 -0.5, %v7125_v45  ;;  %v7126_v22 = vmax.f32 %v7062_v33, 0.0  ;;  %v7000_v63 = vmul.f32 2.0, %v9926_v27  ;;  %v8212_v46 = vpop.eup %8211  ;;  %v7065_v2 = vsub.f32 %v9762_v7, %v7001_v62  ;;  %v9970_v59 = vpop.f32.mrb[28].mxu0 }
 0x727   :  { %v7523_v56 = vadd.f32 -0.9189385, %v7187_v37  ;;  %v7188_v10 = vmul.f32 -0.5, %v7124_v14  ;;  %v7002_v52 = vmul.f32 2.0, %v9928_v3  ;;  %v8214_v43 = vpop.eup %8213  ;;  %7435 = vst [vmem:[#allocation2 + $0x40] sm:$0xff] %v8212_v46  ;;  %v7127_v26 = vmax.f32 %v7063_v28, 0.0 }
 0x728   :  { %v7525_v40 = vadd.f32 -0.9189385, %v7189_v54  ;;  %v7190_v18 = vmul.f32 -0.5, %v7126_v22  ;;  %v7064_v36 = vsub.f32 %v9766_v38, %v7000_v63  ;;  %v9973_v60 = vpop.f32.mrb[28].mxu1  ;;  %v9975_v42 = vpop.f32.mrb[29].mxu0  ;;  %7437 = vst [vmem:[#allocation2 + $0x50] sm:$0xff] %v8214_v43 }
 0x729   :  { %v7331_v27 = vmul.f32 1.442695, %v7523_v56  ;;  %v7524_v53 = vadd.f32 -0.9189385, %v7188_v10  ;;  %v7129_v58 = vmax.f32 %v7065_v2, 0.0  ;;  %v7066_v7 = vsub.f32 %v9770_v8, %v7002_v52  ;;  %v9978_v3 = vpop.f32.mrb[29].mxu1  ;;  %v8216_v50 = vpop.eup %8215 }
 0x72a   :  { %v7335_v9 = vmul.f32 1.442695, %v7525_v40  ;;  %v7526_v57 = vadd.f32 -0.9189385, %v7190_v18  ;;  %v7191_v45 = vmul.f32 -0.5, %v7127_v26  ;;  %v7128_v33 = vmax.f32 %v7064_v36, 0.0  ;;  %v8218_v4 = vpop.eup %8217 }
 0x72b   :  { %7436 = vst [vmem:[#allocation2 + $0x48] sm:$0xff] %v8216_v50  ;;  %8227 = vpow2.f32 %v7331_v27  ;;  %v7333_v38 = vmul.f32 1.442695, %v7524_v53  ;;  %v7193_v37 = vmul.f32 -0.5, %v7129_v58  ;;  %v7130_v14 = vmax.f32 %v7066_v7, 0.0  ;;  %v9980_v62 = vpop.f32.mrb[30].mxu0  ;;  %v8220_v54 = vpop.eup %8219 }
 0x72c   :  { %7438 = vst [vmem:[#allocation2 + $0x58] sm:$0xff] %v8218_v4  ;;  %8229 = vpow2.f32 %v7335_v9  ;;  %v7337_v22 = vmul.f32 1.442695, %v7526_v57  ;;  %v7527_v8 = vadd.f32 -0.9189385, %v7191_v45  ;;  %v7192_v28 = vmul.f32 -0.5, %v7128_v33  ;;  %v8222_v46 = vpop.eup %8221 }
 0x72d   :  { %v9982_v63 = vpop.f32.mrb[30].mxu1  ;;  %7439 = vst [vmem:[#allocation2 + $0x60] sm:$0xff] %v8220_v54  ;;  %8231 = vpow2.f32 %v7333_v38  ;;  %v7529_v56 = vadd.f32 -0.9189385, %v7193_v37  ;;  %v7194_v10 = vmul.f32 -0.5, %v7130_v14  ;;  %v7003_v2 = vmul.f32 2.0, %v9932_v6 }
 0x72e   :  { %v9985_v52 = vpop.f32.mrb[31].mxu0  ;;  %v9987_v43 = vpop.f32.mrb[31].mxu1  ;;  %7441 = vst [vmem:[#allocation2 + $0x70] sm:$0xff] %v8222_v46  ;;  %8233 = vpow2.f32 %v7337_v22  ;;  %v7339_v18 = vmul.f32 1.442695, %v7527_v8  ;;  %v7005_v36 = vmul.f32 2.0, %v9934_v5 }
 0x72f   :  { %v8224_v40 = vpop.eup %8223  ;;  %v7528_v26 = vadd.f32 -0.9189385, %v7192_v28  ;;  %v7343_v53 = vmul.f32 1.442695, %v7529_v56  ;;  %v7530_v58 = vadd.f32 -0.9189385, %v7194_v10  ;;  %v7067_v7 = vsub.f32 %v9774_v32, %v7003_v2 }
 0x730   :  { %v8226_v27 = vpop.eup %8225  ;;  %7440 = vst [vmem:[#allocation2 + $0x68] sm:$0xff] %v8224_v40  ;;  %v7004_v50 = vmul.f32 2.0, %v9936_v41  ;;  %v9992_v6 = vpop.f32.mrb[32].mxu0  ;;  %8235 = vpow2.f32 %v7339_v18  ;;  %v7069_v57 = vsub.f32 %v9778_v44, %v7005_v36  ;;  %v7006_v45 = vmul.f32 2.0, %v9940_v15 }
 0x731   :  { %7442 = vst [vmem:[#allocation2 + $0x78] sm:$0xff] %v8226_v27  ;;  %v7341_v9 = vmul.f32 1.442695, %v7528_v26  ;;  %v9996_v33 = vpop.f32.mrb[32].mxu1  ;;  %v9998_v5 = vpop.f32.mrb[33].mxu0  ;;  %8237 = vpow2.f32 %v7343_v53  ;;  %v7131_v38 = vmax.f32 %v7067_v7, 0.0 }
 0x732   :  { %v7345_v4 = vmul.f32 1.442695, %v7530_v58  ;;  %v7068_v32 = vsub.f32 %v9782_v47, %v7004_v50  ;;  %v10001_v37 = vpop.f32.mrb[33].mxu1  ;;  %v7133_v41 = vmax.f32 %v7069_v57, 0.0  ;;  %v7070_v14 = vsub.f32 %v9786_v11, %v7006_v45  ;;  %v10006_v8 = vpop.f32.mrb[34].mxu0 }
 0x733   :  { %8239 = vpow2.f32 %v7341_v9  ;;  %v7007_v54 = vmul.f32 2.0, %v9944_v1  ;;  %v7195_v44 = vmul.f32 -0.5, %v7131_v38  ;;  %v7009_v22 = vmul.f32 2.0, %v9946_v49  ;;  %v10012_v2 = vpop.f32.mrb[35].mxu0 }
 0x734   :  { %8241 = vpow2.f32 %v7345_v4  ;;  %v7132_v15 = vmax.f32 %v7068_v32, 0.0  ;;  %v7197_v28 = vmul.f32 -0.5, %v7133_v41  ;;  %v7134_v46 = vmax.f32 %v7070_v14, 0.0  ;;  %v10010_v10 = vpop.f32.mrb[34].mxu1 }
 0x735   :  { %v7071_v56 = vsub.f32 %v9790_v51, %v7007_v54  ;;  %v7008_v47 = vmul.f32 2.0, %v9950_v39  ;;  %v8228_v11 = vpop.eup %8227  ;;  %v7531_v40 = vadd.f32 -0.9189385, %v7195_v44  ;;  %v7073_v18 = vsub.f32 %v9794_v48, %v7009_v22  ;;  %v10016_v49 = vpop.f32.mrb[35].mxu1 }
 0x736   :  { %v7196_v1 = vmul.f32 -0.5, %v7132_v15  ;;  %v7010_v26 = vmul.f32 2.0, %v9952_v23  ;;  %v8230_v36 = vpop.eup %8229  ;;  %7443 = vst [vmem:[#allocation2 + $0x80] sm:$0xff] %v8228_v11  ;;  %v7533_v27 = vadd.f32 -0.9189385, %v7197_v28  ;;  %v7198_v53 = vmul.f32 -0.5, %v7134_v46 }
 0x737   :  { %v7135_v51 = vmax.f32 %v7071_v56, 0.0  ;;  %v7072_v39 = vsub.f32 %v9798_v55, %v7008_v47  ;;  %v8232_v58 = vpop.eup %8231  ;;  %7445 = vst [vmem:[#allocation2 + $0x90] sm:$0xff] %v8230_v36  ;;  %v7347_v7 = vmul.f32 1.442695, %v7531_v40  ;;  %v7137_v9 = vmax.f32 %v7073_v18, 0.0  ;;  %v10020_v45 = vpop.f32.mrb[36].mxu0 }
 0x738   :  { %v7532_v50 = vadd.f32 -0.9189385, %v7196_v1  ;;  %v7074_v57 = vsub.f32 %v9802_v20, %v7010_v26  ;;  %v8234_v48 = vpop.eup %8233  ;;  %7444 = vst [vmem:[#allocation2 + $0x88] sm:$0xff] %v8232_v58  ;;  %v7351_v23 = vmul.f32 1.442695, %v7533_v27  ;;  %v10022_v54 = vpop.f32.mrb[36].mxu1 }
 0x739   :  { %v7534_v4 = vadd.f32 -0.9189385, %v7198_v53  ;;  %v7199_v38 = vmul.f32 -0.5, %v7135_v51  ;;  %v7136_v32 = vmax.f32 %v7072_v39, 0.0  ;;  %7446 = vst [vmem:[#allocation2 + $0x98] sm:$0xff] %v8234_v48  ;;  %8243 = vpow2.f32 %v7347_v7  ;;  %v10024_v44 = vpop.f32.mrb[37].mxu0 }
 0x73a   :  { %v7349_v41 = vmul.f32 1.442695, %v7532_v50  ;;  %v7201_v14 = vmul.f32 -0.5, %v7137_v9  ;;  %v7138_v55 = vmax.f32 %v7074_v57, 0.0  ;;  %v8236_v15 = vpop.eup %8235  ;;  %8245 = vpow2.f32 %v7351_v23  ;;  %v10026_v46 = vpop.f32.mrb[37].mxu1 }
 0x73b   :  { %v7353_v20 = vmul.f32 1.442695, %v7534_v4  ;;  %v7535_v22 = vadd.f32 -0.9189385, %v7199_v38  ;;  %v7200_v28 = vmul.f32 -0.5, %v7136_v32  ;;  %v8238_v56 = vpop.eup %8237  ;;  %7447 = vst [vmem:[#allocation2 + $0xa0] sm:$0xff] %v8236_v15 }
 0x73c   :  { %8247 = vpow2.f32 %v7349_v41  ;;  %v7537_v47 = vadd.f32 -0.9189385, %v7201_v14  ;;  %v7202_v11 = vmul.f32 -0.5, %v7138_v55  ;;  %v7011_v40 = vmul.f32 2.0, %v9955_v0  ;;  %v10029_v1 = vpop.f32.mrb[38].mxu0  ;;  %7449 = vst [vmem:[#allocation2 + $0xb0] sm:$0xff] %v8238_v56 }
 0x73d   :  { %v8240_v18 = vpop.eup %8239  ;;  %8249 = vpow2.f32 %v7353_v20  ;;  %v7355_v26 = vmul.f32 1.442695, %v7535_v22  ;;  %v7536_v36 = vadd.f32 -0.9189385, %v7200_v28  ;;  %v7013_v27 = vmul.f32 2.0, %v9959_v21  ;;  %v10032_v53 = vpop.f32.mrb[38].mxu1 }
 0x73e   :  { %v8242_v51 = vpop.eup %8241  ;;  %7448 = vst [vmem:[#allocation2 + $0xa8] sm:$0xff] %v8240_v18  ;;  %v7359_v39 = vmul.f32 1.442695, %v7537_v47  ;;  %v7538_v58 = vadd.f32 -0.9189385, %v7202_v11  ;;  %v7075_v7 = vsub.f32 %v9806_v61, %v7011_v40  ;;  %v7012_v50 = vmul.f32 2.0, %v9961_v19 }
 0x73f   :  { %v10036_v0 = vpop.f32.mrb[39].mxu0  ;;  %7450 = vst [vmem:[#allocation2 + $0xb8] sm:$0xff] %v8242_v51  ;;  %8251 = vpow2.f32 %v7355_v26  ;;  %v7357_v9 = vmul.f32 1.442695, %v7536_v36  ;;  %v7077_v57 = vsub.f32 %v9810_v30, %v7013_v27  ;;  %v7014_v48 = vmul.f32 2.0, %v9964_v13  ;;  %v10040_v21 = vpop.f32.mrb[39].mxu1 }
 0x740   :  { %8253 = vpow2.f32 %v7359_v39  ;;  %v7361_v23 = vmul.f32 1.442695, %v7538_v58  ;;  %v7139_v4 = vmax.f32 %v7075_v7, 0.0  ;;  %v7076_v38 = vsub.f32 %v9814_v29, %v7012_v50  ;;  %v10043_v32 = vpop.f32.mrb[40].mxu0  ;;  %v10047_v14 = vpop.f32.mrb[40].mxu1 }
 0x741   :  { %8255 = vpow2.f32 %v7357_v9  ;;  %v7141_v61 = vmax.f32 %v7077_v57, 0.0  ;;  %v7078_v19 = vsub.f32 %v9818_v12, %v7014_v48  ;;  %v7015_v41 = vmul.f32 2.0, %v9970_v59  ;;  %v10049_v30 = vpop.f32.mrb[41].mxu0  ;;  %v10052_v20 = vpop.f32.mrb[41].mxu1 }
 0x742   :  { %8257 = vpow2.f32 %v7361_v23  ;;  %v7203_v13 = vmul.f32 -0.5, %v7139_v4  ;;  %v7140_v55 = vmax.f32 %v7076_v38, 0.0  ;;  %v7017_v15 = vmul.f32 2.0, %v9973_v60 }
 0x743   :  { %v7205_v29 = vmul.f32 -0.5, %v7141_v61  ;;  %v7142_v22 = vmax.f32 %v7078_v19, 0.0  ;;  %v7079_v28 = vsub.f32 %v9822_v34, %v7015_v41  ;;  %v7016_v56 = vmul.f32 2.0, %v9975_v42  ;;  %v8244_v12 = vpop.eup %8243 }
 0x744   :  { %v7539_v47 = vadd.f32 -0.9189385, %v7203_v13  ;;  %v7204_v59 = vmul.f32 -0.5, %v7140_v55  ;;  %v7081_v11 = vsub.f32 %v9826_v16, %v7017_v15  ;;  %v7018_v40 = vmul.f32 2.0, %v9978_v3  ;;  %v8246_v18 = vpop.eup %8245  ;;  %7451 = vst [vmem:[#allocation2 + $0xc0] sm:$0xff] %v8244_v12 }
 0x745   :  { %v7541_v26 = vadd.f32 -0.9189385, %v7205_v29  ;;  %v7206_v36 = vmul.f32 -0.5, %v7142_v22  ;;  %v7143_v60 = vmax.f32 %v7079_v28, 0.0  ;;  %v7080_v27 = vsub.f32 %v9830_v25, %v7016_v56  ;;  %7453 = vst [vmem:[#allocation2 + $0xd0] sm:$0xff] %v8246_v18 }
 0x746   :  { %v8248_v51 = vpop.eup %8247  ;;  %v7363_v39 = vmul.f32 1.442695, %v7539_v47  ;;  %v7540_v34 = vadd.f32 -0.9189385, %v7204_v59  ;;  %v7145_v58 = vmax.f32 %v7081_v11, 0.0  ;;  %v7082_v42 = vsub.f32 %v9834_v31, %v7018_v40 }
 0x747   :  { %v8250_v7 = vpop.eup %8249  ;;  %7452 = vst [vmem:[#allocation2 + $0xc8] sm:$0xff] %v8248_v51  ;;  %v7367_v50 = vmul.f32 1.442695, %v7541_v26  ;;  %v7542_v16 = vadd.f32 -0.9189385, %v7206_v36  ;;  %v7207_v9 = vmul.f32 -0.5, %v7143_v60 }
 0x748   :  { %v7144_v3 = vmax.f32 %v7080_v27, 0.0  ;;  %7454 = vst [vmem:[#allocation2 + $0xd8] sm:$0xff] %v8250_v7  ;;  %8259 = vpow2.f32 %v7363_v39  ;;  %v7365_v57 = vmul.f32 1.442695, %v7540_v34  ;;  %v7209_v48 = vmul.f32 -0.5, %v7145_v58  ;;  %v10174_v60 = vld [vmem:[#allocation13_spill] sm:$0xff] }
 0x749   :  { %v7146_v23 = vmax.f32 %v7082_v42, 0.0  ;;  %v8252_v4 = vpop.eup %8251  ;;  %8261 = vpow2.f32 %v7367_v50  ;;  %v7369_v25 = vmul.f32 1.442695, %v7542_v16  ;;  %v7543_v38 = vadd.f32 -0.9189385, %v7207_v9  ;;  %v10175_v58 = vld [vmem:[#allocation14_spill] sm:$0xff] }
 0x74a   :  { %v7208_v61 = vmul.f32 -0.5, %v7144_v3  ;;  %v8254_v19 = vpop.eup %8253  ;;  %7455 = vst [vmem:[#allocation2 + $0xe0] sm:$0xff] %v8252_v4  ;;  %8263 = vpow2.f32 %v7365_v57  ;;  %v7545_v31 = vadd.f32 -0.9189385, %v7209_v48  ;;  %v7019_v13 = vmul.f32 2.0, %v9980_v62  ;;  %v10176_v16 = vld [vmem:[#allocation15_spill] sm:$0xff] }
 0x74b   :  { %v7210_v41 = vmul.f32 -0.5, %v7146_v23  ;;  %v8256_v55 = vpop.eup %8255  ;;  %7457 = vst [vmem:[#allocation2 + $0xf0] sm:$0xff] %v8254_v19  ;;  %8265 = vpow2.f32 %v7369_v25  ;;  %v7371_v15 = vmul.f32 1.442695, %v7543_v38  ;;  %v7021_v22 = vmul.f32 2.0, %v9982_v63  ;;  %v10177_v4 = vld [vmem:[#allocation16_spill] sm:$0xff] }
 0x74c   :  { %v7544_v29 = vadd.f32 -0.9189385, %v7208_v61  ;;  %v8258_v28 = vpop.eup %8257  ;;  %7456 = vst [vmem:[#allocation2 + $0xe8] sm:$0xff] %v8256_v55  ;;  %v7375_v56 = vmul.f32 1.442695, %v7545_v31  ;;  %v7083_v47 = vsub.f32 %v9838_v35, %v7019_v13  ;;  %v7020_v59 = vmul.f32 2.0, %v9985_v52 }
 0x74d   :  { %v7546_v12 = vadd.f32 -0.9189385, %v7210_v41  ;;  %7458 = vst [vmem:[#allocation2 + $0xf8] sm:$0xff] %v8258_v28  ;;  %8267 = vpow2.f32 %v7371_v15  ;;  %v7085_v62 = vsub.f32 %v9842_v17, %v7021_v22  ;;  %v7022_v40 = vmul.f32 2.0, %v9987_v43 }
 0x74e   :  { %v7373_v11 = vmul.f32 1.442695, %v7544_v29  ;;  %8269 = vpow2.f32 %v7375_v56  ;;  %v7147_v26 = vmax.f32 %v7083_v47, 0.0  ;;  %v7084_v63 = vsub.f32 %v9846_v24, %v7020_v59 }
 0x74f   :  { %v7377_v18 = vmul.f32 1.442695, %v7546_v12  ;;  %v7149_v36 = vmax.f32 %v7085_v62, 0.0  ;;  %v7086_v27 = vsub.f32 %v10174_v60, %v7022_v40  ;;  %v7023_v35 = vmul.f32 2.0, %v9992_v6 }
 0x750   :  { %8271 = vpow2.f32 %v7373_v11  ;;  %v7211_v52 = vmul.f32 -0.5, %v7147_v26  ;;  %v7148_v51 = vmax.f32 %v7084_v63, 0.0  ;;  %v7025_v39 = vmul.f32 2.0, %v9996_v33 }
 0x751   :  { %8273 = vpow2.f32 %v7377_v18  ;;  %v7213_v34 = vmul.f32 -0.5, %v7149_v36  ;;  %v7150_v17 = vmax.f32 %v7086_v27, 0.0  ;;  %v7087_v43 = vsub.f32 %v10175_v58, %v7023_v35  ;;  %v10180_v58 = vld [vmem:[#allocation19_spill] sm:$0xff] }
 0x752   :  { %v7024_v42 = vmul.f32 2.0, %v9998_v5  ;;  %v8260_v7 = vpop.eup %8259  ;;  %v7547_v50 = vadd.f32 -0.9189385, %v7211_v52  ;;  %v7212_v24 = vmul.f32 -0.5, %v7148_v51  ;;  %v7089_v9 = vsub.f32 %v10176_v16, %v7025_v39  ;;  %v10178_v5 = vld [vmem:[#allocation17_spill] sm:$0xff]  ;;  %v10179_v51 = vld [vmem:[#allocation18_spill] sm:$0xff] }
 0x753   :  { %v7026_v3 = vmul.f32 2.0, %v10001_v37  ;;  %v8262_v57 = vpop.eup %8261  ;;  %7459 = vst [vmem:[#allocation2 + $0x100] sm:$0xff] %v8260_v7  ;;  %v7549_v6 = vadd.f32 -0.9189385, %v7213_v34  ;;  %v7214_v48 = vmul.f32 -0.5, %v7150_v17  ;;  %v7151_v23 = vmax.f32 %v7087_v43, 0.0 }
 0x754   :  { %v7088_v33 = vsub.f32 %v10177_v4, %v7024_v42  ;;  %v8264_v25 = vpop.eup %8263  ;;  %7461 = vst [vmem:[#allocation2 + $0x110] sm:$0xff] %v8262_v57  ;;  %v7379_v38 = vmul.f32 1.442695, %v7547_v50  ;;  %v7548_v61 = vadd.f32 -0.9189385, %v7212_v24  ;;  %v7153_v19 = vmax.f32 %v7089_v9, 0.0 }
 0x755   :  { %v7090_v31 = vsub.f32 %v10178_v5, %v7026_v3  ;;  %v8266_v41 = vpop.eup %8265  ;;  %7460 = vst [vmem:[#allocation2 + $0x108] sm:$0xff] %v8264_v25  ;;  %v7383_v13 = vmul.f32 1.442695, %v7549_v6  ;;  %v7550_v55 = vadd.f32 -0.9189385, %v7214_v48  ;;  %v7215_v15 = vmul.f32 -0.5, %v7151_v23 }
 0x756   :  { %v7152_v37 = vmax.f32 %v7088_v33, 0.0  ;;  %7462 = vst [vmem:[#allocation2 + $0x118] sm:$0xff] %v8266_v41  ;;  %8275 = vpow2.f32 %v7379_v38  ;;  %v7381_v29 = vmul.f32 1.442695, %v7548_v61  ;;  %v7217_v22 = vmul.f32 -0.5, %v7153_v19  ;;  %v10181_v50 = vld [vmem:[#allocation20_spill] sm:$0xff] }
 0x757   :  { %v7154_v28 = vmax.f32 %v7090_v31, 0.0  ;;  %v8268_v56 = vpop.eup %8267  ;;  %8277 = vpow2.f32 %v7383_v13  ;;  %v7385_v12 = vmul.f32 1.442695, %v7550_v55  ;;  %v7551_v47 = vadd.f32 -0.9189385, %v7215_v15  ;;  %v10182_v16 = vld [vmem:[#allocation21_spill] sm:$0xff] }
 0x758   :  { %v7216_v59 = vmul.f32 -0.5, %v7152_v37  ;;  %v8270_v11 = vpop.eup %8269  ;;  %7463 = vst [vmem:[#allocation2 + $0x120] sm:$0xff] %v8268_v56  ;;  %8279 = vpow2.f32 %v7381_v29  ;;  %v7553_v62 = vadd.f32 -0.9189385, %v7217_v22  ;;  %v7027_v18 = vmul.f32 2.0, %v10006_v8  ;;  %v10183_v4 = vld [vmem:[#allocation22_spill] sm:$0xff] }
 0x759   :  { %v7218_v40 = vmul.f32 -0.5, %v7154_v28  ;;  %7465 = vst [vmem:[#allocation2 + $0x130] sm:$0xff] %v8270_v11  ;;  %8281 = vpow2.f32 %v7385_v12  ;;  %v7387_v63 = vmul.f32 1.442695, %v7551_v47  ;;  %v7029_v60 = vmul.f32 2.0, %v10010_v10  ;;  %v10184_v19 = vld [vmem:[#allocation23_spill] sm:$0xff] }
 0x75a   :  { %v8272_v26 = vpop.eup %8271  ;;  %v7552_v36 = vadd.f32 -0.9189385, %v7216_v59  ;;  %v7391_v35 = vmul.f32 1.442695, %v7553_v62  ;;  %v7091_v39 = vsub.f32 %v10179_v51, %v7027_v18  ;;  %v7028_v34 = vmul.f32 2.0, %v10012_v2  ;;  %v10185_v15 = vld [vmem:[#allocation24_spill] sm:$0xff] }
 0x75b   :  { %v8274_v27 = vpop.eup %8273  ;;  %7464 = vst [vmem:[#allocation2 + $0x128] sm:$0xff] %v8272_v26  ;;  %v7554_v52 = vadd.f32 -0.9189385, %v7218_v40  ;;  %8283 = vpow2.f32 %v7387_v63  ;;  %v7093_v8 = vsub.f32 %v10180_v58, %v7029_v60  ;;  %v7030_v43 = vmul.f32 2.0, %v10016_v49 }
 0x75c   :  { %7466 = vst [vmem:[#allocation2 + $0x138] sm:$0xff] %v8274_v27  ;;  %v7389_v17 = vmul.f32 1.442695, %v7552_v36  ;;  %8285 = vpow2.f32 %v7391_v35  ;;  %v7155_v7 = vmax.f32 %v7091_v39, 0.0  ;;  %v7092_v10 = vsub.f32 %v10181_v50, %v7028_v34 }
 0x75d   :  { %v7393_v42 = vmul.f32 1.442695, %v7554_v52  ;;  %v7157_v24 = vmax.f32 %v7093_v8, 0.0  ;;  %v7094_v9 = vsub.f32 %v10182_v16, %v7030_v43  ;;  %v7031_v3 = vmul.f32 2.0, %v10020_v45  ;;  %v10188_v16 = vld [vmem:[#allocation9_spill] sm:$0xff] }
 0x75e   :  { %8287 = vpow2.f32 %v7389_v17  ;;  %v7219_v2 = vmul.f32 -0.5, %v7155_v7  ;;  %v7156_v57 = vmax.f32 %v7092_v10, 0.0  ;;  %v7033_v6 = vmul.f32 2.0, %v10022_v54  ;;  %v10187_v7 = vld [vmem:[#allocation5_spill] sm:$0xff] }
 0x75f   :  { %8289 = vpow2.f32 %v7393_v42  ;;  %v7221_v48 = vmul.f32 -0.5, %v7157_v24  ;;  %v7158_v23 = vmax.f32 %v7094_v9, 0.0  ;;  %v7095_v49 = vsub.f32 %v10183_v4, %v7031_v3 }
 0x760   :  { %v7032_v33 = vmul.f32 2.0, %v10024_v44  ;;  %v8276_v25 = vpop.eup %8275  ;;  %v7555_v38 = vadd.f32 -0.9189385, %v7219_v2  ;;  %v7220_v61 = vmul.f32 -0.5, %v7156_v57  ;;  %v7097_v5 = vsub.f32 %v10184_v19, %v7033_v6  ;;  %v10186_v44 = vld [vmem:[#allocation25_spill] sm:$0xff]  ;;  %v10189_v57 = vld [vmem:[#allocation7_spill] sm:$0xff] }
 0x761   :  { %v7034_v31 = vmul.f32 2.0, %v10026_v46  ;;  %v8278_v41 = vpop.eup %8277  ;;  %7467 = vst [vmem:[#allocation2 + $0x140] sm:$0xff] %v8276_v25  ;;  %v7557_v45 = vadd.f32 -0.9189385, %v7221_v48  ;;  %v7222_v13 = vmul.f32 -0.5, %v7158_v23  ;;  %v7159_v55 = vmax.f32 %v7095_v49, 0.0 }
 0x762   :  { %v7096_v54 = vsub.f32 %v10185_v15, %v7032_v33  ;;  %v8280_v37 = vpop.eup %8279  ;;  %7469 = vst [vmem:[#allocation2 + $0x150] sm:$0xff] %v8278_v41  ;;  %v7395_v29 = vmul.f32 1.442695, %v7555_v38  ;;  %v7556_v22 = vadd.f32 -0.9189385, %v7220_v61  ;;  %v7161_v28 = vmax.f32 %v7097_v5, 0.0 }
 0x763   :  { %v7098_v56 = vsub.f32 %v10186_v44, %v7034_v31  ;;  %v8282_v12 = vpop.eup %8281  ;;  %7468 = vst [vmem:[#allocation2 + $0x148] sm:$0xff] %v8280_v37  ;;  %v7399_v47 = vmul.f32 1.442695, %v7557_v45  ;;  %v7558_v59 = vadd.f32 -0.9189385, %v7222_v13  ;;  %v7223_v11 = vmul.f32 -0.5, %v7159_v55 }
 0x764   :  { %v7160_v46 = vmax.f32 %v7096_v54, 0.0  ;;  %7470 = vst [vmem:[#allocation2 + $0x158] sm:$0xff] %v8282_v12  ;;  %8291 = vpow2.f32 %v7395_v29  ;;  %v7397_v62 = vmul.f32 1.442695, %v7556_v22  ;;  %v7225_v40 = vmul.f32 -0.5, %v7161_v28  ;;  %v10190_v48 = vld [vmem:[#allocation11_spill] sm:$0xff] }
 0x765   :  { %v7162_v18 = vmax.f32 %v7098_v56, 0.0  ;;  %v8284_v26 = vpop.eup %8283  ;;  %8293 = vpow2.f32 %v7399_v47  ;;  %v7401_v63 = vmul.f32 1.442695, %v7558_v59  ;;  %v7559_v36 = vadd.f32 -0.9189385, %v7223_v11  ;;  %v10191_v61 = vld [vmem:[#allocation6_spill] sm:$0xff] }
 0x766   :  { %v7224_v60 = vmul.f32 -0.5, %v7160_v46  ;;  %v8286_v27 = vpop.eup %8285  ;;  %7471 = vst [vmem:[#allocation2 + $0x160] sm:$0xff] %v8284_v26  ;;  %8295 = vpow2.f32 %v7397_v62  ;;  %v7561_v35 = vadd.f32 -0.9189385, %v7225_v40  ;;  %v7035_v51 = vmul.f32 2.0, %v10029_v1  ;;  %v10192_v45 = vld [vmem:[#allocation10_spill] sm:$0xff] }
 0x767   :  { %v7226_v52 = vmul.f32 -0.5, %v7162_v18  ;;  %7473 = vst [vmem:[#allocation2 + $0x170] sm:$0xff] %v8286_v27  ;;  %8297 = vpow2.f32 %v7401_v63  ;;  %v7403_v34 = vmul.f32 1.442695, %v7559_v36  ;;  %v7037_v58 = vmul.f32 2.0, %v10032_v53  ;;  %v10193_v29 = vld [vmem:[#allocation8_spill] sm:$0xff] }
 0x768   :  { %v8288_v39 = vpop.eup %8287  ;;  %v7560_v17 = vadd.f32 -0.9189385, %v7224_v60  ;;  %v7407_v43 = vmul.f32 1.442695, %v7561_v35  ;;  %v7099_v50 = vsub.f32 %v10187_v7, %v7035_v51  ;;  %v7036_v10 = vmul.f32 2.0, %v10036_v0 }
 0x769   :  { %v8290_v8 = vpop.eup %8289  ;;  %7472 = vst [vmem:[#allocation2 + $0x168] sm:$0xff] %v8288_v39  ;;  %v7562_v42 = vadd.f32 -0.9189385, %v7226_v52  ;;  %8299 = vpow2.f32 %v7403_v34  ;;  %v7101_v1 = vsub.f32 %v10188_v16, %v7037_v58  ;;  %v7038_v9 = vmul.f32 2.0, %v10040_v21 }
 0x76a   :  { %7474 = vst [vmem:[#allocation2 + $0x178] sm:$0xff] %v8290_v8  ;;  %v7405_v24 = vmul.f32 1.442695, %v7560_v17  ;;  %8301 = vpow2.f32 %v7407_v43  ;;  %v7163_v2 = vmax.f32 %v7099_v50, 0.0  ;;  %v7100_v53 = vsub.f32 %v10189_v57, %v7036_v10 }
 0x76b   :  { %v7409_v3 = vmul.f32 1.442695, %v7562_v42  ;;  %v7165_v6 = vmax.f32 %v7101_v1, 0.0  ;;  %v7102_v23 = vsub.f32 %v10190_v48, %v7038_v9  ;;  %v7039_v4 = vmul.f32 2.0, %v10043_v32 }
 0x76c   :  { %8303 = vpow2.f32 %v7405_v24  ;;  %v7227_v0 = vmul.f32 -0.5, %v7163_v2  ;;  %v7164_v49 = vmax.f32 %v7100_v53, 0.0  ;;  %v7041_v33 = vmul.f32 2.0, %v10047_v14 }
 0x76d   :  { %8305 = vpow2.f32 %v7409_v3  ;;  %v7229_v25 = vmul.f32 -0.5, %v7165_v6  ;;  %v7166_v38 = vmax.f32 %v7102_v23, 0.0  ;;  %v7103_v21 = vsub.f32 %v10191_v61, %v7039_v4 }
 0x76e   :  { %v7040_v19 = vmul.f32 2.0, %v10049_v30  ;;  %v8292_v5 = vpop.eup %8291  ;;  %v7563_v31 = vadd.f32 -0.9189385, %v7227_v0  ;;  %v7228_v41 = vmul.f32 -0.5, %v7164_v49  ;;  %v7105_v13 = vsub.f32 %v10192_v45, %v7041_v33  ;;  %v10194_v30 = vld [vmem:[#allocation12_spill] sm:$0xff] }
 0x76f   :  { %v7042_v55 = vmul.f32 2.0, %v10052_v20  ;;  %v8294_v15 = vpop.eup %8293  ;;  %7475 = vst [vmem:[#allocation2 + $0x180] sm:$0xff] %v8292_v5  ;;  %v7565_v32 = vadd.f32 -0.9189385, %v7229_v25  ;;  %v7230_v54 = vmul.f32 -0.5, %v7166_v38  ;;  %v7167_v37 = vmax.f32 %v7103_v21, 0.0 }
 0x770   :  { %v7104_v14 = vsub.f32 %v10193_v29, %v7040_v19  ;;  %v8296_v22 = vpop.eup %8295  ;;  %7477 = vst [vmem:[#allocation2 + $0x190] sm:$0xff] %v8294_v15  ;;  %v7411_v28 = vmul.f32 1.442695, %v7563_v31  ;;  %v7564_v44 = vadd.f32 -0.9189385, %v7228_v41  ;;  %v7169_v56 = vmax.f32 %v7105_v13, 0.0 }
 0x771   :  { %v7106_v12 = vsub.f32 %v10194_v30, %v7042_v55  ;;  %v8298_v47 = vpop.eup %8297  ;;  %7476 = vst [vmem:[#allocation2 + $0x188] sm:$0xff] %v8296_v22  ;;  %v7415_v59 = vmul.f32 1.442695, %v7565_v32  ;;  %v7566_v11 = vadd.f32 -0.9189385, %v7230_v54  ;;  %v7231_v46 = vmul.f32 -0.5, %v7167_v37 }
 0x772   :  { %v7168_v20 = vmax.f32 %v7104_v14, 0.0  ;;  %7478 = vst [vmem:[#allocation2 + $0x198] sm:$0xff] %v8298_v47  ;;  %8307 = vpow2.f32 %v7411_v28  ;;  %v7413_v62 = vmul.f32 1.442695, %v7564_v44  ;;  %v7233_v40 = vmul.f32 -0.5, %v7169_v56 }
 0x773   :  { %v7170_v18 = vmax.f32 %v7106_v12, 0.0  ;;  %v8300_v26 = vpop.eup %8299  ;;  %8309 = vpow2.f32 %v7415_v59  ;;  %v7417_v63 = vmul.f32 1.442695, %v7566_v11  ;;  %v7567_v36 = vadd.f32 -0.9189385, %v7231_v46 }
 0x774   :  { %v7232_v60 = vmul.f32 -0.5, %v7168_v20  ;;  %v8302_v27 = vpop.eup %8301  ;;  %7479 = vst [vmem:[#allocation2 + $0x1a0] sm:$0xff] %v8300_v26  ;;  %8311 = vpow2.f32 %v7413_v62  ;;  %v7569_v35 = vadd.f32 -0.9189385, %v7233_v40 }
 0x775   :  { %v7234_v52 = vmul.f32 -0.5, %v7170_v18  ;;  %7481 = vst [vmem:[#allocation2 + $0x1b0] sm:$0xff] %v8302_v27  ;;  %8313 = vpow2.f32 %v7417_v63  ;;  %v7419_v39 = vmul.f32 1.442695, %v7567_v36 }
 0x776   :  { %v8304_v51 = vpop.eup %8303  ;;  %v7568_v34 = vadd.f32 -0.9189385, %v7232_v60  ;;  %v7423_v58 = vmul.f32 1.442695, %v7569_v35 }
 0x777   :  { %v8306_v17 = vpop.eup %8305  ;;  %7480 = vst [vmem:[#allocation2 + $0x1a8] sm:$0xff] %v8304_v51  ;;  %v7570_v8 = vadd.f32 -0.9189385, %v7234_v52  ;;  %8315 = vpow2.f32 %v7419_v39 }
 0x778   :  { %7482 = vst [vmem:[#allocation2 + $0x1b8] sm:$0xff] %v8306_v17  ;;  %v7421_v43 = vmul.f32 1.442695, %v7568_v34  ;;  %8317 = vpow2.f32 %v7423_v58 }
 0x779   :  { %v7425_v42 = vmul.f32 1.442695, %v7570_v8 }
 0x77a   :  { %8319 = vpow2.f32 %v7421_v43 }
 0x77b   :  { %8321 = vpow2.f32 %v7425_v42 }
 0x77c   :  { %v8308_v7 = vpop.eup %8307 }
 0x77d   :  { %v8310_v50 = vpop.eup %8309  ;;  %7483 = vst [vmem:[#allocation2 + $0x1c0] sm:$0xff] %v8308_v7 }
 0x77e   :  { %v8312_v10 = vpop.eup %8311  ;;  %7485 = vst [vmem:[#allocation2 + $0x1d0] sm:$0xff] %v8310_v50 }
 0x77f   :  { %v8314_v24 = vpop.eup %8313  ;;  %7484 = vst [vmem:[#allocation2 + $0x1c8] sm:$0xff] %v8312_v10 }
 0x780   :  { %7486 = vst [vmem:[#allocation2 + $0x1d8] sm:$0xff] %v8314_v24 }
 0x781   :  { %v8316_v16 = vpop.eup %8315 }
 0x782   :  { %v8318_v1 = vpop.eup %8317  ;;  %7487 = vst [vmem:[#allocation2 + $0x1e0] sm:$0xff] %v8316_v16 }
 0x783   :  { %7489 = vst [vmem:[#allocation2 + $0x1f0] sm:$0xff] %v8318_v1 }
 0x784   :  { %v8320_v9 = vpop.eup %8319 }
 0x785   :  { %v8322_v3 = vpop.eup %8321  ;;  %7488 = vst [vmem:[#allocation2 + $0x1e8] sm:$0xff] %v8320_v9 }
 0x786   :  { %7490 = vst [vmem:[#allocation2 + $0x1f8] sm:$0xff] %v8322_v3 }
 0x787   :  { %8334 = shalt.err (!%p8331_p4)
}
 0x788   :  { %s8335_s4 = scalar_lea.hbm %s10123_s3, 8192 }
 0x789   :  { %p8336_p5 = scmp.ne.s32.totalorder %s10123_s3, %s8335_s4  ;;  %p8339_p6 = scmp.lt.u32.totalorder %s8335_s4, %s10123_s3 }
 0x78b   :  { %p8341_p7 = pnand %p8339_p6, %p8336_p5 }
 0x78d   :  { %8344 = shalt.err (!%p8341_p7)
}
 0x78e   :  { %s8352_s9 = smov 512   ;;  %s8353_s10 = smov 32  }
 0x78f   :  { %7502 = dma.vmem_to_hbm [thread:$0]  %s7497_s28, 8192, %s10123_s3, [#allocation3], %s8352_s9, %s8352_s9, %s8353_s10  }
 0x790   :  { %8345 = dma.done.wait [#allocation3], 8192  }
 0x791   :  { %8346 = vsyncadd [#allocation3], 4294959104 }
 0x792   :  { %7506 = vsyncpa [#allocation3], 1 }

</bundles_post_ra>
